<compile_context>
chip_gen: v7x
topology: tpu7x:2x2x1
jax: 0.10.0
libtpu: 0.0.40
codegen_flags: <defaults>
</compile_context>

<pallas_src>
import numpy as np
import jax
import jax.numpy as jnp
from jax import lax
from jax.experimental import pallas as pl
from jax.experimental.pallas import tpu as pltpu


# ----------------------------------------------------------------------------
# Structured-D kernel: D = [-I; -I].  No MXU in the loop, only VPU/XLU/EUP.
# ----------------------------------------------------------------------------
def _admm_structured_kernel(params_ref, x02_ref, yc2_ref, base_ref,
                            x_out_ref, mse_out_ref):
    gamlam = params_ref[0]          # gamma * lam
    inv_g2 = params_ref[1]          # 1 / (gamma + 2)

    two_n = yc2_ref.shape[1]
    n = two_n // 2
    ep = base_ref.shape[0]

    # Hoisted scalar->vector splats (kept out of the unrolled loop).
    gamlam_v = jnp.full((1, two_n), gamlam, jnp.float32)
    inv_g2_v = jnp.full((1, two_n), inv_g2, jnp.float32)

    def body(i, carry):
        zv, v = carry                               # both (1, 2N)
        # Independent of the roll chain -> overlaps with it.
        c = base_ref[pl.ds(i, 1), :] + v            # (y_dt + noise_i) + v
        # D = [-I; -I]:  zv @ F == (zv + roll(zv, N)) / (gamma + 2)
        fr = (zv + pltpu.roll(zv, shift=n, axis=1)) * inv_g2_v
        z_in = c + fr
        # Group soft-threshold prox via XLU pairing + EUP rsqrt.
        partner = pltpu.roll(z_in, shift=n, axis=1)
        inv_norm = lax.rsqrt(z_in * z_in + partner * partner + 1e-8)
        factor = jnp.maximum(1.0 - gamlam_v * inv_norm, 0.0)
        zv_new = z_in * (2.0 * factor - 1.0)        # z_new - v_new
        v_new = z_in * (1.0 - factor)               # z_in - z_new
        return (zv_new, v_new)

    zv0 = jnp.zeros((1, two_n), jnp.float32)
    v0 = jnp.zeros((1, two_n), jnp.float32)
    # Only the first EP-1 z/v updates influence the returned x: the reference
    # computes x BEFORE the final z/v update and never returns z/v.
    zv, _ = lax.fori_loop(0, ep - 1, body, (zv0, v0), unroll=True)

    # x = C_inv (y + D^T zv / gamma) = y_c - (zv1 + zv2)/(gamma+2),
    # broadcast over both halves so the store / mse stay lane-dense.
    s_full = zv + pltpu.roll(zv, shift=n, axis=1)
    x2 = yc2_ref[...] - s_full * inv_g2_v
    x_out_ref[...] = x2
    diff = x2 - x02_ref[...]
    # Both halves are identical copies -> mean over 2N == mean over N.
    mse_out_ref[...] = jnp.sum(diff * diff, keepdims=True) / two_n


# ----------------------------------------------------------------------------
# General dense-D kernel: one fused (1,2N)@(2N,2N) matmul per iteration.
# ----------------------------------------------------------------------------
def _admm_general_kernel(gamlam_ref, x0_ref, yc_ref, e_ref, f_ref, base_ref,
                         x_out_ref, mse_out_ref):
    gamlam = gamlam_ref[0]

    yc = yc_ref[...]        # (1, N)    = y^T C_inv^T
    e = e_ref[...]          # (2N, N)   = D C_inv^T / gamma
    f = f_ref[...]          # (2N, 2N)  = E D^T
    x0 = x0_ref[...]        # (1, N)

    n = yc.shape[1]
    two_n = f.shape[0]
    ep = base_ref.shape[0]

    gamlam_v = jnp.full((1, two_n), gamlam, jnp.float32)

    def body(i, carry):
        zv, v = carry
        c = base_ref[pl.ds(i, 1), :] + v            # off the matmul chain
        z_in = c + jnp.dot(zv, f, preferred_element_type=jnp.float32)
        partner = pltpu.roll(z_in, shift=n, axis=1)
        inv_norm = lax.rsqrt(z_in * z_in + partner * partner + 1e-8)
        factor = jnp.maximum(1.0 - gamlam_v * inv_norm, 0.0)
        return (z_in * (2.0 * factor - 1.0), z_in * (1.0 - factor))

    zv0 = jnp.zeros((1, two_n), jnp.float32)
    v0 = jnp.zeros((1, two_n), jnp.float32)
    zv, _ = lax.fori_loop(0, ep - 1, body, (zv0, v0), unroll=True)

    x = yc + jnp.dot(zv, e, preferred_element_type=jnp.float32)   # (1, N)
    x_out_ref[...] = x
    diff = x - x0
    mse_out_ref[...] = jnp.sum(diff * diff, keepdims=True) / n


# ----------------------------------------------------------------------------
# Wrappers
# ----------------------------------------------------------------------------
@jax.jit
def _admm_structured(y, x_0, lam, gamma_raw, noise):
    N = y.shape[0]
    gamma = jnp.log1p(jnp.exp(jnp.asarray(gamma_raw, jnp.float32)))   # softplus
    lam = jnp.asarray(lam, jnp.float32)
    gamlam = gamma * lam
    inv_g2 = 1.0 / (gamma + 2.0)         # C_inv = gamma/(gamma+2) I for D=[-I;-I]
    scale = gamma * inv_g2

    y_row = y.reshape(1, N).astype(jnp.float32)
    x0_row = x_0.reshape(1, N).astype(jnp.float32)
    yc2 = jnp.concatenate([y_row, y_row], axis=1) * scale     # (1, 2N): [y_c, y_c]
    x02 = jnp.concatenate([x0_row, x0_row], axis=1)           # (1, 2N)
    base = noise.astype(jnp.float32) - yc2                    # y_dt + noise (y_dt = -yc2)
    params = jnp.stack([gamlam, inv_g2]).astype(jnp.float32)  # (2,) SMEM scalars

    x2, mse = pl.pallas_call(
        _admm_structured_kernel,
        out_shape=(
            jax.ShapeDtypeStruct((1, 2 * N), jnp.float32),
            jax.ShapeDtypeStruct((1, 1), jnp.float32),
        ),
        in_specs=[
            pl.BlockSpec(memory_space=pltpu.MemorySpace.SMEM),   # [gamma*lam, 1/(gamma+2)]
            pl.BlockSpec(memory_space=pltpu.MemorySpace.VMEM),   # x_0 (duplicated halves)
            pl.BlockSpec(memory_space=pltpu.MemorySpace.VMEM),   # y_c (duplicated halves)
            pl.BlockSpec(memory_space=pltpu.MemorySpace.VMEM),   # y_dt + noise  (EP, 2N)
        ],
        out_specs=(
            pl.BlockSpec(memory_space=pltpu.MemorySpace.VMEM),
            pl.BlockSpec(memory_space=pltpu.MemorySpace.VMEM),
        ),
    )(params, x02, yc2, base)
    return x2[:, :N].reshape(N, 1), mse[0, 0]


@jax.jit
def _admm_general(y, x_0, D, lam, gamma_raw, noise):
    N = y.shape[0]
    D = jnp.asarray(D, jnp.float32)
    gamma = jnp.log1p(jnp.exp(jnp.asarray(gamma_raw, jnp.float32)))   # softplus
    lam = jnp.asarray(lam, jnp.float32)
    gamlam = (gamma * lam).astype(jnp.float32)

    # Setup glue (fused under jit): C = I + D^T D / gamma, fused operators E, F
    # and the y-dependent constants.
    C = jnp.eye(N, dtype=jnp.float32) + (D.T @ D) / gamma
    C_inv_T = jnp.linalg.inv(C).T

    y_row = y.reshape(1, N).astype(jnp.float32)
    x0_row = x_0.reshape(1, N).astype(jnp.float32)
    E = (D @ C_inv_T) / gamma            # (2N, N)
    F = E @ D.T                          # (2N, 2N)
    y_c = y_row @ C_inv_T                # (1, N)
    y_dt = y_c @ D.T                     # (1, 2N)
    base = y_dt + noise.astype(jnp.float32)   # folded once, outside the loop

    x_row, mse = pl.pallas_call(
        _admm_general_kernel,
        out_shape=(
            jax.ShapeDtypeStruct((1, N), jnp.float32),
            jax.ShapeDtypeStruct((1, 1), jnp.float32),
        ),
        in_specs=[
            pl.BlockSpec(memory_space=pltpu.MemorySpace.SMEM),   # gamma*lam
            pl.BlockSpec(memory_space=pltpu.MemorySpace.VMEM),   # x_0
            pl.BlockSpec(memory_space=pltpu.MemorySpace.VMEM),   # y_c
            pl.BlockSpec(memory_space=pltpu.MemorySpace.VMEM),   # E
            pl.BlockSpec(memory_space=pltpu.MemorySpace.VMEM),   # F
            pl.BlockSpec(memory_space=pltpu.MemorySpace.VMEM),   # y_dt + noise
        ],
        out_specs=(
            pl.BlockSpec(memory_space=pltpu.MemorySpace.VMEM),
            pl.BlockSpec(memory_space=pltpu.MemorySpace.VMEM),
        ),
    )(gamlam.reshape(1), x0_row, y_c, E, F, base)
    return x_row.reshape(N, 1), mse[0, 0]


def admm_deep_unfolding(y, x_0, D, lam, gamma_raw, noise):
    """Forward pass of ADMMDeepUnfolding.

    y, x_0 : (N, 1) float32 column vectors (PyTorch convention)
    D      : (2N, N) float32
    noise  : (EP, 2N) pre-sampled Gaussian noise (randn * stan_devi)
    Returns (x, mse) with x of shape (N, 1) and mse scalar.
    """
    N = y.shape[0]
    # The roll-based prox pairing assumes the (1, 2N) row exactly tiles 128-lane
    # rows; anything else would need explicit pad+mask.
    assert (2 * N) % 128 == 0, "2N must be a multiple of 128 for the lane-roll prox"

    D_np = np.asarray(D, dtype=np.float32)
    struct = np.concatenate([-np.eye(N), -np.eye(N)]).astype(np.float32)
    if D_np.shape == (2 * N, N) and np.array_equal(D_np, struct):
        return _admm_structured(y, x_0, lam, gamma_raw, noise)
    return _admm_general(y, x_0, D, lam, gamma_raw, noise)


# ----------------------------------------------------------------------------
# Pure-JAX reference (mirrors the PyTorch forward, column-vector form).
# ----------------------------------------------------------------------------
def _reference(y, x_0, D, lam, gamma_raw, noise):
    N = y.shape[0]
    D = jnp.asarray(D, jnp.float32)
    gamma = jnp.log1p(jnp.exp(jnp.asarray(gamma_raw, jnp.float32)))
    gamlam = gamma * lam
    C = jnp.eye(N, dtype=jnp.float32) + (D.T @ D) / gamma
    C_inv = jnp.linalg.inv(C)

    def prox(w, l):
        x1, x2 = w[:N], w[N:]
        norm = jnp.sqrt(x1 ** 2 + x2 ** 2 + 1e-8)
        factor = jnp.maximum(1 - l / norm, 0.0)
        return jnp.concatenate([x1 * factor, x2 * factor], axis=0)

    def body(ep, carry):
        x, z, v = carry
        na = noise[ep].reshape(-1, 1)
        x = C_inv @ (y + D.T @ (z - v) / gamma)
        z_in = D @ x + v + na
        z = prox(z_in, gamlam)
        v = z_in - z
        return (x, z, v)

    z0 = jnp.zeros((2 * N, 1), jnp.float32)
    v0 = jnp.zeros((2 * N, 1), jnp.float32)
    x, _, _ = jax.lax.fori_loop(0, noise.shape[0], body, (y, z0, v0))
    mse = jnp.mean((x - x_0) ** 2)
    return x, mse


if __name__ == "__main__":
    size = 8
    N = size * size            # 64  -> 2N = 128 (one full lane row)
    EP = 50
    lam = 0.1
    amp = 256
    stan_devi = float(np.sqrt((amp - 1) * 2.56e-9))

    # D = concat([D_v, D_u]) with D_u = D_v = -I
    D_np = np.concatenate((np.eye(N) * -1, np.eye(N) * -1)).astype(np.float32)
    D = jnp.asarray(D_np)      # (2N, N)

    key = jax.random.PRNGKey(0)
    k1, k2, k3, k4 = jax.random.split(key, 4)
    y = jax.random.normal(k1, (N, 1), jnp.float32)
    x_0 = jax.random.normal(k2, (N, 1), jnp.float32)
    # TODO(synk): torch.randn per step (in-kernel RNG) is replaced by
    # deterministically pre-sampled noise passed as a kernel input.
    noise = jax.random.normal(k3, (EP, 2 * N), jnp.float32) * stan_devi

    # Structured-D fast path (no MXU inside the loop).
    x, mse = admm_deep_unfolding(y, x_0, D, lam, 1.0, noise)
    jax.block_until_ready((x, mse))
    x_ref, mse_ref = _reference(y, x_0, D, lam, 1.0, noise)
    np.testing.assert_allclose(np.asarray(x), np.asarray(x_ref), rtol=1e-4, atol=1e-4)
    np.testing.assert_allclose(np.asarray(mse), np.asarray(mse_ref), rtol=1e-4, atol=1e-5)

    # General dense-D path (kept behind the structure check) with a random D.
    D_rand = jax.random.normal(k4, (2 * N, N), jnp.float32) * 0.25
    xg, mseg = admm_deep_unfolding(y, x_0, D_rand, lam, 1.0, noise)
    jax.block_until_ready((xg, mseg))
    xg_ref, mseg_ref = _reference(y, x_0, D_rand, lam, 1.0, noise)
    np.testing.assert_allclose(np.asarray(xg), np.asarray(xg_ref), rtol=1e-3, atol=1e-3)
    np.testing.assert_allclose(np.asarray(mseg), np.asarray(mseg_ref), rtol=1e-3, atol=1e-4)

    print("KERNEL_OK")
</pallas_src>

<mosaic_0001>
module attributes {stable_mosaic.version = 11 : i64} {
  func.func @_admm_structured_kernel(%arg0: memref<2xf32, #tpu.memory_space<smem>>, %arg1: memref<1x128xf32, #tpu.memory_space<vmem>>, %arg2: memref<1x128xf32, #tpu.memory_space<vmem>>, %arg3: memref<50x128xf32, #tpu.memory_space<vmem>>, %arg4: memref<1x128xf32, #tpu.memory_space<vmem>>, %arg5: memref<1x1xf32, #tpu.memory_space<vmem>>) attributes {dimension_semantics = [], scalar_prefetch = 0 : i64, scratch_operands = 0 : i64, tpu.core_type = #tpu.core_type<tc>} {
    %c0 = arith.constant 0 : index
    %0 = memref.load %arg0[%c0] : memref<2xf32, #tpu.memory_space<smem>>
    %c1 = arith.constant 1 : index
    %1 = memref.load %arg0[%c1] : memref<2xf32, #tpu.memory_space<smem>>
    %2 = vector.broadcast %0 : f32 to vector<1x128xf32>
    %3 = vector.broadcast %1 : f32 to vector<1x128xf32>
    %cst = arith.constant 0.000000e+00 : f32
    %4 = vector.broadcast %cst : f32 to vector<1x128xf32>
    %cst_0 = arith.constant 0.000000e+00 : f32
    %5 = vector.broadcast %cst_0 : f32 to vector<1x128xf32>
    %c0_i32 = arith.constant 0 : i32
    %6 = arith.index_cast %c0_i32 : i32 to index
    %c0_1 = arith.constant 0 : index
    %7 = vector.load %arg3[%6, %c0_1] : memref<50x128xf32, #tpu.memory_space<vmem>>, vector<1x128xf32>
    %8 = arith.addf %7, %5 : vector<1x128xf32>
    %c64_i32 = arith.constant 64 : i32
    %9 = tpu.dynamic_rotate %4 by %c64_i32 dim 1 : vector<1x128xf32>, i32 -> vector<1x128xf32>
    %10 = arith.addf %4, %9 : vector<1x128xf32>
    %11 = arith.mulf %10, %3 : vector<1x128xf32>
    %12 = arith.addf %8, %11 : vector<1x128xf32>
    %c64_i32_2 = arith.constant 64 : i32
    %13 = tpu.dynamic_rotate %12 by %c64_i32_2 dim 1 : vector<1x128xf32>, i32 -> vector<1x128xf32>
    %14 = arith.mulf %12, %12 : vector<1x128xf32>
    %15 = arith.mulf %13, %13 : vector<1x128xf32>
    %16 = arith.addf %14, %15 : vector<1x128xf32>
    %cst_3 = arith.constant 9.99999993E-9 : f32
    %17 = vector.broadcast %cst_3 : f32 to vector<1x128xf32>
    %18 = arith.addf %16, %17 : vector<1x128xf32>
    %19 = math.rsqrt %18 : vector<1x128xf32>
    %20 = arith.mulf %2, %19 : vector<1x128xf32>
    %cst_4 = arith.constant 1.000000e+00 : f32
    %21 = vector.broadcast %cst_4 : f32 to vector<1x128xf32>
    %22 = arith.subf %21, %20 : vector<1x128xf32>
    %cst_5 = arith.constant 0.000000e+00 : f32
    %23 = vector.broadcast %cst_5 : f32 to vector<1x128xf32>
    %24 = arith.maximumf %22, %23 : vector<1x128xf32>
    %cst_6 = arith.constant 2.000000e+00 : f32
    %25 = vector.broadcast %cst_6 : f32 to vector<1x128xf32>
    %26 = arith.mulf %25, %24 : vector<1x128xf32>
    %cst_7 = arith.constant 1.000000e+00 : f32
    %27 = vector.broadcast %cst_7 : f32 to vector<1x128xf32>
    %28 = arith.subf %26, %27 : vector<1x128xf32>
    %29 = arith.mulf %12, %28 : vector<1x128xf32>
    %cst_8 = arith.constant 1.000000e+00 : f32
    %30 = vector.broadcast %cst_8 : f32 to vector<1x128xf32>
    %31 = arith.subf %30, %24 : vector<1x128xf32>
    %32 = arith.mulf %12, %31 : vector<1x128xf32>
    %c1_i32 = arith.constant 1 : i32
    %33 = arith.index_cast %c1_i32 : i32 to index
    %c0_9 = arith.constant 0 : index
    %34 = vector.load %arg3[%33, %c0_9] : memref<50x128xf32, #tpu.memory_space<vmem>>, vector<1x128xf32>
    %35 = arith.addf %34, %32 : vector<1x128xf32>
    %c64_i32_10 = arith.constant 64 : i32
    %36 = tpu.dynamic_rotate %29 by %c64_i32_10 dim 1 : vector<1x128xf32>, i32 -> vector<1x128xf32>
    %37 = arith.addf %29, %36 : vector<1x128xf32>
    %38 = arith.mulf %37, %3 : vector<1x128xf32>
    %39 = arith.addf %35, %38 : vector<1x128xf32>
    %c64_i32_11 = arith.constant 64 : i32
    %40 = tpu.dynamic_rotate %39 by %c64_i32_11 dim 1 : vector<1x128xf32>, i32 -> vector<1x128xf32>
    %41 = arith.mulf %39, %39 : vector<1x128xf32>
    %42 = arith.mulf %40, %40 : vector<1x128xf32>
    %43 = arith.addf %41, %42 : vector<1x128xf32>
    %cst_12 = arith.constant 9.99999993E-9 : f32
    %44 = vector.broadcast %cst_12 : f32 to vector<1x128xf32>
    %45 = arith.addf %43, %44 : vector<1x128xf32>
    %46 = math.rsqrt %45 : vector<1x128xf32>
    %47 = arith.mulf %2, %46 : vector<1x128xf32>
    %cst_13 = arith.constant 1.000000e+00 : f32
    %48 = vector.broadcast %cst_13 : f32 to vector<1x128xf32>
    %49 = arith.subf %48, %47 : vector<1x128xf32>
    %cst_14 = arith.constant 0.000000e+00 : f32
    %50 = vector.broadcast %cst_14 : f32 to vector<1x128xf32>
    %51 = arith.maximumf %49, %50 : vector<1x128xf32>
    %cst_15 = arith.constant 2.000000e+00 : f32
    %52 = vector.broadcast %cst_15 : f32 to vector<1x128xf32>
    %53 = arith.mulf %52, %51 : vector<1x128xf32>
    %cst_16 = arith.constant 1.000000e+00 : f32
    %54 = vector.broadcast %cst_16 : f32 to vector<1x128xf32>
    %55 = arith.subf %53, %54 : vector<1x128xf32>
    %56 = arith.mulf %39, %55 : vector<1x128xf32>
    %cst_17 = arith.constant 1.000000e+00 : f32
    %57 = vector.broadcast %cst_17 : f32 to vector<1x128xf32>
    %58 = arith.subf %57, %51 : vector<1x128xf32>
    %59 = arith.mulf %39, %58 : vector<1x128xf32>
    %c2_i32 = arith.constant 2 : i32
    %60 = arith.index_cast %c2_i32 : i32 to index
    %c0_18 = arith.constant 0 : index
    %61 = vector.load %arg3[%60, %c0_18] : memref<50x128xf32, #tpu.memory_space<vmem>>, vector<1x128xf32>
    %62 = arith.addf %61, %59 : vector<1x128xf32>
    %c64_i32_19 = arith.constant 64 : i32
    %63 = tpu.dynamic_rotate %56 by %c64_i32_19 dim 1 : vector<1x128xf32>, i32 -> vector<1x128xf32>
    %64 = arith.addf %56, %63 : vector<1x128xf32>
    %65 = arith.mulf %64, %3 : vector<1x128xf32>
    %66 = arith.addf %62, %65 : vector<1x128xf32>
    %c64_i32_20 = arith.constant 64 : i32
    %67 = tpu.dynamic_rotate %66 by %c64_i32_20 dim 1 : vector<1x128xf32>, i32 -> vector<1x128xf32>
    %68 = arith.mulf %66, %66 : vector<1x128xf32>
    %69 = arith.mulf %67, %67 : vector<1x128xf32>
    %70 = arith.addf %68, %69 : vector<1x128xf32>
    %cst_21 = arith.constant 9.99999993E-9 : f32
    %71 = vector.broadcast %cst_21 : f32 to vector<1x128xf32>
    %72 = arith.addf %70, %71 : vector<1x128xf32>
    %73 = math.rsqrt %72 : vector<1x128xf32>
    %74 = arith.mulf %2, %73 : vector<1x128xf32>
    %cst_22 = arith.constant 1.000000e+00 : f32
    %75 = vector.broadcast %cst_22 : f32 to vector<1x128xf32>
    %76 = arith.subf %75, %74 : vector<1x128xf32>
    %cst_23 = arith.constant 0.000000e+00 : f32
    %77 = vector.broadcast %cst_23 : f32 to vector<1x128xf32>
    %78 = arith.maximumf %76, %77 : vector<1x128xf32>
    %cst_24 = arith.constant 2.000000e+00 : f32
    %79 = vector.broadcast %cst_24 : f32 to vector<1x128xf32>
    %80 = arith.mulf %79, %78 : vector<1x128xf32>
    %cst_25 = arith.constant 1.000000e+00 : f32
    %81 = vector.broadcast %cst_25 : f32 to vector<1x128xf32>
    %82 = arith.subf %80, %81 : vector<1x128xf32>
    %83 = arith.mulf %66, %82 : vector<1x128xf32>
    %cst_26 = arith.constant 1.000000e+00 : f32
    %84 = vector.broadcast %cst_26 : f32 to vector<1x128xf32>
    %85 = arith.subf %84, %78 : vector<1x128xf32>
    %86 = arith.mulf %66, %85 : vector<1x128xf32>
    %c3_i32 = arith.constant 3 : i32
    %87 = arith.index_cast %c3_i32 : i32 to index
    %c0_27 = arith.constant 0 : index
    %88 = vector.load %arg3[%87, %c0_27] : memref<50x128xf32, #tpu.memory_space<vmem>>, vector<1x128xf32>
    %89 = arith.addf %88, %86 : vector<1x128xf32>
    %c64_i32_28 = arith.constant 64 : i32
    %90 = tpu.dynamic_rotate %83 by %c64_i32_28 dim 1 : vector<1x128xf32>, i32 -> vector<1x128xf32>
    %91 = arith.addf %83, %90 : vector<1x128xf32>
    %92 = arith.mulf %91, %3 : vector<1x128xf32>
    %93 = arith.addf %89, %92 : vector<1x128xf32>
    %c64_i32_29 = arith.constant 64 : i32
    %94 = tpu.dynamic_rotate %93 by %c64_i32_29 dim 1 : vector<1x128xf32>, i32 -> vector<1x128xf32>
    %95 = arith.mulf %93, %93 : vector<1x128xf32>
    %96 = arith.mulf %94, %94 : vector<1x128xf32>
    %97 = arith.addf %95, %96 : vector<1x128xf32>
    %cst_30 = arith.constant 9.99999993E-9 : f32
    %98 = vector.broadcast %cst_30 : f32 to vector<1x128xf32>
    %99 = arith.addf %97, %98 : vector<1x128xf32>
    %100 = math.rsqrt %99 : vector<1x128xf32>
    %101 = arith.mulf %2, %100 : vector<1x128xf32>
    %cst_31 = arith.constant 1.000000e+00 : f32
    %102 = vector.broadcast %cst_31 : f32 to vector<1x128xf32>
    %103 = arith.subf %102, %101 : vector<1x128xf32>
    %cst_32 = arith.constant 0.000000e+00 : f32
    %104 = vector.broadcast %cst_32 : f32 to vector<1x128xf32>
    %105 = arith.maximumf %103, %104 : vector<1x128xf32>
    %cst_33 = arith.constant 2.000000e+00 : f32
    %106 = vector.broadcast %cst_33 : f32 to vector<1x128xf32>
    %107 = arith.mulf %106, %105 : vector<1x128xf32>
    %cst_34 = arith.constant 1.000000e+00 : f32
    %108 = vector.broadcast %cst_34 : f32 to vector<1x128xf32>
    %109 = arith.subf %107, %108 : vector<1x128xf32>
    %110 = arith.mulf %93, %109 : vector<1x128xf32>
    %cst_35 = arith.constant 1.000000e+00 : f32
    %111 = vector.broadcast %cst_35 : f32 to vector<1x128xf32>
    %112 = arith.subf %111, %105 : vector<1x128xf32>
    %113 = arith.mulf %93, %112 : vector<1x128xf32>
    %c4_i32 = arith.constant 4 : i32
    %114 = arith.index_cast %c4_i32 : i32 to index
    %c0_36 = arith.constant 0 : index
    %115 = vector.load %arg3[%114, %c0_36] : memref<50x128xf32, #tpu.memory_space<vmem>>, vector<1x128xf32>
    %116 = arith.addf %115, %113 : vector<1x128xf32>
    %c64_i32_37 = arith.constant 64 : i32
    %117 = tpu.dynamic_rotate %110 by %c64_i32_37 dim 1 : vector<1x128xf32>, i32 -> vector<1x128xf32>
    %118 = arith.addf %110, %117 : vector<1x128xf32>
    %119 = arith.mulf %118, %3 : vector<1x128xf32>
    %120 = arith.addf %116, %119 : vector<1x128xf32>
    %c64_i32_38 = arith.constant 64 : i32
    %121 = tpu.dynamic_rotate %120 by %c64_i32_38 dim 1 : vector<1x128xf32>, i32 -> vector<1x128xf32>
    %122 = arith.mulf %120, %120 : vector<1x128xf32>
    %123 = arith.mulf %121, %121 : vector<1x128xf32>
    %124 = arith.addf %122, %123 : vector<1x128xf32>
    %cst_39 = arith.constant 9.99999993E-9 : f32
    %125 = vector.broadcast %cst_39 : f32 to vector<1x128xf32>
    %126 = arith.addf %124, %125 : vector<1x128xf32>
    %127 = math.rsqrt %126 : vector<1x128xf32>
    %128 = arith.mulf %2, %127 : vector<1x128xf32>
    %cst_40 = arith.constant 1.000000e+00 : f32
    %129 = vector.broadcast %cst_40 : f32 to vector<1x128xf32>
    %130 = arith.subf %129, %128 : vector<1x128xf32>
    %cst_41 = arith.constant 0.000000e+00 : f32
    %131 = vector.broadcast %cst_41 : f32 to vector<1x128xf32>
    %132 = arith.maximumf %130, %131 : vector<1x128xf32>
    %cst_42 = arith.constant 2.000000e+00 : f32
    %133 = vector.broadcast %cst_42 : f32 to vector<1x128xf32>
    %134 = arith.mulf %133, %132 : vector<1x128xf32>
    %cst_43 = arith.constant 1.000000e+00 : f32
    %135 = vector.broadcast %cst_43 : f32 to vector<1x128xf32>
    %136 = arith.subf %134, %135 : vector<1x128xf32>
    %137 = arith.mulf %120, %136 : vector<1x128xf32>
    %cst_44 = arith.constant 1.000000e+00 : f32
    %138 = vector.broadcast %cst_44 : f32 to vector<1x128xf32>
    %139 = arith.subf %138, %132 : vector<1x128xf32>
    %140 = arith.mulf %120, %139 : vector<1x128xf32>
    %c5_i32 = arith.constant 5 : i32
    %141 = arith.index_cast %c5_i32 : i32 to index
    %c0_45 = arith.constant 0 : index
    %142 = vector.load %arg3[%141, %c0_45] : memref<50x128xf32, #tpu.memory_space<vmem>>, vector<1x128xf32>
    %143 = arith.addf %142, %140 : vector<1x128xf32>
    %c64_i32_46 = arith.constant 64 : i32
    %144 = tpu.dynamic_rotate %137 by %c64_i32_46 dim 1 : vector<1x128xf32>, i32 -> vector<1x128xf32>
    %145 = arith.addf %137, %144 : vector<1x128xf32>
    %146 = arith.mulf %145, %3 : vector<1x128xf32>
    %147 = arith.addf %143, %146 : vector<1x128xf32>
    %c64_i32_47 = arith.constant 64 : i32
    %148 = tpu.dynamic_rotate %147 by %c64_i32_47 dim 1 : vector<1x128xf32>, i32 -> vector<1x128xf32>
    %149 = arith.mulf %147, %147 : vector<1x128xf32>
    %150 = arith.mulf %148, %148 : vector<1x128xf32>
    %151 = arith.addf %149, %150 : vector<1x128xf32>
    %cst_48 = arith.constant 9.99999993E-9 : f32
    %152 = vector.broadcast %cst_48 : f32 to vector<1x128xf32>
    %153 = arith.addf %151, %152 : vector<1x128xf32>
    %154 = math.rsqrt %153 : vector<1x128xf32>
    %155 = arith.mulf %2, %154 : vector<1x128xf32>
    %cst_49 = arith.constant 1.000000e+00 : f32
    %156 = vector.broadcast %cst_49 : f32 to vector<1x128xf32>
    %157 = arith.subf %156, %155 : vector<1x128xf32>
    %cst_50 = arith.constant 0.000000e+00 : f32
    %158 = vector.broadcast %cst_50 : f32 to vector<1x128xf32>
    %159 = arith.maximumf %157, %158 : vector<1x128xf32>
    %cst_51 = arith.constant 2.000000e+00 : f32
    %160 = vector.broadcast %cst_51 : f32 to vector<1x128xf32>
    %161 = arith.mulf %160, %159 : vector<1x128xf32>
    %cst_52 = arith.constant 1.000000e+00 : f32
    %162 = vector.broadcast %cst_52 : f32 to vector<1x128xf32>
    %163 = arith.subf %161, %162 : vector<1x128xf32>
    %164 = arith.mulf %147, %163 : vector<1x128xf32>
    %cst_53 = arith.constant 1.000000e+00 : f32
    %165 = vector.broadcast %cst_53 : f32 to vector<1x128xf32>
    %166 = arith.subf %165, %159 : vector<1x128xf32>
    %167 = arith.mulf %147, %166 : vector<1x128xf32>
    %c6_i32 = arith.constant 6 : i32
    %168 = arith.index_cast %c6_i32 : i32 to index
    %c0_54 = arith.constant 0 : index
    %169 = vector.load %arg3[%168, %c0_54] : memref<50x128xf32, #tpu.memory_space<vmem>>, vector<1x128xf32>
    %170 = arith.addf %169, %167 : vector<1x128xf32>
    %c64_i32_55 = arith.constant 64 : i32
    %171 = tpu.dynamic_rotate %164 by %c64_i32_55 dim 1 : vector<1x128xf32>, i32 -> vector<1x128xf32>
    %172 = arith.addf %164, %171 : vector<1x128xf32>
    %173 = arith.mulf %172, %3 : vector<1x128xf32>
    %174 = arith.addf %170, %173 : vector<1x128xf32>
    %c64_i32_56 = arith.constant 64 : i32
    %175 = tpu.dynamic_rotate %174 by %c64_i32_56 dim 1 : vector<1x128xf32>, i32 -> vector<1x128xf32>
    %176 = arith.mulf %174, %174 : vector<1x128xf32>
    %177 = arith.mulf %175, %175 : vector<1x128xf32>
    %178 = arith.addf %176, %177 : vector<1x128xf32>
    %cst_57 = arith.constant 9.99999993E-9 : f32
    %179 = vector.broadcast %cst_57 : f32 to vector<1x128xf32>
    %180 = arith.addf %178, %179 : vector<1x128xf32>
    %181 = math.rsqrt %180 : vector<1x128xf32>
    %182 = arith.mulf %2, %181 : vector<1x128xf32>
    %cst_58 = arith.constant 1.000000e+00 : f32
    %183 = vector.broadcast %cst_58 : f32 to vector<1x128xf32>
    %184 = arith.subf %183, %182 : vector<1x128xf32>
    %cst_59 = arith.constant 0.000000e+00 : f32
    %185 = vector.broadcast %cst_59 : f32 to vector<1x128xf32>
    %186 = arith.maximumf %184, %185 : vector<1x128xf32>
    %cst_60 = arith.constant 2.000000e+00 : f32
    %187 = vector.broadcast %cst_60 : f32 to vector<1x128xf32>
    %188 = arith.mulf %187, %186 : vector<1x128xf32>
    %cst_61 = arith.constant 1.000000e+00 : f32
    %189 = vector.broadcast %cst_61 : f32 to vector<1x128xf32>
    %190 = arith.subf %188, %189 : vector<1x128xf32>
    %191 = arith.mulf %174, %190 : vector<1x128xf32>
    %cst_62 = arith.constant 1.000000e+00 : f32
    %192 = vector.broadcast %cst_62 : f32 to vector<1x128xf32>
    %193 = arith.subf %192, %186 : vector<1x128xf32>
    %194 = arith.mulf %174, %193 : vector<1x128xf32>
    %c7_i32 = arith.constant 7 : i32
    %195 = arith.index_cast %c7_i32 : i32 to index
    %c0_63 = arith.constant 0 : index
    %196 = vector.load %arg3[%195, %c0_63] : memref<50x128xf32, #tpu.memory_space<vmem>>, vector<1x128xf32>
    %197 = arith.addf %196, %194 : vector<1x128xf32>
    %c64_i32_64 = arith.constant 64 : i32
    %198 = tpu.dynamic_rotate %191 by %c64_i32_64 dim 1 : vector<1x128xf32>, i32 -> vector<1x128xf32>
    %199 = arith.addf %191, %198 : vector<1x128xf32>
    %200 = arith.mulf %199, %3 : vector<1x128xf32>
    %201 = arith.addf %197, %200 : vector<1x128xf32>
    %c64_i32_65 = arith.constant 64 : i32
    %202 = tpu.dynamic_rotate %201 by %c64_i32_65 dim 1 : vector<1x128xf32>, i32 -> vector<1x128xf32>
    %203 = arith.mulf %201, %201 : vector<1x128xf32>
    %204 = arith.mulf %202, %202 : vector<1x128xf32>
    %205 = arith.addf %203, %204 : vector<1x128xf32>
    %cst_66 = arith.constant 9.99999993E-9 : f32
    %206 = vector.broadcast %cst_66 : f32 to vector<1x128xf32>
    %207 = arith.addf %205, %206 : vector<1x128xf32>
    %208 = math.rsqrt %207 : vector<1x128xf32>
    %209 = arith.mulf %2, %208 : vector<1x128xf32>
    %cst_67 = arith.constant 1.000000e+00 : f32
    %210 = vector.broadcast %cst_67 : f32 to vector<1x128xf32>
    %211 = arith.subf %210, %209 : vector<1x128xf32>
    %cst_68 = arith.constant 0.000000e+00 : f32
    %212 = vector.broadcast %cst_68 : f32 to vector<1x128xf32>
    %213 = arith.maximumf %211, %212 : vector<1x128xf32>
    %cst_69 = arith.constant 2.000000e+00 : f32
    %214 = vector.broadcast %cst_69 : f32 to vector<1x128xf32>
    %215 = arith.mulf %214, %213 : vector<1x128xf32>
    %cst_70 = arith.constant 1.000000e+00 : f32
    %216 = vector.broadcast %cst_70 : f32 to vector<1x128xf32>
    %217 = arith.subf %215, %216 : vector<1x128xf32>
    %218 = arith.mulf %201, %217 : vector<1x128xf32>
    %cst_71 = arith.constant 1.000000e+00 : f32
    %219 = vector.broadcast %cst_71 : f32 to vector<1x128xf32>
    %220 = arith.subf %219, %213 : vector<1x128xf32>
    %221 = arith.mulf %201, %220 : vector<1x128xf32>
    %c8_i32 = arith.constant 8 : i32
    %222 = arith.index_cast %c8_i32 : i32 to index
    %c0_72 = arith.constant 0 : index
    %223 = vector.load %arg3[%222, %c0_72] : memref<50x128xf32, #tpu.memory_space<vmem>>, vector<1x128xf32>
    %224 = arith.addf %223, %221 : vector<1x128xf32>
    %c64_i32_73 = arith.constant 64 : i32
    %225 = tpu.dynamic_rotate %218 by %c64_i32_73 dim 1 : vector<1x128xf32>, i32 -> vector<1x128xf32>
    %226 = arith.addf %218, %225 : vector<1x128xf32>
    %227 = arith.mulf %226, %3 : vector<1x128xf32>
    %228 = arith.addf %224, %227 : vector<1x128xf32>
    %c64_i32_74 = arith.constant 64 : i32
    %229 = tpu.dynamic_rotate %228 by %c64_i32_74 dim 1 : vector<1x128xf32>, i32 -> vector<1x128xf32>
    %230 = arith.mulf %228, %228 : vector<1x128xf32>
    %231 = arith.mulf %229, %229 : vector<1x128xf32>
    %232 = arith.addf %230, %231 : vector<1x128xf32>
    %cst_75 = arith.constant 9.99999993E-9 : f32
    %233 = vector.broadcast %cst_75 : f32 to vector<1x128xf32>
    %234 = arith.addf %232, %233 : vector<1x128xf32>
    %235 = math.rsqrt %234 : vector<1x128xf32>
    %236 = arith.mulf %2, %235 : vector<1x128xf32>
    %cst_76 = arith.constant 1.000000e+00 : f32
    %237 = vector.broadcast %cst_76 : f32 to vector<1x128xf32>
    %238 = arith.subf %237, %236 : vector<1x128xf32>
    %cst_77 = arith.constant 0.000000e+00 : f32
    %239 = vector.broadcast %cst_77 : f32 to vector<1x128xf32>
    %240 = arith.maximumf %238, %239 : vector<1x128xf32>
    %cst_78 = arith.constant 2.000000e+00 : f32
    %241 = vector.broadcast %cst_78 : f32 to vector<1x128xf32>
    %242 = arith.mulf %241, %240 : vector<1x128xf32>
    %cst_79 = arith.constant 1.000000e+00 : f32
    %243 = vector.broadcast %cst_79 : f32 to vector<1x128xf32>
    %244 = arith.subf %242, %243 : vector<1x128xf32>
    %245 = arith.mulf %228, %244 : vector<1x128xf32>
    %cst_80 = arith.constant 1.000000e+00 : f32
    %246 = vector.broadcast %cst_80 : f32 to vector<1x128xf32>
    %247 = arith.subf %246, %240 : vector<1x128xf32>
    %248 = arith.mulf %228, %247 : vector<1x128xf32>
    %c9_i32 = arith.constant 9 : i32
    %249 = arith.index_cast %c9_i32 : i32 to index
    %c0_81 = arith.constant 0 : index
    %250 = vector.load %arg3[%249, %c0_81] : memref<50x128xf32, #tpu.memory_space<vmem>>, vector<1x128xf32>
    %251 = arith.addf %250, %248 : vector<1x128xf32>
    %c64_i32_82 = arith.constant 64 : i32
    %252 = tpu.dynamic_rotate %245 by %c64_i32_82 dim 1 : vector<1x128xf32>, i32 -> vector<1x128xf32>
    %253 = arith.addf %245, %252 : vector<1x128xf32>
    %254 = arith.mulf %253, %3 : vector<1x128xf32>
    %255 = arith.addf %251, %254 : vector<1x128xf32>
    %c64_i32_83 = arith.constant 64 : i32
    %256 = tpu.dynamic_rotate %255 by %c64_i32_83 dim 1 : vector<1x128xf32>, i32 -> vector<1x128xf32>
    %257 = arith.mulf %255, %255 : vector<1x128xf32>
    %258 = arith.mulf %256, %256 : vector<1x128xf32>
    %259 = arith.addf %257, %258 : vector<1x128xf32>
    %cst_84 = arith.constant 9.99999993E-9 : f32
    %260 = vector.broadcast %cst_84 : f32 to vector<1x128xf32>
    %261 = arith.addf %259, %260 : vector<1x128xf32>
    %262 = math.rsqrt %261 : vector<1x128xf32>
    %263 = arith.mulf %2, %262 : vector<1x128xf32>
    %cst_85 = arith.constant 1.000000e+00 : f32
    %264 = vector.broadcast %cst_85 : f32 to vector<1x128xf32>
    %265 = arith.subf %264, %263 : vector<1x128xf32>
    %cst_86 = arith.constant 0.000000e+00 : f32
    %266 = vector.broadcast %cst_86 : f32 to vector<1x128xf32>
    %267 = arith.maximumf %265, %266 : vector<1x128xf32>
    %cst_87 = arith.constant 2.000000e+00 : f32
    %268 = vector.broadcast %cst_87 : f32 to vector<1x128xf32>
    %269 = arith.mulf %268, %267 : vector<1x128xf32>
    %cst_88 = arith.constant 1.000000e+00 : f32
    %270 = vector.broadcast %cst_88 : f32 to vector<1x128xf32>
    %271 = arith.subf %269, %270 : vector<1x128xf32>
    %272 = arith.mulf %255, %271 : vector<1x128xf32>
    %cst_89 = arith.constant 1.000000e+00 : f32
    %273 = vector.broadcast %cst_89 : f32 to vector<1x128xf32>
    %274 = arith.subf %273, %267 : vector<1x128xf32>
    %275 = arith.mulf %255, %274 : vector<1x128xf32>
    %c10_i32 = arith.constant 10 : i32
    %276 = arith.index_cast %c10_i32 : i32 to index
    %c0_90 = arith.constant 0 : index
    %277 = vector.load %arg3[%276, %c0_90] : memref<50x128xf32, #tpu.memory_space<vmem>>, vector<1x128xf32>
    %278 = arith.addf %277, %275 : vector<1x128xf32>
    %c64_i32_91 = arith.constant 64 : i32
    %279 = tpu.dynamic_rotate %272 by %c64_i32_91 dim 1 : vector<1x128xf32>, i32 -> vector<1x128xf32>
    %280 = arith.addf %272, %279 : vector<1x128xf32>
    %281 = arith.mulf %280, %3 : vector<1x128xf32>
    %282 = arith.addf %278, %281 : vector<1x128xf32>
    %c64_i32_92 = arith.constant 64 : i32
    %283 = tpu.dynamic_rotate %282 by %c64_i32_92 dim 1 : vector<1x128xf32>, i32 -> vector<1x128xf32>
    %284 = arith.mulf %282, %282 : vector<1x128xf32>
    %285 = arith.mulf %283, %283 : vector<1x128xf32>
    %286 = arith.addf %284, %285 : vector<1x128xf32>
    %cst_93 = arith.constant 9.99999993E-9 : f32
    %287 = vector.broadcast %cst_93 : f32 to vector<1x128xf32>
    %288 = arith.addf %286, %287 : vector<1x128xf32>
    %289 = math.rsqrt %288 : vector<1x128xf32>
    %290 = arith.mulf %2, %289 : vector<1x128xf32>
    %cst_94 = arith.constant 1.000000e+00 : f32
    %291 = vector.broadcast %cst_94 : f32 to vector<1x128xf32>
    %292 = arith.subf %291, %290 : vector<1x128xf32>
    %cst_95 = arith.constant 0.000000e+00 : f32
    %293 = vector.broadcast %cst_95 : f32 to vector<1x128xf32>
    %294 = arith.maximumf %292, %293 : vector<1x128xf32>
    %cst_96 = arith.constant 2.000000e+00 : f32
    %295 = vector.broadcast %cst_96 : f32 to vector<1x128xf32>
    %296 = arith.mulf %295, %294 : vector<1x128xf32>
    %cst_97 = arith.constant 1.000000e+00 : f32
    %297 = vector.broadcast %cst_97 : f32 to vector<1x128xf32>
    %298 = arith.subf %296, %297 : vector<1x128xf32>
    %299 = arith.mulf %282, %298 : vector<1x128xf32>
    %cst_98 = arith.constant 1.000000e+00 : f32
    %300 = vector.broadcast %cst_98 : f32 to vector<1x128xf32>
    %301 = arith.subf %300, %294 : vector<1x128xf32>
    %302 = arith.mulf %282, %301 : vector<1x128xf32>
    %c11_i32 = arith.constant 11 : i32
    %303 = arith.index_cast %c11_i32 : i32 to index
    %c0_99 = arith.constant 0 : index
    %304 = vector.load %arg3[%303, %c0_99] : memref<50x128xf32, #tpu.memory_space<vmem>>, vector<1x128xf32>
    %305 = arith.addf %304, %302 : vector<1x128xf32>
    %c64_i32_100 = arith.constant 64 : i32
    %306 = tpu.dynamic_rotate %299 by %c64_i32_100 dim 1 : vector<1x128xf32>, i32 -> vector<1x128xf32>
    %307 = arith.addf %299, %306 : vector<1x128xf32>
    %308 = arith.mulf %307, %3 : vector<1x128xf32>
    %309 = arith.addf %305, %308 : vector<1x128xf32>
    %c64_i32_101 = arith.constant 64 : i32
    %310 = tpu.dynamic_rotate %309 by %c64_i32_101 dim 1 : vector<1x128xf32>, i32 -> vector<1x128xf32>
    %311 = arith.mulf %309, %309 : vector<1x128xf32>
    %312 = arith.mulf %310, %310 : vector<1x128xf32>
    %313 = arith.addf %311, %312 : vector<1x128xf32>
    %cst_102 = arith.constant 9.99999993E-9 : f32
    %314 = vector.broadcast %cst_102 : f32 to vector<1x128xf32>
    %315 = arith.addf %313, %314 : vector<1x128xf32>
    %316 = math.rsqrt %315 : vector<1x128xf32>
    %317 = arith.mulf %2, %316 : vector<1x128xf32>
    %cst_103 = arith.constant 1.000000e+00 : f32
    %318 = vector.broadcast %cst_103 : f32 to vector<1x128xf32>
    %319 = arith.subf %318, %317 : vector<1x128xf32>
    %cst_104 = arith.constant 0.000000e+00 : f32
    %320 = vector.broadcast %cst_104 : f32 to vector<1x128xf32>
    %321 = arith.maximumf %319, %320 : vector<1x128xf32>
    %cst_105 = arith.constant 2.000000e+00 : f32
    %322 = vector.broadcast %cst_105 : f32 to vector<1x128xf32>
    %323 = arith.mulf %322, %321 : vector<1x128xf32>
    %cst_106 = arith.constant 1.000000e+00 : f32
    %324 = vector.broadcast %cst_106 : f32 to vector<1x128xf32>
    %325 = arith.subf %323, %324 : vector<1x128xf32>
    %326 = arith.mulf %309, %325 : vector<1x128xf32>
    %cst_107 = arith.constant 1.000000e+00 : f32
    %327 = vector.broadcast %cst_107 : f32 to vector<1x128xf32>
    %328 = arith.subf %327, %321 : vector<1x128xf32>
    %329 = arith.mulf %309, %328 : vector<1x128xf32>
    %c12_i32 = arith.constant 12 : i32
    %330 = arith.index_cast %c12_i32 : i32 to index
    %c0_108 = arith.constant 0 : index
    %331 = vector.load %arg3[%330, %c0_108] : memref<50x128xf32, #tpu.memory_space<vmem>>, vector<1x128xf32>
    %332 = arith.addf %331, %329 : vector<1x128xf32>
    %c64_i32_109 = arith.constant 64 : i32
    %333 = tpu.dynamic_rotate %326 by %c64_i32_109 dim 1 : vector<1x128xf32>, i32 -> vector<1x128xf32>
    %334 = arith.addf %326, %333 : vector<1x128xf32>
    %335 = arith.mulf %334, %3 : vector<1x128xf32>
    %336 = arith.addf %332, %335 : vector<1x128xf32>
    %c64_i32_110 = arith.constant 64 : i32
    %337 = tpu.dynamic_rotate %336 by %c64_i32_110 dim 1 : vector<1x128xf32>, i32 -> vector<1x128xf32>
    %338 = arith.mulf %336, %336 : vector<1x128xf32>
    %339 = arith.mulf %337, %337 : vector<1x128xf32>
    %340 = arith.addf %338, %339 : vector<1x128xf32>
    %cst_111 = arith.constant 9.99999993E-9 : f32
    %341 = vector.broadcast %cst_111 : f32 to vector<1x128xf32>
    %342 = arith.addf %340, %341 : vector<1x128xf32>
    %343 = math.rsqrt %342 : vector<1x128xf32>
    %344 = arith.mulf %2, %343 : vector<1x128xf32>
    %cst_112 = arith.constant 1.000000e+00 : f32
    %345 = vector.broadcast %cst_112 : f32 to vector<1x128xf32>
    %346 = arith.subf %345, %344 : vector<1x128xf32>
    %cst_113 = arith.constant 0.000000e+00 : f32
    %347 = vector.broadcast %cst_113 : f32 to vector<1x128xf32>
    %348 = arith.maximumf %346, %347 : vector<1x128xf32>
    %cst_114 = arith.constant 2.000000e+00 : f32
    %349 = vector.broadcast %cst_114 : f32 to vector<1x128xf32>
    %350 = arith.mulf %349, %348 : vector<1x128xf32>
    %cst_115 = arith.constant 1.000000e+00 : f32
    %351 = vector.broadcast %cst_115 : f32 to vector<1x128xf32>
    %352 = arith.subf %350, %351 : vector<1x128xf32>
    %353 = arith.mulf %336, %352 : vector<1x128xf32>
    %cst_116 = arith.constant 1.000000e+00 : f32
    %354 = vector.broadcast %cst_116 : f32 to vector<1x128xf32>
    %355 = arith.subf %354, %348 : vector<1x128xf32>
    %356 = arith.mulf %336, %355 : vector<1x128xf32>
    %c13_i32 = arith.constant 13 : i32
    %357 = arith.index_cast %c13_i32 : i32 to index
    %c0_117 = arith.constant 0 : index
    %358 = vector.load %arg3[%357, %c0_117] : memref<50x128xf32, #tpu.memory_space<vmem>>, vector<1x128xf32>
    %359 = arith.addf %358, %356 : vector<1x128xf32>
    %c64_i32_118 = arith.constant 64 : i32
    %360 = tpu.dynamic_rotate %353 by %c64_i32_118 dim 1 : vector<1x128xf32>, i32 -> vector<1x128xf32>
    %361 = arith.addf %353, %360 : vector<1x128xf32>
    %362 = arith.mulf %361, %3 : vector<1x128xf32>
    %363 = arith.addf %359, %362 : vector<1x128xf32>
    %c64_i32_119 = arith.constant 64 : i32
    %364 = tpu.dynamic_rotate %363 by %c64_i32_119 dim 1 : vector<1x128xf32>, i32 -> vector<1x128xf32>
    %365 = arith.mulf %363, %363 : vector<1x128xf32>
    %366 = arith.mulf %364, %364 : vector<1x128xf32>
    %367 = arith.addf %365, %366 : vector<1x128xf32>
    %cst_120 = arith.constant 9.99999993E-9 : f32
    %368 = vector.broadcast %cst_120 : f32 to vector<1x128xf32>
    %369 = arith.addf %367, %368 : vector<1x128xf32>
    %370 = math.rsqrt %369 : vector<1x128xf32>
    %371 = arith.mulf %2, %370 : vector<1x128xf32>
    %cst_121 = arith.constant 1.000000e+00 : f32
    %372 = vector.broadcast %cst_121 : f32 to vector<1x128xf32>
    %373 = arith.subf %372, %371 : vector<1x128xf32>
    %cst_122 = arith.constant 0.000000e+00 : f32
    %374 = vector.broadcast %cst_122 : f32 to vector<1x128xf32>
    %375 = arith.maximumf %373, %374 : vector<1x128xf32>
    %cst_123 = arith.constant 2.000000e+00 : f32
    %376 = vector.broadcast %cst_123 : f32 to vector<1x128xf32>
    %377 = arith.mulf %376, %375 : vector<1x128xf32>
    %cst_124 = arith.constant 1.000000e+00 : f32
    %378 = vector.broadcast %cst_124 : f32 to vector<1x128xf32>
    %379 = arith.subf %377, %378 : vector<1x128xf32>
    %380 = arith.mulf %363, %379 : vector<1x128xf32>
    %cst_125 = arith.constant 1.000000e+00 : f32
    %381 = vector.broadcast %cst_125 : f32 to vector<1x128xf32>
    %382 = arith.subf %381, %375 : vector<1x128xf32>
    %383 = arith.mulf %363, %382 : vector<1x128xf32>
    %c14_i32 = arith.constant 14 : i32
    %384 = arith.index_cast %c14_i32 : i32 to index
    %c0_126 = arith.constant 0 : index
    %385 = vector.load %arg3[%384, %c0_126] : memref<50x128xf32, #tpu.memory_space<vmem>>, vector<1x128xf32>
    %386 = arith.addf %385, %383 : vector<1x128xf32>
    %c64_i32_127 = arith.constant 64 : i32
    %387 = tpu.dynamic_rotate %380 by %c64_i32_127 dim 1 : vector<1x128xf32>, i32 -> vector<1x128xf32>
    %388 = arith.addf %380, %387 : vector<1x128xf32>
    %389 = arith.mulf %388, %3 : vector<1x128xf32>
    %390 = arith.addf %386, %389 : vector<1x128xf32>
    %c64_i32_128 = arith.constant 64 : i32
    %391 = tpu.dynamic_rotate %390 by %c64_i32_128 dim 1 : vector<1x128xf32>, i32 -> vector<1x128xf32>
    %392 = arith.mulf %390, %390 : vector<1x128xf32>
    %393 = arith.mulf %391, %391 : vector<1x128xf32>
    %394 = arith.addf %392, %393 : vector<1x128xf32>
    %cst_129 = arith.constant 9.99999993E-9 : f32
    %395 = vector.broadcast %cst_129 : f32 to vector<1x128xf32>
    %396 = arith.addf %394, %395 : vector<1x128xf32>
    %397 = math.rsqrt %396 : vector<1x128xf32>
    %398 = arith.mulf %2, %397 : vector<1x128xf32>
    %cst_130 = arith.constant 1.000000e+00 : f32
    %399 = vector.broadcast %cst_130 : f32 to vector<1x128xf32>
    %400 = arith.subf %399, %398 : vector<1x128xf32>
    %cst_131 = arith.constant 0.000000e+00 : f32
    %401 = vector.broadcast %cst_131 : f32 to vector<1x128xf32>
    %402 = arith.maximumf %400, %401 : vector<1x128xf32>
    %cst_132 = arith.constant 2.000000e+00 : f32
    %403 = vector.broadcast %cst_132 : f32 to vector<1x128xf32>
    %404 = arith.mulf %403, %402 : vector<1x128xf32>
    %cst_133 = arith.constant 1.000000e+00 : f32
    %405 = vector.broadcast %cst_133 : f32 to vector<1x128xf32>
    %406 = arith.subf %404, %405 : vector<1x128xf32>
    %407 = arith.mulf %390, %406 : vector<1x128xf32>
    %cst_134 = arith.constant 1.000000e+00 : f32
    %408 = vector.broadcast %cst_134 : f32 to vector<1x128xf32>
    %409 = arith.subf %408, %402 : vector<1x128xf32>
    %410 = arith.mulf %390, %409 : vector<1x128xf32>
    %c15_i32 = arith.constant 15 : i32
    %411 = arith.index_cast %c15_i32 : i32 to index
    %c0_135 = arith.constant 0 : index
    %412 = vector.load %arg3[%411, %c0_135] : memref<50x128xf32, #tpu.memory_space<vmem>>, vector<1x128xf32>
    %413 = arith.addf %412, %410 : vector<1x128xf32>
    %c64_i32_136 = arith.constant 64 : i32
    %414 = tpu.dynamic_rotate %407 by %c64_i32_136 dim 1 : vector<1x128xf32>, i32 -> vector<1x128xf32>
    %415 = arith.addf %407, %414 : vector<1x128xf32>
    %416 = arith.mulf %415, %3 : vector<1x128xf32>
    %417 = arith.addf %413, %416 : vector<1x128xf32>
    %c64_i32_137 = arith.constant 64 : i32
    %418 = tpu.dynamic_rotate %417 by %c64_i32_137 dim 1 : vector<1x128xf32>, i32 -> vector<1x128xf32>
    %419 = arith.mulf %417, %417 : vector<1x128xf32>
    %420 = arith.mulf %418, %418 : vector<1x128xf32>
    %421 = arith.addf %419, %420 : vector<1x128xf32>
    %cst_138 = arith.constant 9.99999993E-9 : f32
    %422 = vector.broadcast %cst_138 : f32 to vector<1x128xf32>
    %423 = arith.addf %421, %422 : vector<1x128xf32>
    %424 = math.rsqrt %423 : vector<1x128xf32>
    %425 = arith.mulf %2, %424 : vector<1x128xf32>
    %cst_139 = arith.constant 1.000000e+00 : f32
    %426 = vector.broadcast %cst_139 : f32 to vector<1x128xf32>
    %427 = arith.subf %426, %425 : vector<1x128xf32>
    %cst_140 = arith.constant 0.000000e+00 : f32
    %428 = vector.broadcast %cst_140 : f32 to vector<1x128xf32>
    %429 = arith.maximumf %427, %428 : vector<1x128xf32>
    %cst_141 = arith.constant 2.000000e+00 : f32
    %430 = vector.broadcast %cst_141 : f32 to vector<1x128xf32>
    %431 = arith.mulf %430, %429 : vector<1x128xf32>
    %cst_142 = arith.constant 1.000000e+00 : f32
    %432 = vector.broadcast %cst_142 : f32 to vector<1x128xf32>
    %433 = arith.subf %431, %432 : vector<1x128xf32>
    %434 = arith.mulf %417, %433 : vector<1x128xf32>
    %cst_143 = arith.constant 1.000000e+00 : f32
    %435 = vector.broadcast %cst_143 : f32 to vector<1x128xf32>
    %436 = arith.subf %435, %429 : vector<1x128xf32>
    %437 = arith.mulf %417, %436 : vector<1x128xf32>
    %c16_i32 = arith.constant 16 : i32
    %438 = arith.index_cast %c16_i32 : i32 to index
    %c0_144 = arith.constant 0 : index
    %439 = vector.load %arg3[%438, %c0_144] : memref<50x128xf32, #tpu.memory_space<vmem>>, vector<1x128xf32>
    %440 = arith.addf %439, %437 : vector<1x128xf32>
    %c64_i32_145 = arith.constant 64 : i32
    %441 = tpu.dynamic_rotate %434 by %c64_i32_145 dim 1 : vector<1x128xf32>, i32 -> vector<1x128xf32>
    %442 = arith.addf %434, %441 : vector<1x128xf32>
    %443 = arith.mulf %442, %3 : vector<1x128xf32>
    %444 = arith.addf %440, %443 : vector<1x128xf32>
    %c64_i32_146 = arith.constant 64 : i32
    %445 = tpu.dynamic_rotate %444 by %c64_i32_146 dim 1 : vector<1x128xf32>, i32 -> vector<1x128xf32>
    %446 = arith.mulf %444, %444 : vector<1x128xf32>
    %447 = arith.mulf %445, %445 : vector<1x128xf32>
    %448 = arith.addf %446, %447 : vector<1x128xf32>
    %cst_147 = arith.constant 9.99999993E-9 : f32
    %449 = vector.broadcast %cst_147 : f32 to vector<1x128xf32>
    %450 = arith.addf %448, %449 : vector<1x128xf32>
    %451 = math.rsqrt %450 : vector<1x128xf32>
    %452 = arith.mulf %2, %451 : vector<1x128xf32>
    %cst_148 = arith.constant 1.000000e+00 : f32
    %453 = vector.broadcast %cst_148 : f32 to vector<1x128xf32>
    %454 = arith.subf %453, %452 : vector<1x128xf32>
    %cst_149 = arith.constant 0.000000e+00 : f32
    %455 = vector.broadcast %cst_149 : f32 to vector<1x128xf32>
    %456 = arith.maximumf %454, %455 : vector<1x128xf32>
    %cst_150 = arith.constant 2.000000e+00 : f32
    %457 = vector.broadcast %cst_150 : f32 to vector<1x128xf32>
    %458 = arith.mulf %457, %456 : vector<1x128xf32>
    %cst_151 = arith.constant 1.000000e+00 : f32
    %459 = vector.broadcast %cst_151 : f32 to vector<1x128xf32>
    %460 = arith.subf %458, %459 : vector<1x128xf32>
    %461 = arith.mulf %444, %460 : vector<1x128xf32>
    %cst_152 = arith.constant 1.000000e+00 : f32
    %462 = vector.broadcast %cst_152 : f32 to vector<1x128xf32>
    %463 = arith.subf %462, %456 : vector<1x128xf32>
    %464 = arith.mulf %444, %463 : vector<1x128xf32>
    %c17_i32 = arith.constant 17 : i32
    %465 = arith.index_cast %c17_i32 : i32 to index
    %c0_153 = arith.constant 0 : index
    %466 = vector.load %arg3[%465, %c0_153] : memref<50x128xf32, #tpu.memory_space<vmem>>, vector<1x128xf32>
    %467 = arith.addf %466, %464 : vector<1x128xf32>
    %c64_i32_154 = arith.constant 64 : i32
    %468 = tpu.dynamic_rotate %461 by %c64_i32_154 dim 1 : vector<1x128xf32>, i32 -> vector<1x128xf32>
    %469 = arith.addf %461, %468 : vector<1x128xf32>
    %470 = arith.mulf %469, %3 : vector<1x128xf32>
    %471 = arith.addf %467, %470 : vector<1x128xf32>
    %c64_i32_155 = arith.constant 64 : i32
    %472 = tpu.dynamic_rotate %471 by %c64_i32_155 dim 1 : vector<1x128xf32>, i32 -> vector<1x128xf32>
    %473 = arith.mulf %471, %471 : vector<1x128xf32>
    %474 = arith.mulf %472, %472 : vector<1x128xf32>
    %475 = arith.addf %473, %474 : vector<1x128xf32>
    %cst_156 = arith.constant 9.99999993E-9 : f32
    %476 = vector.broadcast %cst_156 : f32 to vector<1x128xf32>
    %477 = arith.addf %475, %476 : vector<1x128xf32>
    %478 = math.rsqrt %477 : vector<1x128xf32>
    %479 = arith.mulf %2, %478 : vector<1x128xf32>
    %cst_157 = arith.constant 1.000000e+00 : f32
    %480 = vector.broadcast %cst_157 : f32 to vector<1x128xf32>
    %481 = arith.subf %480, %479 : vector<1x128xf32>
    %cst_158 = arith.constant 0.000000e+00 : f32
    %482 = vector.broadcast %cst_158 : f32 to vector<1x128xf32>
    %483 = arith.maximumf %481, %482 : vector<1x128xf32>
    %cst_159 = arith.constant 2.000000e+00 : f32
    %484 = vector.broadcast %cst_159 : f32 to vector<1x128xf32>
    %485 = arith.mulf %484, %483 : vector<1x128xf32>
    %cst_160 = arith.constant 1.000000e+00 : f32
    %486 = vector.broadcast %cst_160 : f32 to vector<1x128xf32>
    %487 = arith.subf %485, %486 : vector<1x128xf32>
    %488 = arith.mulf %471, %487 : vector<1x128xf32>
    %cst_161 = arith.constant 1.000000e+00 : f32
    %489 = vector.broadcast %cst_161 : f32 to vector<1x128xf32>
    %490 = arith.subf %489, %483 : vector<1x128xf32>
    %491 = arith.mulf %471, %490 : vector<1x128xf32>
    %c18_i32 = arith.constant 18 : i32
    %492 = arith.index_cast %c18_i32 : i32 to index
    %c0_162 = arith.constant 0 : index
    %493 = vector.load %arg3[%492, %c0_162] : memref<50x128xf32, #tpu.memory_space<vmem>>, vector<1x128xf32>
    %494 = arith.addf %493, %491 : vector<1x128xf32>
    %c64_i32_163 = arith.constant 64 : i32
    %495 = tpu.dynamic_rotate %488 by %c64_i32_163 dim 1 : vector<1x128xf32>, i32 -> vector<1x128xf32>
    %496 = arith.addf %488, %495 : vector<1x128xf32>
    %497 = arith.mulf %496, %3 : vector<1x128xf32>
    %498 = arith.addf %494, %497 : vector<1x128xf32>
    %c64_i32_164 = arith.constant 64 : i32
    %499 = tpu.dynamic_rotate %498 by %c64_i32_164 dim 1 : vector<1x128xf32>, i32 -> vector<1x128xf32>
    %500 = arith.mulf %498, %498 : vector<1x128xf32>
    %501 = arith.mulf %499, %499 : vector<1x128xf32>
    %502 = arith.addf %500, %501 : vector<1x128xf32>
    %cst_165 = arith.constant 9.99999993E-9 : f32
    %503 = vector.broadcast %cst_165 : f32 to vector<1x128xf32>
    %504 = arith.addf %502, %503 : vector<1x128xf32>
    %505 = math.rsqrt %504 : vector<1x128xf32>
    %506 = arith.mulf %2, %505 : vector<1x128xf32>
    %cst_166 = arith.constant 1.000000e+00 : f32
    %507 = vector.broadcast %cst_166 : f32 to vector<1x128xf32>
    %508 = arith.subf %507, %506 : vector<1x128xf32>
    %cst_167 = arith.constant 0.000000e+00 : f32
    %509 = vector.broadcast %cst_167 : f32 to vector<1x128xf32>
    %510 = arith.maximumf %508, %509 : vector<1x128xf32>
    %cst_168 = arith.constant 2.000000e+00 : f32
    %511 = vector.broadcast %cst_168 : f32 to vector<1x128xf32>
    %512 = arith.mulf %511, %510 : vector<1x128xf32>
    %cst_169 = arith.constant 1.000000e+00 : f32
    %513 = vector.broadcast %cst_169 : f32 to vector<1x128xf32>
    %514 = arith.subf %512, %513 : vector<1x128xf32>
    %515 = arith.mulf %498, %514 : vector<1x128xf32>
    %cst_170 = arith.constant 1.000000e+00 : f32
    %516 = vector.broadcast %cst_170 : f32 to vector<1x128xf32>
    %517 = arith.subf %516, %510 : vector<1x128xf32>
    %518 = arith.mulf %498, %517 : vector<1x128xf32>
    %c19_i32 = arith.constant 19 : i32
    %519 = arith.index_cast %c19_i32 : i32 to index
    %c0_171 = arith.constant 0 : index
    %520 = vector.load %arg3[%519, %c0_171] : memref<50x128xf32, #tpu.memory_space<vmem>>, vector<1x128xf32>
    %521 = arith.addf %520, %518 : vector<1x128xf32>
    %c64_i32_172 = arith.constant 64 : i32
    %522 = tpu.dynamic_rotate %515 by %c64_i32_172 dim 1 : vector<1x128xf32>, i32 -> vector<1x128xf32>
    %523 = arith.addf %515, %522 : vector<1x128xf32>
    %524 = arith.mulf %523, %3 : vector<1x128xf32>
    %525 = arith.addf %521, %524 : vector<1x128xf32>
    %c64_i32_173 = arith.constant 64 : i32
    %526 = tpu.dynamic_rotate %525 by %c64_i32_173 dim 1 : vector<1x128xf32>, i32 -> vector<1x128xf32>
    %527 = arith.mulf %525, %525 : vector<1x128xf32>
    %528 = arith.mulf %526, %526 : vector<1x128xf32>
    %529 = arith.addf %527, %528 : vector<1x128xf32>
    %cst_174 = arith.constant 9.99999993E-9 : f32
    %530 = vector.broadcast %cst_174 : f32 to vector<1x128xf32>
    %531 = arith.addf %529, %530 : vector<1x128xf32>
    %532 = math.rsqrt %531 : vector<1x128xf32>
    %533 = arith.mulf %2, %532 : vector<1x128xf32>
    %cst_175 = arith.constant 1.000000e+00 : f32
    %534 = vector.broadcast %cst_175 : f32 to vector<1x128xf32>
    %535 = arith.subf %534, %533 : vector<1x128xf32>
    %cst_176 = arith.constant 0.000000e+00 : f32
    %536 = vector.broadcast %cst_176 : f32 to vector<1x128xf32>
    %537 = arith.maximumf %535, %536 : vector<1x128xf32>
    %cst_177 = arith.constant 2.000000e+00 : f32
    %538 = vector.broadcast %cst_177 : f32 to vector<1x128xf32>
    %539 = arith.mulf %538, %537 : vector<1x128xf32>
    %cst_178 = arith.constant 1.000000e+00 : f32
    %540 = vector.broadcast %cst_178 : f32 to vector<1x128xf32>
    %541 = arith.subf %539, %540 : vector<1x128xf32>
    %542 = arith.mulf %525, %541 : vector<1x128xf32>
    %cst_179 = arith.constant 1.000000e+00 : f32
    %543 = vector.broadcast %cst_179 : f32 to vector<1x128xf32>
    %544 = arith.subf %543, %537 : vector<1x128xf32>
    %545 = arith.mulf %525, %544 : vector<1x128xf32>
    %c20_i32 = arith.constant 20 : i32
    %546 = arith.index_cast %c20_i32 : i32 to index
    %c0_180 = arith.constant 0 : index
    %547 = vector.load %arg3[%546, %c0_180] : memref<50x128xf32, #tpu.memory_space<vmem>>, vector<1x128xf32>
    %548 = arith.addf %547, %545 : vector<1x128xf32>
    %c64_i32_181 = arith.constant 64 : i32
    %549 = tpu.dynamic_rotate %542 by %c64_i32_181 dim 1 : vector<1x128xf32>, i32 -> vector<1x128xf32>
    %550 = arith.addf %542, %549 : vector<1x128xf32>
    %551 = arith.mulf %550, %3 : vector<1x128xf32>
    %552 = arith.addf %548, %551 : vector<1x128xf32>
    %c64_i32_182 = arith.constant 64 : i32
    %553 = tpu.dynamic_rotate %552 by %c64_i32_182 dim 1 : vector<1x128xf32>, i32 -> vector<1x128xf32>
    %554 = arith.mulf %552, %552 : vector<1x128xf32>
    %555 = arith.mulf %553, %553 : vector<1x128xf32>
    %556 = arith.addf %554, %555 : vector<1x128xf32>
    %cst_183 = arith.constant 9.99999993E-9 : f32
    %557 = vector.broadcast %cst_183 : f32 to vector<1x128xf32>
    %558 = arith.addf %556, %557 : vector<1x128xf32>
    %559 = math.rsqrt %558 : vector<1x128xf32>
    %560 = arith.mulf %2, %559 : vector<1x128xf32>
    %cst_184 = arith.constant 1.000000e+00 : f32
    %561 = vector.broadcast %cst_184 : f32 to vector<1x128xf32>
    %562 = arith.subf %561, %560 : vector<1x128xf32>
    %cst_185 = arith.constant 0.000000e+00 : f32
    %563 = vector.broadcast %cst_185 : f32 to vector<1x128xf32>
    %564 = arith.maximumf %562, %563 : vector<1x128xf32>
    %cst_186 = arith.constant 2.000000e+00 : f32
    %565 = vector.broadcast %cst_186 : f32 to vector<1x128xf32>
    %566 = arith.mulf %565, %564 : vector<1x128xf32>
    %cst_187 = arith.constant 1.000000e+00 : f32
    %567 = vector.broadcast %cst_187 : f32 to vector<1x128xf32>
    %568 = arith.subf %566, %567 : vector<1x128xf32>
    %569 = arith.mulf %552, %568 : vector<1x128xf32>
    %cst_188 = arith.constant 1.000000e+00 : f32
    %570 = vector.broadcast %cst_188 : f32 to vector<1x128xf32>
    %571 = arith.subf %570, %564 : vector<1x128xf32>
    %572 = arith.mulf %552, %571 : vector<1x128xf32>
    %c21_i32 = arith.constant 21 : i32
    %573 = arith.index_cast %c21_i32 : i32 to index
    %c0_189 = arith.constant 0 : index
    %574 = vector.load %arg3[%573, %c0_189] : memref<50x128xf32, #tpu.memory_space<vmem>>, vector<1x128xf32>
    %575 = arith.addf %574, %572 : vector<1x128xf32>
    %c64_i32_190 = arith.constant 64 : i32
    %576 = tpu.dynamic_rotate %569 by %c64_i32_190 dim 1 : vector<1x128xf32>, i32 -> vector<1x128xf32>
    %577 = arith.addf %569, %576 : vector<1x128xf32>
    %578 = arith.mulf %577, %3 : vector<1x128xf32>
    %579 = arith.addf %575, %578 : vector<1x128xf32>
    %c64_i32_191 = arith.constant 64 : i32
    %580 = tpu.dynamic_rotate %579 by %c64_i32_191 dim 1 : vector<1x128xf32>, i32 -> vector<1x128xf32>
    %581 = arith.mulf %579, %579 : vector<1x128xf32>
    %582 = arith.mulf %580, %580 : vector<1x128xf32>
    %583 = arith.addf %581, %582 : vector<1x128xf32>
    %cst_192 = arith.constant 9.99999993E-9 : f32
    %584 = vector.broadcast %cst_192 : f32 to vector<1x128xf32>
    %585 = arith.addf %583, %584 : vector<1x128xf32>
    %586 = math.rsqrt %585 : vector<1x128xf32>
    %587 = arith.mulf %2, %586 : vector<1x128xf32>
    %cst_193 = arith.constant 1.000000e+00 : f32
    %588 = vector.broadcast %cst_193 : f32 to vector<1x128xf32>
    %589 = arith.subf %588, %587 : vector<1x128xf32>
    %cst_194 = arith.constant 0.000000e+00 : f32
    %590 = vector.broadcast %cst_194 : f32 to vector<1x128xf32>
    %591 = arith.maximumf %589, %590 : vector<1x128xf32>
    %cst_195 = arith.constant 2.000000e+00 : f32
    %592 = vector.broadcast %cst_195 : f32 to vector<1x128xf32>
    %593 = arith.mulf %592, %591 : vector<1x128xf32>
    %cst_196 = arith.constant 1.000000e+00 : f32
    %594 = vector.broadcast %cst_196 : f32 to vector<1x128xf32>
    %595 = arith.subf %593, %594 : vector<1x128xf32>
    %596 = arith.mulf %579, %595 : vector<1x128xf32>
    %cst_197 = arith.constant 1.000000e+00 : f32
    %597 = vector.broadcast %cst_197 : f32 to vector<1x128xf32>
    %598 = arith.subf %597, %591 : vector<1x128xf32>
    %599 = arith.mulf %579, %598 : vector<1x128xf32>
    %c22_i32 = arith.constant 22 : i32
    %600 = arith.index_cast %c22_i32 : i32 to index
    %c0_198 = arith.constant 0 : index
    %601 = vector.load %arg3[%600, %c0_198] : memref<50x128xf32, #tpu.memory_space<vmem>>, vector<1x128xf32>
    %602 = arith.addf %601, %599 : vector<1x128xf32>
    %c64_i32_199 = arith.constant 64 : i32
    %603 = tpu.dynamic_rotate %596 by %c64_i32_199 dim 1 : vector<1x128xf32>, i32 -> vector<1x128xf32>
    %604 = arith.addf %596, %603 : vector<1x128xf32>
    %605 = arith.mulf %604, %3 : vector<1x128xf32>
    %606 = arith.addf %602, %605 : vector<1x128xf32>
    %c64_i32_200 = arith.constant 64 : i32
    %607 = tpu.dynamic_rotate %606 by %c64_i32_200 dim 1 : vector<1x128xf32>, i32 -> vector<1x128xf32>
    %608 = arith.mulf %606, %606 : vector<1x128xf32>
    %609 = arith.mulf %607, %607 : vector<1x128xf32>
    %610 = arith.addf %608, %609 : vector<1x128xf32>
    %cst_201 = arith.constant 9.99999993E-9 : f32
    %611 = vector.broadcast %cst_201 : f32 to vector<1x128xf32>
    %612 = arith.addf %610, %611 : vector<1x128xf32>
    %613 = math.rsqrt %612 : vector<1x128xf32>
    %614 = arith.mulf %2, %613 : vector<1x128xf32>
    %cst_202 = arith.constant 1.000000e+00 : f32
    %615 = vector.broadcast %cst_202 : f32 to vector<1x128xf32>
    %616 = arith.subf %615, %614 : vector<1x128xf32>
    %cst_203 = arith.constant 0.000000e+00 : f32
    %617 = vector.broadcast %cst_203 : f32 to vector<1x128xf32>
    %618 = arith.maximumf %616, %617 : vector<1x128xf32>
    %cst_204 = arith.constant 2.000000e+00 : f32
    %619 = vector.broadcast %cst_204 : f32 to vector<1x128xf32>
    %620 = arith.mulf %619, %618 : vector<1x128xf32>
    %cst_205 = arith.constant 1.000000e+00 : f32
    %621 = vector.broadcast %cst_205 : f32 to vector<1x128xf32>
    %622 = arith.subf %620, %621 : vector<1x128xf32>
    %623 = arith.mulf %606, %622 : vector<1x128xf32>
    %cst_206 = arith.constant 1.000000e+00 : f32
    %624 = vector.broadcast %cst_206 : f32 to vector<1x128xf32>
    %625 = arith.subf %624, %618 : vector<1x128xf32>
    %626 = arith.mulf %606, %625 : vector<1x128xf32>
    %c23_i32 = arith.constant 23 : i32
    %627 = arith.index_cast %c23_i32 : i32 to index
    %c0_207 = arith.constant 0 : index
    %628 = vector.load %arg3[%627, %c0_207] : memref<50x128xf32, #tpu.memory_space<vmem>>, vector<1x128xf32>
    %629 = arith.addf %628, %626 : vector<1x128xf32>
    %c64_i32_208 = arith.constant 64 : i32
    %630 = tpu.dynamic_rotate %623 by %c64_i32_208 dim 1 : vector<1x128xf32>, i32 -> vector<1x128xf32>
    %631 = arith.addf %623, %630 : vector<1x128xf32>
    %632 = arith.mulf %631, %3 : vector<1x128xf32>
    %633 = arith.addf %629, %632 : vector<1x128xf32>
    %c64_i32_209 = arith.constant 64 : i32
    %634 = tpu.dynamic_rotate %633 by %c64_i32_209 dim 1 : vector<1x128xf32>, i32 -> vector<1x128xf32>
    %635 = arith.mulf %633, %633 : vector<1x128xf32>
    %636 = arith.mulf %634, %634 : vector<1x128xf32>
    %637 = arith.addf %635, %636 : vector<1x128xf32>
    %cst_210 = arith.constant 9.99999993E-9 : f32
    %638 = vector.broadcast %cst_210 : f32 to vector<1x128xf32>
    %639 = arith.addf %637, %638 : vector<1x128xf32>
    %640 = math.rsqrt %639 : vector<1x128xf32>
    %641 = arith.mulf %2, %640 : vector<1x128xf32>
    %cst_211 = arith.constant 1.000000e+00 : f32
    %642 = vector.broadcast %cst_211 : f32 to vector<1x128xf32>
    %643 = arith.subf %642, %641 : vector<1x128xf32>
    %cst_212 = arith.constant 0.000000e+00 : f32
    %644 = vector.broadcast %cst_212 : f32 to vector<1x128xf32>
    %645 = arith.maximumf %643, %644 : vector<1x128xf32>
    %cst_213 = arith.constant 2.000000e+00 : f32
    %646 = vector.broadcast %cst_213 : f32 to vector<1x128xf32>
    %647 = arith.mulf %646, %645 : vector<1x128xf32>
    %cst_214 = arith.constant 1.000000e+00 : f32
    %648 = vector.broadcast %cst_214 : f32 to vector<1x128xf32>
    %649 = arith.subf %647, %648 : vector<1x128xf32>
    %650 = arith.mulf %633, %649 : vector<1x128xf32>
    %cst_215 = arith.constant 1.000000e+00 : f32
    %651 = vector.broadcast %cst_215 : f32 to vector<1x128xf32>
    %652 = arith.subf %651, %645 : vector<1x128xf32>
    %653 = arith.mulf %633, %652 : vector<1x128xf32>
    %c24_i32 = arith.constant 24 : i32
    %654 = arith.index_cast %c24_i32 : i32 to index
    %c0_216 = arith.constant 0 : index
    %655 = vector.load %arg3[%654, %c0_216] : memref<50x128xf32, #tpu.memory_space<vmem>>, vector<1x128xf32>
    %656 = arith.addf %655, %653 : vector<1x128xf32>
    %c64_i32_217 = arith.constant 64 : i32
    %657 = tpu.dynamic_rotate %650 by %c64_i32_217 dim 1 : vector<1x128xf32>, i32 -> vector<1x128xf32>
    %658 = arith.addf %650, %657 : vector<1x128xf32>
    %659 = arith.mulf %658, %3 : vector<1x128xf32>
    %660 = arith.addf %656, %659 : vector<1x128xf32>
    %c64_i32_218 = arith.constant 64 : i32
    %661 = tpu.dynamic_rotate %660 by %c64_i32_218 dim 1 : vector<1x128xf32>, i32 -> vector<1x128xf32>
    %662 = arith.mulf %660, %660 : vector<1x128xf32>
    %663 = arith.mulf %661, %661 : vector<1x128xf32>
    %664 = arith.addf %662, %663 : vector<1x128xf32>
    %cst_219 = arith.constant 9.99999993E-9 : f32
    %665 = vector.broadcast %cst_219 : f32 to vector<1x128xf32>
    %666 = arith.addf %664, %665 : vector<1x128xf32>
    %667 = math.rsqrt %666 : vector<1x128xf32>
    %668 = arith.mulf %2, %667 : vector<1x128xf32>
    %cst_220 = arith.constant 1.000000e+00 : f32
    %669 = vector.broadcast %cst_220 : f32 to vector<1x128xf32>
    %670 = arith.subf %669, %668 : vector<1x128xf32>
    %cst_221 = arith.constant 0.000000e+00 : f32
    %671 = vector.broadcast %cst_221 : f32 to vector<1x128xf32>
    %672 = arith.maximumf %670, %671 : vector<1x128xf32>
    %cst_222 = arith.constant 2.000000e+00 : f32
    %673 = vector.broadcast %cst_222 : f32 to vector<1x128xf32>
    %674 = arith.mulf %673, %672 : vector<1x128xf32>
    %cst_223 = arith.constant 1.000000e+00 : f32
    %675 = vector.broadcast %cst_223 : f32 to vector<1x128xf32>
    %676 = arith.subf %674, %675 : vector<1x128xf32>
    %677 = arith.mulf %660, %676 : vector<1x128xf32>
    %cst_224 = arith.constant 1.000000e+00 : f32
    %678 = vector.broadcast %cst_224 : f32 to vector<1x128xf32>
    %679 = arith.subf %678, %672 : vector<1x128xf32>
    %680 = arith.mulf %660, %679 : vector<1x128xf32>
    %c25_i32 = arith.constant 25 : i32
    %681 = arith.index_cast %c25_i32 : i32 to index
    %c0_225 = arith.constant 0 : index
    %682 = vector.load %arg3[%681, %c0_225] : memref<50x128xf32, #tpu.memory_space<vmem>>, vector<1x128xf32>
    %683 = arith.addf %682, %680 : vector<1x128xf32>
    %c64_i32_226 = arith.constant 64 : i32
    %684 = tpu.dynamic_rotate %677 by %c64_i32_226 dim 1 : vector<1x128xf32>, i32 -> vector<1x128xf32>
    %685 = arith.addf %677, %684 : vector<1x128xf32>
    %686 = arith.mulf %685, %3 : vector<1x128xf32>
    %687 = arith.addf %683, %686 : vector<1x128xf32>
    %c64_i32_227 = arith.constant 64 : i32
    %688 = tpu.dynamic_rotate %687 by %c64_i32_227 dim 1 : vector<1x128xf32>, i32 -> vector<1x128xf32>
    %689 = arith.mulf %687, %687 : vector<1x128xf32>
    %690 = arith.mulf %688, %688 : vector<1x128xf32>
    %691 = arith.addf %689, %690 : vector<1x128xf32>
    %cst_228 = arith.constant 9.99999993E-9 : f32
    %692 = vector.broadcast %cst_228 : f32 to vector<1x128xf32>
    %693 = arith.addf %691, %692 : vector<1x128xf32>
    %694 = math.rsqrt %693 : vector<1x128xf32>
    %695 = arith.mulf %2, %694 : vector<1x128xf32>
    %cst_229 = arith.constant 1.000000e+00 : f32
    %696 = vector.broadcast %cst_229 : f32 to vector<1x128xf32>
    %697 = arith.subf %696, %695 : vector<1x128xf32>
    %cst_230 = arith.constant 0.000000e+00 : f32
    %698 = vector.broadcast %cst_230 : f32 to vector<1x128xf32>
    %699 = arith.maximumf %697, %698 : vector<1x128xf32>
    %cst_231 = arith.constant 2.000000e+00 : f32
    %700 = vector.broadcast %cst_231 : f32 to vector<1x128xf32>
    %701 = arith.mulf %700, %699 : vector<1x128xf32>
    %cst_232 = arith.constant 1.000000e+00 : f32
    %702 = vector.broadcast %cst_232 : f32 to vector<1x128xf32>
    %703 = arith.subf %701, %702 : vector<1x128xf32>
    %704 = arith.mulf %687, %703 : vector<1x128xf32>
    %cst_233 = arith.constant 1.000000e+00 : f32
    %705 = vector.broadcast %cst_233 : f32 to vector<1x128xf32>
    %706 = arith.subf %705, %699 : vector<1x128xf32>
    %707 = arith.mulf %687, %706 : vector<1x128xf32>
    %c26_i32 = arith.constant 26 : i32
    %708 = arith.index_cast %c26_i32 : i32 to index
    %c0_234 = arith.constant 0 : index
    %709 = vector.load %arg3[%708, %c0_234] : memref<50x128xf32, #tpu.memory_space<vmem>>, vector<1x128xf32>
    %710 = arith.addf %709, %707 : vector<1x128xf32>
    %c64_i32_235 = arith.constant 64 : i32
    %711 = tpu.dynamic_rotate %704 by %c64_i32_235 dim 1 : vector<1x128xf32>, i32 -> vector<1x128xf32>
    %712 = arith.addf %704, %711 : vector<1x128xf32>
    %713 = arith.mulf %712, %3 : vector<1x128xf32>
    %714 = arith.addf %710, %713 : vector<1x128xf32>
    %c64_i32_236 = arith.constant 64 : i32
    %715 = tpu.dynamic_rotate %714 by %c64_i32_236 dim 1 : vector<1x128xf32>, i32 -> vector<1x128xf32>
    %716 = arith.mulf %714, %714 : vector<1x128xf32>
    %717 = arith.mulf %715, %715 : vector<1x128xf32>
    %718 = arith.addf %716, %717 : vector<1x128xf32>
    %cst_237 = arith.constant 9.99999993E-9 : f32
    %719 = vector.broadcast %cst_237 : f32 to vector<1x128xf32>
    %720 = arith.addf %718, %719 : vector<1x128xf32>
    %721 = math.rsqrt %720 : vector<1x128xf32>
    %722 = arith.mulf %2, %721 : vector<1x128xf32>
    %cst_238 = arith.constant 1.000000e+00 : f32
    %723 = vector.broadcast %cst_238 : f32 to vector<1x128xf32>
    %724 = arith.subf %723, %722 : vector<1x128xf32>
    %cst_239 = arith.constant 0.000000e+00 : f32
    %725 = vector.broadcast %cst_239 : f32 to vector<1x128xf32>
    %726 = arith.maximumf %724, %725 : vector<1x128xf32>
    %cst_240 = arith.constant 2.000000e+00 : f32
    %727 = vector.broadcast %cst_240 : f32 to vector<1x128xf32>
    %728 = arith.mulf %727, %726 : vector<1x128xf32>
    %cst_241 = arith.constant 1.000000e+00 : f32
    %729 = vector.broadcast %cst_241 : f32 to vector<1x128xf32>
    %730 = arith.subf %728, %729 : vector<1x128xf32>
    %731 = arith.mulf %714, %730 : vector<1x128xf32>
    %cst_242 = arith.constant 1.000000e+00 : f32
    %732 = vector.broadcast %cst_242 : f32 to vector<1x128xf32>
    %733 = arith.subf %732, %726 : vector<1x128xf32>
    %734 = arith.mulf %714, %733 : vector<1x128xf32>
    %c27_i32 = arith.constant 27 : i32
    %735 = arith.index_cast %c27_i32 : i32 to index
    %c0_243 = arith.constant 0 : index
    %736 = vector.load %arg3[%735, %c0_243] : memref<50x128xf32, #tpu.memory_space<vmem>>, vector<1x128xf32>
    %737 = arith.addf %736, %734 : vector<1x128xf32>
    %c64_i32_244 = arith.constant 64 : i32
    %738 = tpu.dynamic_rotate %731 by %c64_i32_244 dim 1 : vector<1x128xf32>, i32 -> vector<1x128xf32>
    %739 = arith.addf %731, %738 : vector<1x128xf32>
    %740 = arith.mulf %739, %3 : vector<1x128xf32>
    %741 = arith.addf %737, %740 : vector<1x128xf32>
    %c64_i32_245 = arith.constant 64 : i32
    %742 = tpu.dynamic_rotate %741 by %c64_i32_245 dim 1 : vector<1x128xf32>, i32 -> vector<1x128xf32>
    %743 = arith.mulf %741, %741 : vector<1x128xf32>
    %744 = arith.mulf %742, %742 : vector<1x128xf32>
    %745 = arith.addf %743, %744 : vector<1x128xf32>
    %cst_246 = arith.constant 9.99999993E-9 : f32
    %746 = vector.broadcast %cst_246 : f32 to vector<1x128xf32>
    %747 = arith.addf %745, %746 : vector<1x128xf32>
    %748 = math.rsqrt %747 : vector<1x128xf32>
    %749 = arith.mulf %2, %748 : vector<1x128xf32>
    %cst_247 = arith.constant 1.000000e+00 : f32
    %750 = vector.broadcast %cst_247 : f32 to vector<1x128xf32>
    %751 = arith.subf %750, %749 : vector<1x128xf32>
    %cst_248 = arith.constant 0.000000e+00 : f32
    %752 = vector.broadcast %cst_248 : f32 to vector<1x128xf32>
    %753 = arith.maximumf %751, %752 : vector<1x128xf32>
    %cst_249 = arith.constant 2.000000e+00 : f32
    %754 = vector.broadcast %cst_249 : f32 to vector<1x128xf32>
    %755 = arith.mulf %754, %753 : vector<1x128xf32>
    %cst_250 = arith.constant 1.000000e+00 : f32
    %756 = vector.broadcast %cst_250 : f32 to vector<1x128xf32>
    %757 = arith.subf %755, %756 : vector<1x128xf32>
    %758 = arith.mulf %741, %757 : vector<1x128xf32>
    %cst_251 = arith.constant 1.000000e+00 : f32
    %759 = vector.broadcast %cst_251 : f32 to vector<1x128xf32>
    %760 = arith.subf %759, %753 : vector<1x128xf32>
    %761 = arith.mulf %741, %760 : vector<1x128xf32>
    %c28_i32 = arith.constant 28 : i32
    %762 = arith.index_cast %c28_i32 : i32 to index
    %c0_252 = arith.constant 0 : index
    %763 = vector.load %arg3[%762, %c0_252] : memref<50x128xf32, #tpu.memory_space<vmem>>, vector<1x128xf32>
    %764 = arith.addf %763, %761 : vector<1x128xf32>
    %c64_i32_253 = arith.constant 64 : i32
    %765 = tpu.dynamic_rotate %758 by %c64_i32_253 dim 1 : vector<1x128xf32>, i32 -> vector<1x128xf32>
    %766 = arith.addf %758, %765 : vector<1x128xf32>
    %767 = arith.mulf %766, %3 : vector<1x128xf32>
    %768 = arith.addf %764, %767 : vector<1x128xf32>
    %c64_i32_254 = arith.constant 64 : i32
    %769 = tpu.dynamic_rotate %768 by %c64_i32_254 dim 1 : vector<1x128xf32>, i32 -> vector<1x128xf32>
    %770 = arith.mulf %768, %768 : vector<1x128xf32>
    %771 = arith.mulf %769, %769 : vector<1x128xf32>
    %772 = arith.addf %770, %771 : vector<1x128xf32>
    %cst_255 = arith.constant 9.99999993E-9 : f32
    %773 = vector.broadcast %cst_255 : f32 to vector<1x128xf32>
    %774 = arith.addf %772, %773 : vector<1x128xf32>
    %775 = math.rsqrt %774 : vector<1x128xf32>
    %776 = arith.mulf %2, %775 : vector<1x128xf32>
    %cst_256 = arith.constant 1.000000e+00 : f32
    %777 = vector.broadcast %cst_256 : f32 to vector<1x128xf32>
    %778 = arith.subf %777, %776 : vector<1x128xf32>
    %cst_257 = arith.constant 0.000000e+00 : f32
    %779 = vector.broadcast %cst_257 : f32 to vector<1x128xf32>
    %780 = arith.maximumf %778, %779 : vector<1x128xf32>
    %cst_258 = arith.constant 2.000000e+00 : f32
    %781 = vector.broadcast %cst_258 : f32 to vector<1x128xf32>
    %782 = arith.mulf %781, %780 : vector<1x128xf32>
    %cst_259 = arith.constant 1.000000e+00 : f32
    %783 = vector.broadcast %cst_259 : f32 to vector<1x128xf32>
    %784 = arith.subf %782, %783 : vector<1x128xf32>
    %785 = arith.mulf %768, %784 : vector<1x128xf32>
    %cst_260 = arith.constant 1.000000e+00 : f32
    %786 = vector.broadcast %cst_260 : f32 to vector<1x128xf32>
    %787 = arith.subf %786, %780 : vector<1x128xf32>
    %788 = arith.mulf %768, %787 : vector<1x128xf32>
    %c29_i32 = arith.constant 29 : i32
    %789 = arith.index_cast %c29_i32 : i32 to index
    %c0_261 = arith.constant 0 : index
    %790 = vector.load %arg3[%789, %c0_261] : memref<50x128xf32, #tpu.memory_space<vmem>>, vector<1x128xf32>
    %791 = arith.addf %790, %788 : vector<1x128xf32>
    %c64_i32_262 = arith.constant 64 : i32
    %792 = tpu.dynamic_rotate %785 by %c64_i32_262 dim 1 : vector<1x128xf32>, i32 -> vector<1x128xf32>
    %793 = arith.addf %785, %792 : vector<1x128xf32>
    %794 = arith.mulf %793, %3 : vector<1x128xf32>
    %795 = arith.addf %791, %794 : vector<1x128xf32>
    %c64_i32_263 = arith.constant 64 : i32
    %796 = tpu.dynamic_rotate %795 by %c64_i32_263 dim 1 : vector<1x128xf32>, i32 -> vector<1x128xf32>
    %797 = arith.mulf %795, %795 : vector<1x128xf32>
    %798 = arith.mulf %796, %796 : vector<1x128xf32>
    %799 = arith.addf %797, %798 : vector<1x128xf32>
    %cst_264 = arith.constant 9.99999993E-9 : f32
    %800 = vector.broadcast %cst_264 : f32 to vector<1x128xf32>
    %801 = arith.addf %799, %800 : vector<1x128xf32>
    %802 = math.rsqrt %801 : vector<1x128xf32>
    %803 = arith.mulf %2, %802 : vector<1x128xf32>
    %cst_265 = arith.constant 1.000000e+00 : f32
    %804 = vector.broadcast %cst_265 : f32 to vector<1x128xf32>
    %805 = arith.subf %804, %803 : vector<1x128xf32>
    %cst_266 = arith.constant 0.000000e+00 : f32
    %806 = vector.broadcast %cst_266 : f32 to vector<1x128xf32>
    %807 = arith.maximumf %805, %806 : vector<1x128xf32>
    %cst_267 = arith.constant 2.000000e+00 : f32
    %808 = vector.broadcast %cst_267 : f32 to vector<1x128xf32>
    %809 = arith.mulf %808, %807 : vector<1x128xf32>
    %cst_268 = arith.constant 1.000000e+00 : f32
    %810 = vector.broadcast %cst_268 : f32 to vector<1x128xf32>
    %811 = arith.subf %809, %810 : vector<1x128xf32>
    %812 = arith.mulf %795, %811 : vector<1x128xf32>
    %cst_269 = arith.constant 1.000000e+00 : f32
    %813 = vector.broadcast %cst_269 : f32 to vector<1x128xf32>
    %814 = arith.subf %813, %807 : vector<1x128xf32>
    %815 = arith.mulf %795, %814 : vector<1x128xf32>
    %c30_i32 = arith.constant 30 : i32
    %816 = arith.index_cast %c30_i32 : i32 to index
    %c0_270 = arith.constant 0 : index
    %817 = vector.load %arg3[%816, %c0_270] : memref<50x128xf32, #tpu.memory_space<vmem>>, vector<1x128xf32>
    %818 = arith.addf %817, %815 : vector<1x128xf32>
    %c64_i32_271 = arith.constant 64 : i32
    %819 = tpu.dynamic_rotate %812 by %c64_i32_271 dim 1 : vector<1x128xf32>, i32 -> vector<1x128xf32>
    %820 = arith.addf %812, %819 : vector<1x128xf32>
    %821 = arith.mulf %820, %3 : vector<1x128xf32>
    %822 = arith.addf %818, %821 : vector<1x128xf32>
    %c64_i32_272 = arith.constant 64 : i32
    %823 = tpu.dynamic_rotate %822 by %c64_i32_272 dim 1 : vector<1x128xf32>, i32 -> vector<1x128xf32>
    %824 = arith.mulf %822, %822 : vector<1x128xf32>
    %825 = arith.mulf %823, %823 : vector<1x128xf32>
    %826 = arith.addf %824, %825 : vector<1x128xf32>
    %cst_273 = arith.constant 9.99999993E-9 : f32
    %827 = vector.broadcast %cst_273 : f32 to vector<1x128xf32>
    %828 = arith.addf %826, %827 : vector<1x128xf32>
    %829 = math.rsqrt %828 : vector<1x128xf32>
    %830 = arith.mulf %2, %829 : vector<1x128xf32>
    %cst_274 = arith.constant 1.000000e+00 : f32
    %831 = vector.broadcast %cst_274 : f32 to vector<1x128xf32>
    %832 = arith.subf %831, %830 : vector<1x128xf32>
    %cst_275 = arith.constant 0.000000e+00 : f32
    %833 = vector.broadcast %cst_275 : f32 to vector<1x128xf32>
    %834 = arith.maximumf %832, %833 : vector<1x128xf32>
    %cst_276 = arith.constant 2.000000e+00 : f32
    %835 = vector.broadcast %cst_276 : f32 to vector<1x128xf32>
    %836 = arith.mulf %835, %834 : vector<1x128xf32>
    %cst_277 = arith.constant 1.000000e+00 : f32
    %837 = vector.broadcast %cst_277 : f32 to vector<1x128xf32>
    %838 = arith.subf %836, %837 : vector<1x128xf32>
    %839 = arith.mulf %822, %838 : vector<1x128xf32>
    %cst_278 = arith.constant 1.000000e+00 : f32
    %840 = vector.broadcast %cst_278 : f32 to vector<1x128xf32>
    %841 = arith.subf %840, %834 : vector<1x128xf32>
    %842 = arith.mulf %822, %841 : vector<1x128xf32>
    %c31_i32 = arith.constant 31 : i32
    %843 = arith.index_cast %c31_i32 : i32 to index
    %c0_279 = arith.constant 0 : index
    %844 = vector.load %arg3[%843, %c0_279] : memref<50x128xf32, #tpu.memory_space<vmem>>, vector<1x128xf32>
    %845 = arith.addf %844, %842 : vector<1x128xf32>
    %c64_i32_280 = arith.constant 64 : i32
    %846 = tpu.dynamic_rotate %839 by %c64_i32_280 dim 1 : vector<1x128xf32>, i32 -> vector<1x128xf32>
    %847 = arith.addf %839, %846 : vector<1x128xf32>
    %848 = arith.mulf %847, %3 : vector<1x128xf32>
    %849 = arith.addf %845, %848 : vector<1x128xf32>
    %c64_i32_281 = arith.constant 64 : i32
    %850 = tpu.dynamic_rotate %849 by %c64_i32_281 dim 1 : vector<1x128xf32>, i32 -> vector<1x128xf32>
    %851 = arith.mulf %849, %849 : vector<1x128xf32>
    %852 = arith.mulf %850, %850 : vector<1x128xf32>
    %853 = arith.addf %851, %852 : vector<1x128xf32>
    %cst_282 = arith.constant 9.99999993E-9 : f32
    %854 = vector.broadcast %cst_282 : f32 to vector<1x128xf32>
    %855 = arith.addf %853, %854 : vector<1x128xf32>
    %856 = math.rsqrt %855 : vector<1x128xf32>
    %857 = arith.mulf %2, %856 : vector<1x128xf32>
    %cst_283 = arith.constant 1.000000e+00 : f32
    %858 = vector.broadcast %cst_283 : f32 to vector<1x128xf32>
    %859 = arith.subf %858, %857 : vector<1x128xf32>
    %cst_284 = arith.constant 0.000000e+00 : f32
    %860 = vector.broadcast %cst_284 : f32 to vector<1x128xf32>
    %861 = arith.maximumf %859, %860 : vector<1x128xf32>
    %cst_285 = arith.constant 2.000000e+00 : f32
    %862 = vector.broadcast %cst_285 : f32 to vector<1x128xf32>
    %863 = arith.mulf %862, %861 : vector<1x128xf32>
    %cst_286 = arith.constant 1.000000e+00 : f32
    %864 = vector.broadcast %cst_286 : f32 to vector<1x128xf32>
    %865 = arith.subf %863, %864 : vector<1x128xf32>
    %866 = arith.mulf %849, %865 : vector<1x128xf32>
    %cst_287 = arith.constant 1.000000e+00 : f32
    %867 = vector.broadcast %cst_287 : f32 to vector<1x128xf32>
    %868 = arith.subf %867, %861 : vector<1x128xf32>
    %869 = arith.mulf %849, %868 : vector<1x128xf32>
    %c32_i32 = arith.constant 32 : i32
    %870 = arith.index_cast %c32_i32 : i32 to index
    %c0_288 = arith.constant 0 : index
    %871 = vector.load %arg3[%870, %c0_288] : memref<50x128xf32, #tpu.memory_space<vmem>>, vector<1x128xf32>
    %872 = arith.addf %871, %869 : vector<1x128xf32>
    %c64_i32_289 = arith.constant 64 : i32
    %873 = tpu.dynamic_rotate %866 by %c64_i32_289 dim 1 : vector<1x128xf32>, i32 -> vector<1x128xf32>
    %874 = arith.addf %866, %873 : vector<1x128xf32>
    %875 = arith.mulf %874, %3 : vector<1x128xf32>
    %876 = arith.addf %872, %875 : vector<1x128xf32>
    %c64_i32_290 = arith.constant 64 : i32
    %877 = tpu.dynamic_rotate %876 by %c64_i32_290 dim 1 : vector<1x128xf32>, i32 -> vector<1x128xf32>
    %878 = arith.mulf %876, %876 : vector<1x128xf32>
    %879 = arith.mulf %877, %877 : vector<1x128xf32>
    %880 = arith.addf %878, %879 : vector<1x128xf32>
    %cst_291 = arith.constant 9.99999993E-9 : f32
    %881 = vector.broadcast %cst_291 : f32 to vector<1x128xf32>
    %882 = arith.addf %880, %881 : vector<1x128xf32>
    %883 = math.rsqrt %882 : vector<1x128xf32>
    %884 = arith.mulf %2, %883 : vector<1x128xf32>
    %cst_292 = arith.constant 1.000000e+00 : f32
    %885 = vector.broadcast %cst_292 : f32 to vector<1x128xf32>
    %886 = arith.subf %885, %884 : vector<1x128xf32>
    %cst_293 = arith.constant 0.000000e+00 : f32
    %887 = vector.broadcast %cst_293 : f32 to vector<1x128xf32>
    %888 = arith.maximumf %886, %887 : vector<1x128xf32>
    %cst_294 = arith.constant 2.000000e+00 : f32
    %889 = vector.broadcast %cst_294 : f32 to vector<1x128xf32>
    %890 = arith.mulf %889, %888 : vector<1x128xf32>
    %cst_295 = arith.constant 1.000000e+00 : f32
    %891 = vector.broadcast %cst_295 : f32 to vector<1x128xf32>
    %892 = arith.subf %890, %891 : vector<1x128xf32>
    %893 = arith.mulf %876, %892 : vector<1x128xf32>
    %cst_296 = arith.constant 1.000000e+00 : f32
    %894 = vector.broadcast %cst_296 : f32 to vector<1x128xf32>
    %895 = arith.subf %894, %888 : vector<1x128xf32>
    %896 = arith.mulf %876, %895 : vector<1x128xf32>
    %c33_i32 = arith.constant 33 : i32
    %897 = arith.index_cast %c33_i32 : i32 to index
    %c0_297 = arith.constant 0 : index
    %898 = vector.load %arg3[%897, %c0_297] : memref<50x128xf32, #tpu.memory_space<vmem>>, vector<1x128xf32>
    %899 = arith.addf %898, %896 : vector<1x128xf32>
    %c64_i32_298 = arith.constant 64 : i32
    %900 = tpu.dynamic_rotate %893 by %c64_i32_298 dim 1 : vector<1x128xf32>, i32 -> vector<1x128xf32>
    %901 = arith.addf %893, %900 : vector<1x128xf32>
    %902 = arith.mulf %901, %3 : vector<1x128xf32>
    %903 = arith.addf %899, %902 : vector<1x128xf32>
    %c64_i32_299 = arith.constant 64 : i32
    %904 = tpu.dynamic_rotate %903 by %c64_i32_299 dim 1 : vector<1x128xf32>, i32 -> vector<1x128xf32>
    %905 = arith.mulf %903, %903 : vector<1x128xf32>
    %906 = arith.mulf %904, %904 : vector<1x128xf32>
    %907 = arith.addf %905, %906 : vector<1x128xf32>
    %cst_300 = arith.constant 9.99999993E-9 : f32
    %908 = vector.broadcast %cst_300 : f32 to vector<1x128xf32>
    %909 = arith.addf %907, %908 : vector<1x128xf32>
    %910 = math.rsqrt %909 : vector<1x128xf32>
    %911 = arith.mulf %2, %910 : vector<1x128xf32>
    %cst_301 = arith.constant 1.000000e+00 : f32
    %912 = vector.broadcast %cst_301 : f32 to vector<1x128xf32>
    %913 = arith.subf %912, %911 : vector<1x128xf32>
    %cst_302 = arith.constant 0.000000e+00 : f32
    %914 = vector.broadcast %cst_302 : f32 to vector<1x128xf32>
    %915 = arith.maximumf %913, %914 : vector<1x128xf32>
    %cst_303 = arith.constant 2.000000e+00 : f32
    %916 = vector.broadcast %cst_303 : f32 to vector<1x128xf32>
    %917 = arith.mulf %916, %915 : vector<1x128xf32>
    %cst_304 = arith.constant 1.000000e+00 : f32
    %918 = vector.broadcast %cst_304 : f32 to vector<1x128xf32>
    %919 = arith.subf %917, %918 : vector<1x128xf32>
    %920 = arith.mulf %903, %919 : vector<1x128xf32>
    %cst_305 = arith.constant 1.000000e+00 : f32
    %921 = vector.broadcast %cst_305 : f32 to vector<1x128xf32>
    %922 = arith.subf %921, %915 : vector<1x128xf32>
    %923 = arith.mulf %903, %922 : vector<1x128xf32>
    %c34_i32 = arith.constant 34 : i32
    %924 = arith.index_cast %c34_i32 : i32 to index
    %c0_306 = arith.constant 0 : index
    %925 = vector.load %arg3[%924, %c0_306] : memref<50x128xf32, #tpu.memory_space<vmem>>, vector<1x128xf32>
    %926 = arith.addf %925, %923 : vector<1x128xf32>
    %c64_i32_307 = arith.constant 64 : i32
    %927 = tpu.dynamic_rotate %920 by %c64_i32_307 dim 1 : vector<1x128xf32>, i32 -> vector<1x128xf32>
    %928 = arith.addf %920, %927 : vector<1x128xf32>
    %929 = arith.mulf %928, %3 : vector<1x128xf32>
    %930 = arith.addf %926, %929 : vector<1x128xf32>
    %c64_i32_308 = arith.constant 64 : i32
    %931 = tpu.dynamic_rotate %930 by %c64_i32_308 dim 1 : vector<1x128xf32>, i32 -> vector<1x128xf32>
    %932 = arith.mulf %930, %930 : vector<1x128xf32>
    %933 = arith.mulf %931, %931 : vector<1x128xf32>
    %934 = arith.addf %932, %933 : vector<1x128xf32>
    %cst_309 = arith.constant 9.99999993E-9 : f32
    %935 = vector.broadcast %cst_309 : f32 to vector<1x128xf32>
    %936 = arith.addf %934, %935 : vector<1x128xf32>
    %937 = math.rsqrt %936 : vector<1x128xf32>
    %938 = arith.mulf %2, %937 : vector<1x128xf32>
    %cst_310 = arith.constant 1.000000e+00 : f32
    %939 = vector.broadcast %cst_310 : f32 to vector<1x128xf32>
    %940 = arith.subf %939, %938 : vector<1x128xf32>
    %cst_311 = arith.constant 0.000000e+00 : f32
    %941 = vector.broadcast %cst_311 : f32 to vector<1x128xf32>
    %942 = arith.maximumf %940, %941 : vector<1x128xf32>
    %cst_312 = arith.constant 2.000000e+00 : f32
    %943 = vector.broadcast %cst_312 : f32 to vector<1x128xf32>
    %944 = arith.mulf %943, %942 : vector<1x128xf32>
    %cst_313 = arith.constant 1.000000e+00 : f32
    %945 = vector.broadcast %cst_313 : f32 to vector<1x128xf32>
    %946 = arith.subf %944, %945 : vector<1x128xf32>
    %947 = arith.mulf %930, %946 : vector<1x128xf32>
    %cst_314 = arith.constant 1.000000e+00 : f32
    %948 = vector.broadcast %cst_314 : f32 to vector<1x128xf32>
    %949 = arith.subf %948, %942 : vector<1x128xf32>
    %950 = arith.mulf %930, %949 : vector<1x128xf32>
    %c35_i32 = arith.constant 35 : i32
    %951 = arith.index_cast %c35_i32 : i32 to index
    %c0_315 = arith.constant 0 : index
    %952 = vector.load %arg3[%951, %c0_315] : memref<50x128xf32, #tpu.memory_space<vmem>>, vector<1x128xf32>
    %953 = arith.addf %952, %950 : vector<1x128xf32>
    %c64_i32_316 = arith.constant 64 : i32
    %954 = tpu.dynamic_rotate %947 by %c64_i32_316 dim 1 : vector<1x128xf32>, i32 -> vector<1x128xf32>
    %955 = arith.addf %947, %954 : vector<1x128xf32>
    %956 = arith.mulf %955, %3 : vector<1x128xf32>
    %957 = arith.addf %953, %956 : vector<1x128xf32>
    %c64_i32_317 = arith.constant 64 : i32
    %958 = tpu.dynamic_rotate %957 by %c64_i32_317 dim 1 : vector<1x128xf32>, i32 -> vector<1x128xf32>
    %959 = arith.mulf %957, %957 : vector<1x128xf32>
    %960 = arith.mulf %958, %958 : vector<1x128xf32>
    %961 = arith.addf %959, %960 : vector<1x128xf32>
    %cst_318 = arith.constant 9.99999993E-9 : f32
    %962 = vector.broadcast %cst_318 : f32 to vector<1x128xf32>
    %963 = arith.addf %961, %962 : vector<1x128xf32>
    %964 = math.rsqrt %963 : vector<1x128xf32>
    %965 = arith.mulf %2, %964 : vector<1x128xf32>
    %cst_319 = arith.constant 1.000000e+00 : f32
    %966 = vector.broadcast %cst_319 : f32 to vector<1x128xf32>
    %967 = arith.subf %966, %965 : vector<1x128xf32>
    %cst_320 = arith.constant 0.000000e+00 : f32
    %968 = vector.broadcast %cst_320 : f32 to vector<1x128xf32>
    %969 = arith.maximumf %967, %968 : vector<1x128xf32>
    %cst_321 = arith.constant 2.000000e+00 : f32
    %970 = vector.broadcast %cst_321 : f32 to vector<1x128xf32>
    %971 = arith.mulf %970, %969 : vector<1x128xf32>
    %cst_322 = arith.constant 1.000000e+00 : f32
    %972 = vector.broadcast %cst_322 : f32 to vector<1x128xf32>
    %973 = arith.subf %971, %972 : vector<1x128xf32>
    %974 = arith.mulf %957, %973 : vector<1x128xf32>
    %cst_323 = arith.constant 1.000000e+00 : f32
    %975 = vector.broadcast %cst_323 : f32 to vector<1x128xf32>
    %976 = arith.subf %975, %969 : vector<1x128xf32>
    %977 = arith.mulf %957, %976 : vector<1x128xf32>
    %c36_i32 = arith.constant 36 : i32
    %978 = arith.index_cast %c36_i32 : i32 to index
    %c0_324 = arith.constant 0 : index
    %979 = vector.load %arg3[%978, %c0_324] : memref<50x128xf32, #tpu.memory_space<vmem>>, vector<1x128xf32>
    %980 = arith.addf %979, %977 : vector<1x128xf32>
    %c64_i32_325 = arith.constant 64 : i32
    %981 = tpu.dynamic_rotate %974 by %c64_i32_325 dim 1 : vector<1x128xf32>, i32 -> vector<1x128xf32>
    %982 = arith.addf %974, %981 : vector<1x128xf32>
    %983 = arith.mulf %982, %3 : vector<1x128xf32>
    %984 = arith.addf %980, %983 : vector<1x128xf32>
    %c64_i32_326 = arith.constant 64 : i32
    %985 = tpu.dynamic_rotate %984 by %c64_i32_326 dim 1 : vector<1x128xf32>, i32 -> vector<1x128xf32>
    %986 = arith.mulf %984, %984 : vector<1x128xf32>
    %987 = arith.mulf %985, %985 : vector<1x128xf32>
    %988 = arith.addf %986, %987 : vector<1x128xf32>
    %cst_327 = arith.constant 9.99999993E-9 : f32
    %989 = vector.broadcast %cst_327 : f32 to vector<1x128xf32>
    %990 = arith.addf %988, %989 : vector<1x128xf32>
    %991 = math.rsqrt %990 : vector<1x128xf32>
    %992 = arith.mulf %2, %991 : vector<1x128xf32>
    %cst_328 = arith.constant 1.000000e+00 : f32
    %993 = vector.broadcast %cst_328 : f32 to vector<1x128xf32>
    %994 = arith.subf %993, %992 : vector<1x128xf32>
    %cst_329 = arith.constant 0.000000e+00 : f32
    %995 = vector.broadcast %cst_329 : f32 to vector<1x128xf32>
    %996 = arith.maximumf %994, %995 : vector<1x128xf32>
    %cst_330 = arith.constant 2.000000e+00 : f32
    %997 = vector.broadcast %cst_330 : f32 to vector<1x128xf32>
    %998 = arith.mulf %997, %996 : vector<1x128xf32>
    %cst_331 = arith.constant 1.000000e+00 : f32
    %999 = vector.broadcast %cst_331 : f32 to vector<1x128xf32>
    %1000 = arith.subf %998, %999 : vector<1x128xf32>
    %1001 = arith.mulf %984, %1000 : vector<1x128xf32>
    %cst_332 = arith.constant 1.000000e+00 : f32
    %1002 = vector.broadcast %cst_332 : f32 to vector<1x128xf32>
    %1003 = arith.subf %1002, %996 : vector<1x128xf32>
    %1004 = arith.mulf %984, %1003 : vector<1x128xf32>
    %c37_i32 = arith.constant 37 : i32
    %1005 = arith.index_cast %c37_i32 : i32 to index
    %c0_333 = arith.constant 0 : index
    %1006 = vector.load %arg3[%1005, %c0_333] : memref<50x128xf32, #tpu.memory_space<vmem>>, vector<1x128xf32>
    %1007 = arith.addf %1006, %1004 : vector<1x128xf32>
    %c64_i32_334 = arith.constant 64 : i32
    %1008 = tpu.dynamic_rotate %1001 by %c64_i32_334 dim 1 : vector<1x128xf32>, i32 -> vector<1x128xf32>
    %1009 = arith.addf %1001, %1008 : vector<1x128xf32>
    %1010 = arith.mulf %1009, %3 : vector<1x128xf32>
    %1011 = arith.addf %1007, %1010 : vector<1x128xf32>
    %c64_i32_335 = arith.constant 64 : i32
    %1012 = tpu.dynamic_rotate %1011 by %c64_i32_335 dim 1 : vector<1x128xf32>, i32 -> vector<1x128xf32>
    %1013 = arith.mulf %1011, %1011 : vector<1x128xf32>
    %1014 = arith.mulf %1012, %1012 : vector<1x128xf32>
    %1015 = arith.addf %1013, %1014 : vector<1x128xf32>
    %cst_336 = arith.constant 9.99999993E-9 : f32
    %1016 = vector.broadcast %cst_336 : f32 to vector<1x128xf32>
    %1017 = arith.addf %1015, %1016 : vector<1x128xf32>
    %1018 = math.rsqrt %1017 : vector<1x128xf32>
    %1019 = arith.mulf %2, %1018 : vector<1x128xf32>
    %cst_337 = arith.constant 1.000000e+00 : f32
    %1020 = vector.broadcast %cst_337 : f32 to vector<1x128xf32>
    %1021 = arith.subf %1020, %1019 : vector<1x128xf32>
    %cst_338 = arith.constant 0.000000e+00 : f32
    %1022 = vector.broadcast %cst_338 : f32 to vector<1x128xf32>
    %1023 = arith.maximumf %1021, %1022 : vector<1x128xf32>
    %cst_339 = arith.constant 2.000000e+00 : f32
    %1024 = vector.broadcast %cst_339 : f32 to vector<1x128xf32>
    %1025 = arith.mulf %1024, %1023 : vector<1x128xf32>
    %cst_340 = arith.constant 1.000000e+00 : f32
    %1026 = vector.broadcast %cst_340 : f32 to vector<1x128xf32>
    %1027 = arith.subf %1025, %1026 : vector<1x128xf32>
    %1028 = arith.mulf %1011, %1027 : vector<1x128xf32>
    %cst_341 = arith.constant 1.000000e+00 : f32
    %1029 = vector.broadcast %cst_341 : f32 to vector<1x128xf32>
    %1030 = arith.subf %1029, %1023 : vector<1x128xf32>
    %1031 = arith.mulf %1011, %1030 : vector<1x128xf32>
    %c38_i32 = arith.constant 38 : i32
    %1032 = arith.index_cast %c38_i32 : i32 to index
    %c0_342 = arith.constant 0 : index
    %1033 = vector.load %arg3[%1032, %c0_342] : memref<50x128xf32, #tpu.memory_space<vmem>>, vector<1x128xf32>
    %1034 = arith.addf %1033, %1031 : vector<1x128xf32>
    %c64_i32_343 = arith.constant 64 : i32
    %1035 = tpu.dynamic_rotate %1028 by %c64_i32_343 dim 1 : vector<1x128xf32>, i32 -> vector<1x128xf32>
    %1036 = arith.addf %1028, %1035 : vector<1x128xf32>
    %1037 = arith.mulf %1036, %3 : vector<1x128xf32>
    %1038 = arith.addf %1034, %1037 : vector<1x128xf32>
    %c64_i32_344 = arith.constant 64 : i32
    %1039 = tpu.dynamic_rotate %1038 by %c64_i32_344 dim 1 : vector<1x128xf32>, i32 -> vector<1x128xf32>
    %1040 = arith.mulf %1038, %1038 : vector<1x128xf32>
    %1041 = arith.mulf %1039, %1039 : vector<1x128xf32>
    %1042 = arith.addf %1040, %1041 : vector<1x128xf32>
    %cst_345 = arith.constant 9.99999993E-9 : f32
    %1043 = vector.broadcast %cst_345 : f32 to vector<1x128xf32>
    %1044 = arith.addf %1042, %1043 : vector<1x128xf32>
    %1045 = math.rsqrt %1044 : vector<1x128xf32>
    %1046 = arith.mulf %2, %1045 : vector<1x128xf32>
    %cst_346 = arith.constant 1.000000e+00 : f32
    %1047 = vector.broadcast %cst_346 : f32 to vector<1x128xf32>
    %1048 = arith.subf %1047, %1046 : vector<1x128xf32>
    %cst_347 = arith.constant 0.000000e+00 : f32
    %1049 = vector.broadcast %cst_347 : f32 to vector<1x128xf32>
    %1050 = arith.maximumf %1048, %1049 : vector<1x128xf32>
    %cst_348 = arith.constant 2.000000e+00 : f32
    %1051 = vector.broadcast %cst_348 : f32 to vector<1x128xf32>
    %1052 = arith.mulf %1051, %1050 : vector<1x128xf32>
    %cst_349 = arith.constant 1.000000e+00 : f32
    %1053 = vector.broadcast %cst_349 : f32 to vector<1x128xf32>
    %1054 = arith.subf %1052, %1053 : vector<1x128xf32>
    %1055 = arith.mulf %1038, %1054 : vector<1x128xf32>
    %cst_350 = arith.constant 1.000000e+00 : f32
    %1056 = vector.broadcast %cst_350 : f32 to vector<1x128xf32>
    %1057 = arith.subf %1056, %1050 : vector<1x128xf32>
    %1058 = arith.mulf %1038, %1057 : vector<1x128xf32>
    %c39_i32 = arith.constant 39 : i32
    %1059 = arith.index_cast %c39_i32 : i32 to index
    %c0_351 = arith.constant 0 : index
    %1060 = vector.load %arg3[%1059, %c0_351] : memref<50x128xf32, #tpu.memory_space<vmem>>, vector<1x128xf32>
    %1061 = arith.addf %1060, %1058 : vector<1x128xf32>
    %c64_i32_352 = arith.constant 64 : i32
    %1062 = tpu.dynamic_rotate %1055 by %c64_i32_352 dim 1 : vector<1x128xf32>, i32 -> vector<1x128xf32>
    %1063 = arith.addf %1055, %1062 : vector<1x128xf32>
    %1064 = arith.mulf %1063, %3 : vector<1x128xf32>
    %1065 = arith.addf %1061, %1064 : vector<1x128xf32>
    %c64_i32_353 = arith.constant 64 : i32
    %1066 = tpu.dynamic_rotate %1065 by %c64_i32_353 dim 1 : vector<1x128xf32>, i32 -> vector<1x128xf32>
    %1067 = arith.mulf %1065, %1065 : vector<1x128xf32>
    %1068 = arith.mulf %1066, %1066 : vector<1x128xf32>
    %1069 = arith.addf %1067, %1068 : vector<1x128xf32>
    %cst_354 = arith.constant 9.99999993E-9 : f32
    %1070 = vector.broadcast %cst_354 : f32 to vector<1x128xf32>
    %1071 = arith.addf %1069, %1070 : vector<1x128xf32>
    %1072 = math.rsqrt %1071 : vector<1x128xf32>
    %1073 = arith.mulf %2, %1072 : vector<1x128xf32>
    %cst_355 = arith.constant 1.000000e+00 : f32
    %1074 = vector.broadcast %cst_355 : f32 to vector<1x128xf32>
    %1075 = arith.subf %1074, %1073 : vector<1x128xf32>
    %cst_356 = arith.constant 0.000000e+00 : f32
    %1076 = vector.broadcast %cst_356 : f32 to vector<1x128xf32>
    %1077 = arith.maximumf %1075, %1076 : vector<1x128xf32>
    %cst_357 = arith.constant 2.000000e+00 : f32
    %1078 = vector.broadcast %cst_357 : f32 to vector<1x128xf32>
    %1079 = arith.mulf %1078, %1077 : vector<1x128xf32>
    %cst_358 = arith.constant 1.000000e+00 : f32
    %1080 = vector.broadcast %cst_358 : f32 to vector<1x128xf32>
    %1081 = arith.subf %1079, %1080 : vector<1x128xf32>
    %1082 = arith.mulf %1065, %1081 : vector<1x128xf32>
    %cst_359 = arith.constant 1.000000e+00 : f32
    %1083 = vector.broadcast %cst_359 : f32 to vector<1x128xf32>
    %1084 = arith.subf %1083, %1077 : vector<1x128xf32>
    %1085 = arith.mulf %1065, %1084 : vector<1x128xf32>
    %c40_i32 = arith.constant 40 : i32
    %1086 = arith.index_cast %c40_i32 : i32 to index
    %c0_360 = arith.constant 0 : index
    %1087 = vector.load %arg3[%1086, %c0_360] : memref<50x128xf32, #tpu.memory_space<vmem>>, vector<1x128xf32>
    %1088 = arith.addf %1087, %1085 : vector<1x128xf32>
    %c64_i32_361 = arith.constant 64 : i32
    %1089 = tpu.dynamic_rotate %1082 by %c64_i32_361 dim 1 : vector<1x128xf32>, i32 -> vector<1x128xf32>
    %1090 = arith.addf %1082, %1089 : vector<1x128xf32>
    %1091 = arith.mulf %1090, %3 : vector<1x128xf32>
    %1092 = arith.addf %1088, %1091 : vector<1x128xf32>
    %c64_i32_362 = arith.constant 64 : i32
    %1093 = tpu.dynamic_rotate %1092 by %c64_i32_362 dim 1 : vector<1x128xf32>, i32 -> vector<1x128xf32>
    %1094 = arith.mulf %1092, %1092 : vector<1x128xf32>
    %1095 = arith.mulf %1093, %1093 : vector<1x128xf32>
    %1096 = arith.addf %1094, %1095 : vector<1x128xf32>
    %cst_363 = arith.constant 9.99999993E-9 : f32
    %1097 = vector.broadcast %cst_363 : f32 to vector<1x128xf32>
    %1098 = arith.addf %1096, %1097 : vector<1x128xf32>
    %1099 = math.rsqrt %1098 : vector<1x128xf32>
    %1100 = arith.mulf %2, %1099 : vector<1x128xf32>
    %cst_364 = arith.constant 1.000000e+00 : f32
    %1101 = vector.broadcast %cst_364 : f32 to vector<1x128xf32>
    %1102 = arith.subf %1101, %1100 : vector<1x128xf32>
    %cst_365 = arith.constant 0.000000e+00 : f32
    %1103 = vector.broadcast %cst_365 : f32 to vector<1x128xf32>
    %1104 = arith.maximumf %1102, %1103 : vector<1x128xf32>
    %cst_366 = arith.constant 2.000000e+00 : f32
    %1105 = vector.broadcast %cst_366 : f32 to vector<1x128xf32>
    %1106 = arith.mulf %1105, %1104 : vector<1x128xf32>
    %cst_367 = arith.constant 1.000000e+00 : f32
    %1107 = vector.broadcast %cst_367 : f32 to vector<1x128xf32>
    %1108 = arith.subf %1106, %1107 : vector<1x128xf32>
    %1109 = arith.mulf %1092, %1108 : vector<1x128xf32>
    %cst_368 = arith.constant 1.000000e+00 : f32
    %1110 = vector.broadcast %cst_368 : f32 to vector<1x128xf32>
    %1111 = arith.subf %1110, %1104 : vector<1x128xf32>
    %1112 = arith.mulf %1092, %1111 : vector<1x128xf32>
    %c41_i32 = arith.constant 41 : i32
    %1113 = arith.index_cast %c41_i32 : i32 to index
    %c0_369 = arith.constant 0 : index
    %1114 = vector.load %arg3[%1113, %c0_369] : memref<50x128xf32, #tpu.memory_space<vmem>>, vector<1x128xf32>
    %1115 = arith.addf %1114, %1112 : vector<1x128xf32>
    %c64_i32_370 = arith.constant 64 : i32
    %1116 = tpu.dynamic_rotate %1109 by %c64_i32_370 dim 1 : vector<1x128xf32>, i32 -> vector<1x128xf32>
    %1117 = arith.addf %1109, %1116 : vector<1x128xf32>
    %1118 = arith.mulf %1117, %3 : vector<1x128xf32>
    %1119 = arith.addf %1115, %1118 : vector<1x128xf32>
    %c64_i32_371 = arith.constant 64 : i32
    %1120 = tpu.dynamic_rotate %1119 by %c64_i32_371 dim 1 : vector<1x128xf32>, i32 -> vector<1x128xf32>
    %1121 = arith.mulf %1119, %1119 : vector<1x128xf32>
    %1122 = arith.mulf %1120, %1120 : vector<1x128xf32>
    %1123 = arith.addf %1121, %1122 : vector<1x128xf32>
    %cst_372 = arith.constant 9.99999993E-9 : f32
    %1124 = vector.broadcast %cst_372 : f32 to vector<1x128xf32>
    %1125 = arith.addf %1123, %1124 : vector<1x128xf32>
    %1126 = math.rsqrt %1125 : vector<1x128xf32>
    %1127 = arith.mulf %2, %1126 : vector<1x128xf32>
    %cst_373 = arith.constant 1.000000e+00 : f32
    %1128 = vector.broadcast %cst_373 : f32 to vector<1x128xf32>
    %1129 = arith.subf %1128, %1127 : vector<1x128xf32>
    %cst_374 = arith.constant 0.000000e+00 : f32
    %1130 = vector.broadcast %cst_374 : f32 to vector<1x128xf32>
    %1131 = arith.maximumf %1129, %1130 : vector<1x128xf32>
    %cst_375 = arith.constant 2.000000e+00 : f32
    %1132 = vector.broadcast %cst_375 : f32 to vector<1x128xf32>
    %1133 = arith.mulf %1132, %1131 : vector<1x128xf32>
    %cst_376 = arith.constant 1.000000e+00 : f32
    %1134 = vector.broadcast %cst_376 : f32 to vector<1x128xf32>
    %1135 = arith.subf %1133, %1134 : vector<1x128xf32>
    %1136 = arith.mulf %1119, %1135 : vector<1x128xf32>
    %cst_377 = arith.constant 1.000000e+00 : f32
    %1137 = vector.broadcast %cst_377 : f32 to vector<1x128xf32>
    %1138 = arith.subf %1137, %1131 : vector<1x128xf32>
    %1139 = arith.mulf %1119, %1138 : vector<1x128xf32>
    %c42_i32 = arith.constant 42 : i32
    %1140 = arith.index_cast %c42_i32 : i32 to index
    %c0_378 = arith.constant 0 : index
    %1141 = vector.load %arg3[%1140, %c0_378] : memref<50x128xf32, #tpu.memory_space<vmem>>, vector<1x128xf32>
    %1142 = arith.addf %1141, %1139 : vector<1x128xf32>
    %c64_i32_379 = arith.constant 64 : i32
    %1143 = tpu.dynamic_rotate %1136 by %c64_i32_379 dim 1 : vector<1x128xf32>, i32 -> vector<1x128xf32>
    %1144 = arith.addf %1136, %1143 : vector<1x128xf32>
    %1145 = arith.mulf %1144, %3 : vector<1x128xf32>
    %1146 = arith.addf %1142, %1145 : vector<1x128xf32>
    %c64_i32_380 = arith.constant 64 : i32
    %1147 = tpu.dynamic_rotate %1146 by %c64_i32_380 dim 1 : vector<1x128xf32>, i32 -> vector<1x128xf32>
    %1148 = arith.mulf %1146, %1146 : vector<1x128xf32>
    %1149 = arith.mulf %1147, %1147 : vector<1x128xf32>
    %1150 = arith.addf %1148, %1149 : vector<1x128xf32>
    %cst_381 = arith.constant 9.99999993E-9 : f32
    %1151 = vector.broadcast %cst_381 : f32 to vector<1x128xf32>
    %1152 = arith.addf %1150, %1151 : vector<1x128xf32>
    %1153 = math.rsqrt %1152 : vector<1x128xf32>
    %1154 = arith.mulf %2, %1153 : vector<1x128xf32>
    %cst_382 = arith.constant 1.000000e+00 : f32
    %1155 = vector.broadcast %cst_382 : f32 to vector<1x128xf32>
    %1156 = arith.subf %1155, %1154 : vector<1x128xf32>
    %cst_383 = arith.constant 0.000000e+00 : f32
    %1157 = vector.broadcast %cst_383 : f32 to vector<1x128xf32>
    %1158 = arith.maximumf %1156, %1157 : vector<1x128xf32>
    %cst_384 = arith.constant 2.000000e+00 : f32
    %1159 = vector.broadcast %cst_384 : f32 to vector<1x128xf32>
    %1160 = arith.mulf %1159, %1158 : vector<1x128xf32>
    %cst_385 = arith.constant 1.000000e+00 : f32
    %1161 = vector.broadcast %cst_385 : f32 to vector<1x128xf32>
    %1162 = arith.subf %1160, %1161 : vector<1x128xf32>
    %1163 = arith.mulf %1146, %1162 : vector<1x128xf32>
    %cst_386 = arith.constant 1.000000e+00 : f32
    %1164 = vector.broadcast %cst_386 : f32 to vector<1x128xf32>
    %1165 = arith.subf %1164, %1158 : vector<1x128xf32>
    %1166 = arith.mulf %1146, %1165 : vector<1x128xf32>
    %c43_i32 = arith.constant 43 : i32
    %1167 = arith.index_cast %c43_i32 : i32 to index
    %c0_387 = arith.constant 0 : index
    %1168 = vector.load %arg3[%1167, %c0_387] : memref<50x128xf32, #tpu.memory_space<vmem>>, vector<1x128xf32>
    %1169 = arith.addf %1168, %1166 : vector<1x128xf32>
    %c64_i32_388 = arith.constant 64 : i32
    %1170 = tpu.dynamic_rotate %1163 by %c64_i32_388 dim 1 : vector<1x128xf32>, i32 -> vector<1x128xf32>
    %1171 = arith.addf %1163, %1170 : vector<1x128xf32>
    %1172 = arith.mulf %1171, %3 : vector<1x128xf32>
    %1173 = arith.addf %1169, %1172 : vector<1x128xf32>
    %c64_i32_389 = arith.constant 64 : i32
    %1174 = tpu.dynamic_rotate %1173 by %c64_i32_389 dim 1 : vector<1x128xf32>, i32 -> vector<1x128xf32>
    %1175 = arith.mulf %1173, %1173 : vector<1x128xf32>
    %1176 = arith.mulf %1174, %1174 : vector<1x128xf32>
    %1177 = arith.addf %1175, %1176 : vector<1x128xf32>
    %cst_390 = arith.constant 9.99999993E-9 : f32
    %1178 = vector.broadcast %cst_390 : f32 to vector<1x128xf32>
    %1179 = arith.addf %1177, %1178 : vector<1x128xf32>
    %1180 = math.rsqrt %1179 : vector<1x128xf32>
    %1181 = arith.mulf %2, %1180 : vector<1x128xf32>
    %cst_391 = arith.constant 1.000000e+00 : f32
    %1182 = vector.broadcast %cst_391 : f32 to vector<1x128xf32>
    %1183 = arith.subf %1182, %1181 : vector<1x128xf32>
    %cst_392 = arith.constant 0.000000e+00 : f32
    %1184 = vector.broadcast %cst_392 : f32 to vector<1x128xf32>
    %1185 = arith.maximumf %1183, %1184 : vector<1x128xf32>
    %cst_393 = arith.constant 2.000000e+00 : f32
    %1186 = vector.broadcast %cst_393 : f32 to vector<1x128xf32>
    %1187 = arith.mulf %1186, %1185 : vector<1x128xf32>
    %cst_394 = arith.constant 1.000000e+00 : f32
    %1188 = vector.broadcast %cst_394 : f32 to vector<1x128xf32>
    %1189 = arith.subf %1187, %1188 : vector<1x128xf32>
    %1190 = arith.mulf %1173, %1189 : vector<1x128xf32>
    %cst_395 = arith.constant 1.000000e+00 : f32
    %1191 = vector.broadcast %cst_395 : f32 to vector<1x128xf32>
    %1192 = arith.subf %1191, %1185 : vector<1x128xf32>
    %1193 = arith.mulf %1173, %1192 : vector<1x128xf32>
    %c44_i32 = arith.constant 44 : i32
    %1194 = arith.index_cast %c44_i32 : i32 to index
    %c0_396 = arith.constant 0 : index
    %1195 = vector.load %arg3[%1194, %c0_396] : memref<50x128xf32, #tpu.memory_space<vmem>>, vector<1x128xf32>
    %1196 = arith.addf %1195, %1193 : vector<1x128xf32>
    %c64_i32_397 = arith.constant 64 : i32
    %1197 = tpu.dynamic_rotate %1190 by %c64_i32_397 dim 1 : vector<1x128xf32>, i32 -> vector<1x128xf32>
    %1198 = arith.addf %1190, %1197 : vector<1x128xf32>
    %1199 = arith.mulf %1198, %3 : vector<1x128xf32>
    %1200 = arith.addf %1196, %1199 : vector<1x128xf32>
    %c64_i32_398 = arith.constant 64 : i32
    %1201 = tpu.dynamic_rotate %1200 by %c64_i32_398 dim 1 : vector<1x128xf32>, i32 -> vector<1x128xf32>
    %1202 = arith.mulf %1200, %1200 : vector<1x128xf32>
    %1203 = arith.mulf %1201, %1201 : vector<1x128xf32>
    %1204 = arith.addf %1202, %1203 : vector<1x128xf32>
    %cst_399 = arith.constant 9.99999993E-9 : f32
    %1205 = vector.broadcast %cst_399 : f32 to vector<1x128xf32>
    %1206 = arith.addf %1204, %1205 : vector<1x128xf32>
    %1207 = math.rsqrt %1206 : vector<1x128xf32>
    %1208 = arith.mulf %2, %1207 : vector<1x128xf32>
    %cst_400 = arith.constant 1.000000e+00 : f32
    %1209 = vector.broadcast %cst_400 : f32 to vector<1x128xf32>
    %1210 = arith.subf %1209, %1208 : vector<1x128xf32>
    %cst_401 = arith.constant 0.000000e+00 : f32
    %1211 = vector.broadcast %cst_401 : f32 to vector<1x128xf32>
    %1212 = arith.maximumf %1210, %1211 : vector<1x128xf32>
    %cst_402 = arith.constant 2.000000e+00 : f32
    %1213 = vector.broadcast %cst_402 : f32 to vector<1x128xf32>
    %1214 = arith.mulf %1213, %1212 : vector<1x128xf32>
    %cst_403 = arith.constant 1.000000e+00 : f32
    %1215 = vector.broadcast %cst_403 : f32 to vector<1x128xf32>
    %1216 = arith.subf %1214, %1215 : vector<1x128xf32>
    %1217 = arith.mulf %1200, %1216 : vector<1x128xf32>
    %cst_404 = arith.constant 1.000000e+00 : f32
    %1218 = vector.broadcast %cst_404 : f32 to vector<1x128xf32>
    %1219 = arith.subf %1218, %1212 : vector<1x128xf32>
    %1220 = arith.mulf %1200, %1219 : vector<1x128xf32>
    %c45_i32 = arith.constant 45 : i32
    %1221 = arith.index_cast %c45_i32 : i32 to index
    %c0_405 = arith.constant 0 : index
    %1222 = vector.load %arg3[%1221, %c0_405] : memref<50x128xf32, #tpu.memory_space<vmem>>, vector<1x128xf32>
    %1223 = arith.addf %1222, %1220 : vector<1x128xf32>
    %c64_i32_406 = arith.constant 64 : i32
    %1224 = tpu.dynamic_rotate %1217 by %c64_i32_406 dim 1 : vector<1x128xf32>, i32 -> vector<1x128xf32>
    %1225 = arith.addf %1217, %1224 : vector<1x128xf32>
    %1226 = arith.mulf %1225, %3 : vector<1x128xf32>
    %1227 = arith.addf %1223, %1226 : vector<1x128xf32>
    %c64_i32_407 = arith.constant 64 : i32
    %1228 = tpu.dynamic_rotate %1227 by %c64_i32_407 dim 1 : vector<1x128xf32>, i32 -> vector<1x128xf32>
    %1229 = arith.mulf %1227, %1227 : vector<1x128xf32>
    %1230 = arith.mulf %1228, %1228 : vector<1x128xf32>
    %1231 = arith.addf %1229, %1230 : vector<1x128xf32>
    %cst_408 = arith.constant 9.99999993E-9 : f32
    %1232 = vector.broadcast %cst_408 : f32 to vector<1x128xf32>
    %1233 = arith.addf %1231, %1232 : vector<1x128xf32>
    %1234 = math.rsqrt %1233 : vector<1x128xf32>
    %1235 = arith.mulf %2, %1234 : vector<1x128xf32>
    %cst_409 = arith.constant 1.000000e+00 : f32
    %1236 = vector.broadcast %cst_409 : f32 to vector<1x128xf32>
    %1237 = arith.subf %1236, %1235 : vector<1x128xf32>
    %cst_410 = arith.constant 0.000000e+00 : f32
    %1238 = vector.broadcast %cst_410 : f32 to vector<1x128xf32>
    %1239 = arith.maximumf %1237, %1238 : vector<1x128xf32>
    %cst_411 = arith.constant 2.000000e+00 : f32
    %1240 = vector.broadcast %cst_411 : f32 to vector<1x128xf32>
    %1241 = arith.mulf %1240, %1239 : vector<1x128xf32>
    %cst_412 = arith.constant 1.000000e+00 : f32
    %1242 = vector.broadcast %cst_412 : f32 to vector<1x128xf32>
    %1243 = arith.subf %1241, %1242 : vector<1x128xf32>
    %1244 = arith.mulf %1227, %1243 : vector<1x128xf32>
    %cst_413 = arith.constant 1.000000e+00 : f32
    %1245 = vector.broadcast %cst_413 : f32 to vector<1x128xf32>
    %1246 = arith.subf %1245, %1239 : vector<1x128xf32>
    %1247 = arith.mulf %1227, %1246 : vector<1x128xf32>
    %c46_i32 = arith.constant 46 : i32
    %1248 = arith.index_cast %c46_i32 : i32 to index
    %c0_414 = arith.constant 0 : index
    %1249 = vector.load %arg3[%1248, %c0_414] : memref<50x128xf32, #tpu.memory_space<vmem>>, vector<1x128xf32>
    %1250 = arith.addf %1249, %1247 : vector<1x128xf32>
    %c64_i32_415 = arith.constant 64 : i32
    %1251 = tpu.dynamic_rotate %1244 by %c64_i32_415 dim 1 : vector<1x128xf32>, i32 -> vector<1x128xf32>
    %1252 = arith.addf %1244, %1251 : vector<1x128xf32>
    %1253 = arith.mulf %1252, %3 : vector<1x128xf32>
    %1254 = arith.addf %1250, %1253 : vector<1x128xf32>
    %c64_i32_416 = arith.constant 64 : i32
    %1255 = tpu.dynamic_rotate %1254 by %c64_i32_416 dim 1 : vector<1x128xf32>, i32 -> vector<1x128xf32>
    %1256 = arith.mulf %1254, %1254 : vector<1x128xf32>
    %1257 = arith.mulf %1255, %1255 : vector<1x128xf32>
    %1258 = arith.addf %1256, %1257 : vector<1x128xf32>
    %cst_417 = arith.constant 9.99999993E-9 : f32
    %1259 = vector.broadcast %cst_417 : f32 to vector<1x128xf32>
    %1260 = arith.addf %1258, %1259 : vector<1x128xf32>
    %1261 = math.rsqrt %1260 : vector<1x128xf32>
    %1262 = arith.mulf %2, %1261 : vector<1x128xf32>
    %cst_418 = arith.constant 1.000000e+00 : f32
    %1263 = vector.broadcast %cst_418 : f32 to vector<1x128xf32>
    %1264 = arith.subf %1263, %1262 : vector<1x128xf32>
    %cst_419 = arith.constant 0.000000e+00 : f32
    %1265 = vector.broadcast %cst_419 : f32 to vector<1x128xf32>
    %1266 = arith.maximumf %1264, %1265 : vector<1x128xf32>
    %cst_420 = arith.constant 2.000000e+00 : f32
    %1267 = vector.broadcast %cst_420 : f32 to vector<1x128xf32>
    %1268 = arith.mulf %1267, %1266 : vector<1x128xf32>
    %cst_421 = arith.constant 1.000000e+00 : f32
    %1269 = vector.broadcast %cst_421 : f32 to vector<1x128xf32>
    %1270 = arith.subf %1268, %1269 : vector<1x128xf32>
    %1271 = arith.mulf %1254, %1270 : vector<1x128xf32>
    %cst_422 = arith.constant 1.000000e+00 : f32
    %1272 = vector.broadcast %cst_422 : f32 to vector<1x128xf32>
    %1273 = arith.subf %1272, %1266 : vector<1x128xf32>
    %1274 = arith.mulf %1254, %1273 : vector<1x128xf32>
    %c47_i32 = arith.constant 47 : i32
    %1275 = arith.index_cast %c47_i32 : i32 to index
    %c0_423 = arith.constant 0 : index
    %1276 = vector.load %arg3[%1275, %c0_423] : memref<50x128xf32, #tpu.memory_space<vmem>>, vector<1x128xf32>
    %1277 = arith.addf %1276, %1274 : vector<1x128xf32>
    %c64_i32_424 = arith.constant 64 : i32
    %1278 = tpu.dynamic_rotate %1271 by %c64_i32_424 dim 1 : vector<1x128xf32>, i32 -> vector<1x128xf32>
    %1279 = arith.addf %1271, %1278 : vector<1x128xf32>
    %1280 = arith.mulf %1279, %3 : vector<1x128xf32>
    %1281 = arith.addf %1277, %1280 : vector<1x128xf32>
    %c64_i32_425 = arith.constant 64 : i32
    %1282 = tpu.dynamic_rotate %1281 by %c64_i32_425 dim 1 : vector<1x128xf32>, i32 -> vector<1x128xf32>
    %1283 = arith.mulf %1281, %1281 : vector<1x128xf32>
    %1284 = arith.mulf %1282, %1282 : vector<1x128xf32>
    %1285 = arith.addf %1283, %1284 : vector<1x128xf32>
    %cst_426 = arith.constant 9.99999993E-9 : f32
    %1286 = vector.broadcast %cst_426 : f32 to vector<1x128xf32>
    %1287 = arith.addf %1285, %1286 : vector<1x128xf32>
    %1288 = math.rsqrt %1287 : vector<1x128xf32>
    %1289 = arith.mulf %2, %1288 : vector<1x128xf32>
    %cst_427 = arith.constant 1.000000e+00 : f32
    %1290 = vector.broadcast %cst_427 : f32 to vector<1x128xf32>
    %1291 = arith.subf %1290, %1289 : vector<1x128xf32>
    %cst_428 = arith.constant 0.000000e+00 : f32
    %1292 = vector.broadcast %cst_428 : f32 to vector<1x128xf32>
    %1293 = arith.maximumf %1291, %1292 : vector<1x128xf32>
    %cst_429 = arith.constant 2.000000e+00 : f32
    %1294 = vector.broadcast %cst_429 : f32 to vector<1x128xf32>
    %1295 = arith.mulf %1294, %1293 : vector<1x128xf32>
    %cst_430 = arith.constant 1.000000e+00 : f32
    %1296 = vector.broadcast %cst_430 : f32 to vector<1x128xf32>
    %1297 = arith.subf %1295, %1296 : vector<1x128xf32>
    %1298 = arith.mulf %1281, %1297 : vector<1x128xf32>
    %cst_431 = arith.constant 1.000000e+00 : f32
    %1299 = vector.broadcast %cst_431 : f32 to vector<1x128xf32>
    %1300 = arith.subf %1299, %1293 : vector<1x128xf32>
    %1301 = arith.mulf %1281, %1300 : vector<1x128xf32>
    %c48_i32 = arith.constant 48 : i32
    %1302 = arith.index_cast %c48_i32 : i32 to index
    %c0_432 = arith.constant 0 : index
    %1303 = vector.load %arg3[%1302, %c0_432] : memref<50x128xf32, #tpu.memory_space<vmem>>, vector<1x128xf32>
    %1304 = arith.addf %1303, %1301 : vector<1x128xf32>
    %c64_i32_433 = arith.constant 64 : i32
    %1305 = tpu.dynamic_rotate %1298 by %c64_i32_433 dim 1 : vector<1x128xf32>, i32 -> vector<1x128xf32>
    %1306 = arith.addf %1298, %1305 : vector<1x128xf32>
    %1307 = arith.mulf %1306, %3 : vector<1x128xf32>
    %1308 = arith.addf %1304, %1307 : vector<1x128xf32>
    %c64_i32_434 = arith.constant 64 : i32
    %1309 = tpu.dynamic_rotate %1308 by %c64_i32_434 dim 1 : vector<1x128xf32>, i32 -> vector<1x128xf32>
    %1310 = arith.mulf %1308, %1308 : vector<1x128xf32>
    %1311 = arith.mulf %1309, %1309 : vector<1x128xf32>
    %1312 = arith.addf %1310, %1311 : vector<1x128xf32>
    %cst_435 = arith.constant 9.99999993E-9 : f32
    %1313 = vector.broadcast %cst_435 : f32 to vector<1x128xf32>
    %1314 = arith.addf %1312, %1313 : vector<1x128xf32>
    %1315 = math.rsqrt %1314 : vector<1x128xf32>
    %1316 = arith.mulf %2, %1315 : vector<1x128xf32>
    %cst_436 = arith.constant 1.000000e+00 : f32
    %1317 = vector.broadcast %cst_436 : f32 to vector<1x128xf32>
    %1318 = arith.subf %1317, %1316 : vector<1x128xf32>
    %cst_437 = arith.constant 0.000000e+00 : f32
    %1319 = vector.broadcast %cst_437 : f32 to vector<1x128xf32>
    %1320 = arith.maximumf %1318, %1319 : vector<1x128xf32>
    %cst_438 = arith.constant 2.000000e+00 : f32
    %1321 = vector.broadcast %cst_438 : f32 to vector<1x128xf32>
    %1322 = arith.mulf %1321, %1320 : vector<1x128xf32>
    %cst_439 = arith.constant 1.000000e+00 : f32
    %1323 = vector.broadcast %cst_439 : f32 to vector<1x128xf32>
    %1324 = arith.subf %1322, %1323 : vector<1x128xf32>
    %1325 = arith.mulf %1308, %1324 : vector<1x128xf32>
    %cst_440 = arith.constant 1.000000e+00 : f32
    %1326 = vector.broadcast %cst_440 : f32 to vector<1x128xf32>
    %1327 = arith.subf %1326, %1320 : vector<1x128xf32>
    %1328 = arith.mulf %1308, %1327 : vector<1x128xf32>
    %c49_i32 = arith.constant 49 : i32
    %c64_i32_441 = arith.constant 64 : i32
    %1329 = tpu.dynamic_rotate %1325 by %c64_i32_441 dim 1 : vector<1x128xf32>, i32 -> vector<1x128xf32>
    %1330 = arith.addf %1325, %1329 : vector<1x128xf32>
    %c0_442 = arith.constant 0 : index
    %c0_443 = arith.constant 0 : index
    %1331 = vector.load %arg2[%c0_442, %c0_443] : memref<1x128xf32, #tpu.memory_space<vmem>>, vector<1x128xf32>
    %1332 = arith.mulf %1330, %3 : vector<1x128xf32>
    %1333 = arith.subf %1331, %1332 : vector<1x128xf32>
    %c0_444 = arith.constant 0 : index
    %c0_445 = arith.constant 0 : index
    %1334 = vector.load %arg4[%c0_444, %c0_445] : memref<1x128xf32, #tpu.memory_space<vmem>>, vector<1x128xf32>
    tpu.vector_store %arg4[%c0_444, %c0_445], %1333 {strides = array<i32>} : memref<1x128xf32, #tpu.memory_space<vmem>>, vector<1x128xf32>,
    %c0_446 = arith.constant 0 : index
    %c0_447 = arith.constant 0 : index
    %1335 = vector.load %arg1[%c0_446, %c0_447] : memref<1x128xf32, #tpu.memory_space<vmem>>, vector<1x128xf32>
    %1336 = arith.subf %1333, %1335 : vector<1x128xf32>
    %1337 = arith.mulf %1336, %1336 : vector<1x128xf32>
    %1338 = vector.shape_cast %1337 : vector<1x128xf32> to vector<1x1x128xf32>
    %cst_448 = arith.constant dense<0.000000e+00> : vector<1xf32>
    %1339 = vector.multi_reduction <add>, %1338, %cst_448 [1, 2] : vector<1x1x128xf32> to vector<1xf32>
    %1340 = vector.shape_cast %1339 : vector<1xf32> to vector<1x1x1xf32>
    %1341 = vector.extract %1340[0, 0, 0] : f32 from vector<1x1x1xf32>
    %1342 = vector.broadcast %1341 : f32 to vector<1x1xf32>
    %cst_449 = arith.constant 1.280000e+02 : f32
    %1343 = vector.broadcast %cst_449 : f32 to vector<1x1xf32>
    %1344 = arith.divf %1342, %1343 : vector<1x1xf32>
    %c0_450 = arith.constant 0 : index
    %c0_451 = arith.constant 0 : index
    %1345 = vector.load %arg5[%c0_450, %c0_451] : memref<1x1xf32, #tpu.memory_space<vmem>>, vector<1x1xf32>
    tpu.vector_store %arg5[%c0_450, %c0_451], %1344 {strides = array<i32>} : memref<1x1xf32, #tpu.memory_space<vmem>>, vector<1x1xf32>,
    return
  }
}

</mosaic_0001>

<bundles_post_ra>
// kernel: _admm_structured.1
= control target key start
LH: loop header
LB: loop body
LE: loop exit
PB: predicated region body
PF: predicated region fallthrough
CT: control target
= control target key end

     0   :  { %11 = vsyncpa [#allocation4], 0  ;;  %s1757_s0 = inlined_call_operand.vmem [shape: f32[2], index: 0, kind: input, shape index: {}]   ;;  %s1758_s1 = inlined_call_operand.vmem [shape: f32[1,128], index: 1, kind: input, shape index: {}]   ;;  %s1759_s2 = inlined_call_operand.vmem [shape: f32[1,128], index: 2, kind: input, shape index: {}]   ;;  %s1760_s3 = inlined_call_operand.vmem [shape: f32[50,128], index: 3, kind: input, shape index: {}]   ;;  %s1761_s4 = inlined_call_operand.vmem [shape: f32[1,128], index: 4, kind: output, shape index: {0}]   ;;  %s1762_s5 = inlined_call_operand.hbm [shape: f32[1,1], index: 5, kind: output, shape index: {1}]  }
   0x1   :  { %12 = vsyncpa [#allocation3], 0  ;;  %s19_s20 = sshll.u32 %s1757_s0, 4  ;;  %s20_s20 = int_to_ptr.vmem [resolvable:$true] %s19_s20 }
   0x2   :  { %s1312_s21 = scalar_lea.vmem %s20_s20, 16  ;;  %p1317_p1 = scmp.lt.s32.totalorder %s20_s20, %s20_s20 }
   0x3   :  { %p1313_p0 = scmp.ne.s32.totalorder %s20_s20, %s1312_s21  ;;  %p1318_p2 = scmp.lt.s32.totalorder %s1312_s21, %s1312_s21 }
   0x5   :  { %p1319_p3 = por %p1318_p2, %p1317_p1 }
   0x7   :  { %p1320_p4 = pnand %p1319_p3, %p1313_p0 }
   0x9   :  { %1323 = shalt.err (!%p1320_p4)
}
   0xa   :  { %s1350_s22 = smov [#allocation2]  }
   0xb   :  { %22 = dma.vmem_to_smem %s20_s20, 16, %s1350_s22, [#allocation4]  }
   0xc   :  { %1346 = dma.done.wait [#allocation4], 16  }
   0xd   :  { %1347 = vsyncadd [#allocation4], 4294967280 }
   0xe   :  { %32 = sfence }
   0xf   :  { %v1351_v0 = vmov 0.0   ;;  %s1352_s23 = smov 64   ;;  %s1158_s24 = sld [smem:[#allocation2 + $0x1]]  ;;  %v37_v3 = vld [vmem:[%s1760_s3] sm:$0x1]  ;;  %vm1123_vm0 = vcmask 1040384  }
  0x10   :  { %39 = vrot.lane.b32.xlu0 %v1351_v0, %s1352_s23  ;;  %s33_s26 = sld [smem:[#allocation2]]  ;;  %v59_v21 = vld [vmem:[%s1760_s3 + $0x1] sm:$0x1]  ;;  %v81_v41 = vld [vmem:[%s1760_s3 + $0x2] sm:$0x1]  ;;  %vm1137_vm1 = vcmask 0  }
  0x11   :  { %v103_v61 = vld [vmem:[%s1760_s3 + $0x3] sm:$0x1] }
  0x15   :  { %v1388_v1 = vstv %s1158_s24 }
  0x16   :  { %v1395_v11 = vstv %s33_s26 }
  0x82   :  { %v40_v2 = vpop.permute.xlu0 %39 }
  0x83   :  { %v42_v4 = vmul.f32 %v40_v2, %v1388_v1 }
  0x85   :  { %v43_v5 = vadd.f32 %v42_v4, %v37_v3 }
  0x87   :  { %44 = vrot.lane.b32.xlu0 %v43_v5, %s1352_s23  ;;  %v46_v7 = vmul.f32 %v43_v5, %v43_v5 }
  0xf9   :  { %v45_v6 = vpop.permute.xlu0 %44 }
  0xfa   :  { %v47_v8 = vmul.f32 %v45_v6, %v45_v6 }
  0xfc   :  { %v48_v9 = vadd.f32 %v47_v8, %v46_v7 }
  0xfe   :  { %v49_v10 = vadd.f32 1e-08, %v48_v9 }
 0x100   :  { %1214 = vrsqrt.f32 %v49_v10 }
 0x10a   :  { %v1215_v12 = vpop.eup %1214 }
 0x10b   :  { %v51_v13 = vmul.f32 %v1215_v12, %v1395_v11 }
 0x10d   :  { %v52_v14 = vsub.f32 1.0, %v51_v13 }
 0x10f   :  { %v53_v15 = vmax.f32 %v52_v14, 0.0 }
 0x111   :  { %v54_v16 = vmul.f32 2.0, %v53_v15  ;;  %v57_v19 = vsub.f32 1.0, %v53_v15 }
 0x113   :  { %v1159_v17 = vadd.f32 -1.0, %v54_v16  ;;  %v58_v20 = vmul.f32 %v57_v19, %v43_v5  ;;  %v125_v19 = vld [vmem:[%s1760_s3 + $0x4] sm:$0x1] }
 0x115   :  { %v56_v18 = vmul.f32 %v1159_v17, %v43_v5  ;;  %v60_v24 = vadd.f32 %v59_v21, %v58_v20 }
 0x117   :  { %61 = vrot.lane.b32.xlu1 %v56_v18, %s1352_s23 }
 0x189   :  { %v62_v22 = vpop.permute.xlu1 %61 }
 0x18a   :  { %v63_v23 = vadd.f32 %v62_v22, %v56_v18 }
 0x18c   :  { %v64_v25 = vmul.f32 %v63_v23, %v1388_v1 }
 0x18e   :  { %v65_v26 = vadd.f32 %v64_v25, %v60_v24 }
 0x190   :  { %66 = vrot.lane.b32.xlu1 %v65_v26, %s1352_s23  ;;  %v68_v28 = vmul.f32 %v65_v26, %v65_v26 }
 0x202   :  { %v67_v27 = vpop.permute.xlu1 %66 }
 0x203   :  { %v69_v29 = vmul.f32 %v67_v27, %v67_v27 }
 0x205   :  { %v70_v30 = vadd.f32 %v69_v29, %v68_v28 }
 0x207   :  { %v71_v31 = vadd.f32 1e-08, %v70_v30 }
 0x209   :  { %1216 = vrsqrt.f32 %v71_v31 }
 0x213   :  { %v1217_v32 = vpop.eup %1216 }
 0x214   :  { %v73_v33 = vmul.f32 %v1217_v32, %v1395_v11 }
 0x216   :  { %v74_v34 = vsub.f32 1.0, %v73_v33 }
 0x218   :  { %v75_v35 = vmax.f32 %v74_v34, 0.0 }
 0x21a   :  { %v76_v36 = vmul.f32 2.0, %v75_v35  ;;  %v79_v39 = vsub.f32 1.0, %v75_v35 }
 0x21c   :  { %v1160_v37 = vadd.f32 -1.0, %v76_v36  ;;  %v80_v40 = vmul.f32 %v79_v39, %v65_v26  ;;  %v147_v39 = vld [vmem:[%s1760_s3 + $0x5] sm:$0x1] }
 0x21e   :  { %v78_v38 = vmul.f32 %v1160_v37, %v65_v26  ;;  %v82_v44 = vadd.f32 %v81_v41, %v80_v40 }
 0x220   :  { %83 = vrot.lane.b32.xlu0 %v78_v38, %s1352_s23 }
 0x292   :  { %v84_v42 = vpop.permute.xlu0 %83 }
 0x293   :  { %v85_v43 = vadd.f32 %v84_v42, %v78_v38 }
 0x295   :  { %v86_v45 = vmul.f32 %v85_v43, %v1388_v1 }
 0x297   :  { %v87_v46 = vadd.f32 %v86_v45, %v82_v44 }
 0x299   :  { %88 = vrot.lane.b32.xlu1 %v87_v46, %s1352_s23  ;;  %v90_v48 = vmul.f32 %v87_v46, %v87_v46 }
 0x30b   :  { %v89_v47 = vpop.permute.xlu1 %88 }
 0x30c   :  { %v91_v49 = vmul.f32 %v89_v47, %v89_v47 }
 0x30e   :  { %v92_v50 = vadd.f32 %v91_v49, %v90_v48 }
 0x310   :  { %v93_v51 = vadd.f32 1e-08, %v92_v50 }
 0x312   :  { %1218 = vrsqrt.f32 %v93_v51 }
 0x31c   :  { %v1219_v52 = vpop.eup %1218 }
 0x31d   :  { %v95_v53 = vmul.f32 %v1219_v52, %v1395_v11 }
 0x31f   :  { %v96_v54 = vsub.f32 1.0, %v95_v53 }
 0x321   :  { %v97_v55 = vmax.f32 %v96_v54, 0.0 }
 0x323   :  { %v98_v56 = vmul.f32 2.0, %v97_v55  ;;  %v101_v59 = vsub.f32 1.0, %v97_v55 }
 0x325   :  { %v1161_v57 = vadd.f32 -1.0, %v98_v56  ;;  %v102_v60 = vmul.f32 %v101_v59, %v87_v46  ;;  %v169_v59 = vld [vmem:[%s1760_s3 + $0x6] sm:$0x1] }
 0x327   :  { %v100_v58 = vmul.f32 %v1161_v57, %v87_v46  ;;  %v104_v0 = vadd.f32 %v103_v61, %v102_v60 }
 0x329   :  { %105 = vrot.lane.b32.xlu0 %v100_v58, %s1352_s23 }
 0x39b   :  { %v106_v62 = vpop.permute.xlu0 %105 }
 0x39c   :  { %v107_v63 = vadd.f32 %v106_v62, %v100_v58 }
 0x39e   :  { %v108_v2 = vmul.f32 %v107_v63, %v1388_v1 }
 0x3a0   :  { %v109_v3 = vadd.f32 %v108_v2, %v104_v0 }
 0x3a2   :  { %110 = vrot.lane.b32.xlu1 %v109_v3, %s1352_s23  ;;  %v112_v5 = vmul.f32 %v109_v3, %v109_v3 }
 0x414   :  { %v111_v4 = vpop.permute.xlu1 %110 }
 0x415   :  { %v113_v6 = vmul.f32 %v111_v4, %v111_v4 }
 0x417   :  { %v114_v7 = vadd.f32 %v113_v6, %v112_v5 }
 0x419   :  { %v115_v8 = vadd.f32 1e-08, %v114_v7 }
 0x41b   :  { %1220 = vrsqrt.f32 %v115_v8 }
 0x425   :  { %v1221_v9 = vpop.eup %1220 }
 0x426   :  { %v117_v10 = vmul.f32 %v1221_v9, %v1395_v11 }
 0x428   :  { %v118_v12 = vsub.f32 1.0, %v117_v10 }
 0x42a   :  { %v119_v13 = vmax.f32 %v118_v12, 0.0 }
 0x42c   :  { %v120_v14 = vmul.f32 2.0, %v119_v13  ;;  %v123_v17 = vsub.f32 1.0, %v119_v13 }
 0x42e   :  { %v1162_v15 = vadd.f32 -1.0, %v120_v14  ;;  %v124_v18 = vmul.f32 %v123_v17, %v109_v3  ;;  %v191_v17 = vld [vmem:[%s1760_s3 + $0x7] sm:$0x1] }
 0x430   :  { %v122_v16 = vmul.f32 %v1162_v15, %v109_v3  ;;  %v126_v22 = vadd.f32 %v125_v19, %v124_v18 }
 0x432   :  { %127 = vrot.lane.b32.xlu0 %v122_v16, %s1352_s23 }
 0x4a4   :  { %v128_v20 = vpop.permute.xlu0 %127 }
 0x4a5   :  { %v129_v21 = vadd.f32 %v128_v20, %v122_v16 }
 0x4a7   :  { %v130_v23 = vmul.f32 %v129_v21, %v1388_v1 }
 0x4a9   :  { %v131_v24 = vadd.f32 %v130_v23, %v126_v22 }
 0x4ab   :  { %132 = vrot.lane.b32.xlu1 %v131_v24, %s1352_s23  ;;  %v134_v26 = vmul.f32 %v131_v24, %v131_v24 }
 0x51d   :  { %v133_v25 = vpop.permute.xlu1 %132 }
 0x51e   :  { %v135_v27 = vmul.f32 %v133_v25, %v133_v25 }
 0x520   :  { %v136_v28 = vadd.f32 %v135_v27, %v134_v26 }
 0x522   :  { %v137_v29 = vadd.f32 1e-08, %v136_v28 }
 0x524   :  { %1222 = vrsqrt.f32 %v137_v29 }
 0x52e   :  { %v1223_v30 = vpop.eup %1222 }
 0x52f   :  { %v139_v31 = vmul.f32 %v1223_v30, %v1395_v11 }
 0x531   :  { %v140_v32 = vsub.f32 1.0, %v139_v31 }
 0x533   :  { %v141_v33 = vmax.f32 %v140_v32, 0.0 }
 0x535   :  { %v142_v34 = vmul.f32 2.0, %v141_v33  ;;  %v145_v37 = vsub.f32 1.0, %v141_v33 }
 0x537   :  { %v1163_v35 = vadd.f32 -1.0, %v142_v34  ;;  %v146_v38 = vmul.f32 %v145_v37, %v131_v24  ;;  %v213_v37 = vld [vmem:[%s1760_s3 + $0x8] sm:$0x1] }
 0x539   :  { %v144_v36 = vmul.f32 %v1163_v35, %v131_v24  ;;  %v148_v42 = vadd.f32 %v147_v39, %v146_v38 }
 0x53b   :  { %149 = vrot.lane.b32.xlu0 %v144_v36, %s1352_s23 }
 0x5ad   :  { %v150_v40 = vpop.permute.xlu0 %149 }
 0x5ae   :  { %v151_v41 = vadd.f32 %v150_v40, %v144_v36 }
 0x5b0   :  { %v152_v43 = vmul.f32 %v151_v41, %v1388_v1 }
 0x5b2   :  { %v153_v44 = vadd.f32 %v152_v43, %v148_v42 }
 0x5b4   :  { %154 = vrot.lane.b32.xlu1 %v153_v44, %s1352_s23  ;;  %v156_v46 = vmul.f32 %v153_v44, %v153_v44 }
 0x626   :  { %v155_v45 = vpop.permute.xlu1 %154 }
 0x627   :  { %v157_v47 = vmul.f32 %v155_v45, %v155_v45 }
 0x629   :  { %v158_v48 = vadd.f32 %v157_v47, %v156_v46 }
 0x62b   :  { %v159_v49 = vadd.f32 1e-08, %v158_v48 }
 0x62d   :  { %1224 = vrsqrt.f32 %v159_v49 }
 0x637   :  { %v1225_v50 = vpop.eup %1224 }
 0x638   :  { %v161_v51 = vmul.f32 %v1225_v50, %v1395_v11 }
 0x63a   :  { %v162_v52 = vsub.f32 1.0, %v161_v51 }
 0x63c   :  { %v163_v53 = vmax.f32 %v162_v52, 0.0 }
 0x63e   :  { %v164_v54 = vmul.f32 2.0, %v163_v53  ;;  %v167_v57 = vsub.f32 1.0, %v163_v53 }
 0x640   :  { %v1164_v55 = vadd.f32 -1.0, %v164_v54  ;;  %v168_v58 = vmul.f32 %v167_v57, %v153_v44  ;;  %v235_v57 = vld [vmem:[%s1760_s3 + $0x9] sm:$0x1] }
 0x642   :  { %v166_v56 = vmul.f32 %v1164_v55, %v153_v44  ;;  %v170_v62 = vadd.f32 %v169_v59, %v168_v58 }
 0x644   :  { %171 = vrot.lane.b32.xlu0 %v166_v56, %s1352_s23 }
 0x6b6   :  { %v172_v60 = vpop.permute.xlu0 %171 }
 0x6b7   :  { %v173_v61 = vadd.f32 %v172_v60, %v166_v56 }
 0x6b9   :  { %v174_v63 = vmul.f32 %v173_v61, %v1388_v1 }
 0x6bb   :  { %v175_v0 = vadd.f32 %v174_v63, %v170_v62 }
 0x6bd   :  { %176 = vrot.lane.b32.xlu1 %v175_v0, %s1352_s23  ;;  %v178_v3 = vmul.f32 %v175_v0, %v175_v0 }
 0x72f   :  { %v177_v2 = vpop.permute.xlu1 %176 }
 0x730   :  { %v179_v4 = vmul.f32 %v177_v2, %v177_v2 }
 0x732   :  { %v180_v5 = vadd.f32 %v179_v4, %v178_v3 }
 0x734   :  { %v181_v6 = vadd.f32 1e-08, %v180_v5 }
 0x736   :  { %1226 = vrsqrt.f32 %v181_v6 }
 0x740   :  { %v1227_v7 = vpop.eup %1226 }
 0x741   :  { %v183_v8 = vmul.f32 %v1227_v7, %v1395_v11 }
 0x743   :  { %v184_v9 = vsub.f32 1.0, %v183_v8 }
 0x745   :  { %v185_v10 = vmax.f32 %v184_v9, 0.0 }
 0x747   :  { %v186_v12 = vmul.f32 2.0, %v185_v10  ;;  %v189_v15 = vsub.f32 1.0, %v185_v10 }
 0x749   :  { %v1165_v13 = vadd.f32 -1.0, %v186_v12  ;;  %v190_v16 = vmul.f32 %v189_v15, %v175_v0  ;;  %v257_v15 = vld [vmem:[%s1760_s3 + $0xa] sm:$0x1] }
 0x74b   :  { %v188_v14 = vmul.f32 %v1165_v13, %v175_v0  ;;  %v192_v20 = vadd.f32 %v191_v17, %v190_v16 }
 0x74d   :  { %193 = vrot.lane.b32.xlu0 %v188_v14, %s1352_s23 }
 0x7bf   :  { %v194_v18 = vpop.permute.xlu0 %193 }
 0x7c0   :  { %v195_v19 = vadd.f32 %v194_v18, %v188_v14 }
 0x7c2   :  { %v196_v21 = vmul.f32 %v195_v19, %v1388_v1 }
 0x7c4   :  { %v197_v22 = vadd.f32 %v196_v21, %v192_v20 }
 0x7c6   :  { %198 = vrot.lane.b32.xlu1 %v197_v22, %s1352_s23  ;;  %v200_v24 = vmul.f32 %v197_v22, %v197_v22 }
 0x838   :  { %v199_v23 = vpop.permute.xlu1 %198 }
 0x839   :  { %v201_v25 = vmul.f32 %v199_v23, %v199_v23 }
 0x83b   :  { %v202_v26 = vadd.f32 %v201_v25, %v200_v24 }
 0x83d   :  { %v203_v27 = vadd.f32 1e-08, %v202_v26 }
 0x83f   :  { %1228 = vrsqrt.f32 %v203_v27 }
 0x849   :  { %v1229_v28 = vpop.eup %1228 }
 0x84a   :  { %v205_v29 = vmul.f32 %v1229_v28, %v1395_v11 }
 0x84c   :  { %v206_v30 = vsub.f32 1.0, %v205_v29 }
 0x84e   :  { %v207_v31 = vmax.f32 %v206_v30, 0.0 }
 0x850   :  { %v208_v32 = vmul.f32 2.0, %v207_v31  ;;  %v211_v35 = vsub.f32 1.0, %v207_v31 }
 0x852   :  { %v1166_v33 = vadd.f32 -1.0, %v208_v32  ;;  %v212_v36 = vmul.f32 %v211_v35, %v197_v22  ;;  %v279_v35 = vld [vmem:[%s1760_s3 + $0xb] sm:$0x1] }
 0x854   :  { %v210_v34 = vmul.f32 %v1166_v33, %v197_v22  ;;  %v214_v40 = vadd.f32 %v213_v37, %v212_v36 }
 0x856   :  { %215 = vrot.lane.b32.xlu0 %v210_v34, %s1352_s23 }
 0x8c8   :  { %v216_v38 = vpop.permute.xlu0 %215 }
 0x8c9   :  { %v217_v39 = vadd.f32 %v216_v38, %v210_v34 }
 0x8cb   :  { %v218_v41 = vmul.f32 %v217_v39, %v1388_v1 }
 0x8cd   :  { %v219_v42 = vadd.f32 %v218_v41, %v214_v40 }
 0x8cf   :  { %220 = vrot.lane.b32.xlu1 %v219_v42, %s1352_s23  ;;  %v222_v44 = vmul.f32 %v219_v42, %v219_v42 }
 0x941   :  { %v221_v43 = vpop.permute.xlu1 %220 }
 0x942   :  { %v223_v45 = vmul.f32 %v221_v43, %v221_v43 }
 0x944   :  { %v224_v46 = vadd.f32 %v223_v45, %v222_v44 }
 0x946   :  { %v225_v47 = vadd.f32 1e-08, %v224_v46 }
 0x948   :  { %1230 = vrsqrt.f32 %v225_v47 }
 0x952   :  { %v1231_v48 = vpop.eup %1230 }
 0x953   :  { %v227_v49 = vmul.f32 %v1231_v48, %v1395_v11 }
 0x955   :  { %v228_v50 = vsub.f32 1.0, %v227_v49 }
 0x957   :  { %v229_v51 = vmax.f32 %v228_v50, 0.0 }
 0x959   :  { %v230_v52 = vmul.f32 2.0, %v229_v51  ;;  %v233_v55 = vsub.f32 1.0, %v229_v51 }
 0x95b   :  { %v1167_v53 = vadd.f32 -1.0, %v230_v52  ;;  %v234_v56 = vmul.f32 %v233_v55, %v219_v42  ;;  %v301_v55 = vld [vmem:[%s1760_s3 + $0xc] sm:$0x1] }
 0x95d   :  { %v232_v54 = vmul.f32 %v1167_v53, %v219_v42  ;;  %v236_v60 = vadd.f32 %v235_v57, %v234_v56 }
 0x95f   :  { %237 = vrot.lane.b32.xlu0 %v232_v54, %s1352_s23 }
 0x9d1   :  { %v238_v58 = vpop.permute.xlu0 %237 }
 0x9d2   :  { %v239_v59 = vadd.f32 %v238_v58, %v232_v54 }
 0x9d4   :  { %v240_v61 = vmul.f32 %v239_v59, %v1388_v1 }
 0x9d6   :  { %v241_v62 = vadd.f32 %v240_v61, %v236_v60 }
 0x9d8   :  { %242 = vrot.lane.b32.xlu1 %v241_v62, %s1352_s23  ;;  %v244_v0 = vmul.f32 %v241_v62, %v241_v62 }
 0xa4a   :  { %v243_v63 = vpop.permute.xlu1 %242 }
 0xa4b   :  { %v245_v2 = vmul.f32 %v243_v63, %v243_v63 }
 0xa4d   :  { %v246_v3 = vadd.f32 %v245_v2, %v244_v0 }
 0xa4f   :  { %v247_v4 = vadd.f32 1e-08, %v246_v3 }
 0xa51   :  { %1232 = vrsqrt.f32 %v247_v4 }
 0xa5b   :  { %v1233_v5 = vpop.eup %1232 }
 0xa5c   :  { %v249_v6 = vmul.f32 %v1233_v5, %v1395_v11 }
 0xa5e   :  { %v250_v7 = vsub.f32 1.0, %v249_v6 }
 0xa60   :  { %v251_v8 = vmax.f32 %v250_v7, 0.0 }
 0xa62   :  { %v252_v9 = vmul.f32 2.0, %v251_v8  ;;  %v255_v13 = vsub.f32 1.0, %v251_v8 }
 0xa64   :  { %v1168_v10 = vadd.f32 -1.0, %v252_v9  ;;  %v256_v14 = vmul.f32 %v255_v13, %v241_v62  ;;  %v323_v13 = vld [vmem:[%s1760_s3 + $0xd] sm:$0x1] }
 0xa66   :  { %v254_v12 = vmul.f32 %v1168_v10, %v241_v62  ;;  %v258_v18 = vadd.f32 %v257_v15, %v256_v14 }
 0xa68   :  { %259 = vrot.lane.b32.xlu0 %v254_v12, %s1352_s23 }
 0xada   :  { %v260_v16 = vpop.permute.xlu0 %259 }
 0xadb   :  { %v261_v17 = vadd.f32 %v260_v16, %v254_v12 }
 0xadd   :  { %v262_v19 = vmul.f32 %v261_v17, %v1388_v1 }
 0xadf   :  { %v263_v20 = vadd.f32 %v262_v19, %v258_v18 }
 0xae1   :  { %264 = vrot.lane.b32.xlu1 %v263_v20, %s1352_s23  ;;  %v266_v22 = vmul.f32 %v263_v20, %v263_v20 }
 0xb53   :  { %v265_v21 = vpop.permute.xlu1 %264 }
 0xb54   :  { %v267_v23 = vmul.f32 %v265_v21, %v265_v21 }
 0xb56   :  { %v268_v24 = vadd.f32 %v267_v23, %v266_v22 }
 0xb58   :  { %v269_v25 = vadd.f32 1e-08, %v268_v24 }
 0xb5a   :  { %1234 = vrsqrt.f32 %v269_v25 }
 0xb64   :  { %v1235_v26 = vpop.eup %1234 }
 0xb65   :  { %v271_v27 = vmul.f32 %v1235_v26, %v1395_v11 }
 0xb67   :  { %v272_v28 = vsub.f32 1.0, %v271_v27 }
 0xb69   :  { %v273_v29 = vmax.f32 %v272_v28, 0.0 }
 0xb6b   :  { %v274_v30 = vmul.f32 2.0, %v273_v29  ;;  %v277_v33 = vsub.f32 1.0, %v273_v29 }
 0xb6d   :  { %v1169_v31 = vadd.f32 -1.0, %v274_v30  ;;  %v278_v34 = vmul.f32 %v277_v33, %v263_v20  ;;  %v345_v33 = vld [vmem:[%s1760_s3 + $0xe] sm:$0x1] }
 0xb6f   :  { %v276_v32 = vmul.f32 %v1169_v31, %v263_v20  ;;  %v280_v38 = vadd.f32 %v279_v35, %v278_v34 }
 0xb71   :  { %281 = vrot.lane.b32.xlu0 %v276_v32, %s1352_s23 }
 0xbe3   :  { %v282_v36 = vpop.permute.xlu0 %281 }
 0xbe4   :  { %v283_v37 = vadd.f32 %v282_v36, %v276_v32 }
 0xbe6   :  { %v284_v39 = vmul.f32 %v283_v37, %v1388_v1 }
 0xbe8   :  { %v285_v40 = vadd.f32 %v284_v39, %v280_v38 }
 0xbea   :  { %286 = vrot.lane.b32.xlu1 %v285_v40, %s1352_s23  ;;  %v288_v42 = vmul.f32 %v285_v40, %v285_v40 }
 0xc5c   :  { %v287_v41 = vpop.permute.xlu1 %286 }
 0xc5d   :  { %v289_v43 = vmul.f32 %v287_v41, %v287_v41 }
 0xc5f   :  { %v290_v44 = vadd.f32 %v289_v43, %v288_v42 }
 0xc61   :  { %v291_v45 = vadd.f32 1e-08, %v290_v44 }
 0xc63   :  { %1236 = vrsqrt.f32 %v291_v45 }
 0xc6d   :  { %v1237_v46 = vpop.eup %1236 }
 0xc6e   :  { %v293_v47 = vmul.f32 %v1237_v46, %v1395_v11 }
 0xc70   :  { %v294_v48 = vsub.f32 1.0, %v293_v47 }
 0xc72   :  { %v295_v49 = vmax.f32 %v294_v48, 0.0 }
 0xc74   :  { %v296_v50 = vmul.f32 2.0, %v295_v49  ;;  %v299_v53 = vsub.f32 1.0, %v295_v49 }
 0xc76   :  { %v1170_v51 = vadd.f32 -1.0, %v296_v50  ;;  %v300_v54 = vmul.f32 %v299_v53, %v285_v40  ;;  %v367_v53 = vld [vmem:[%s1760_s3 + $0xf] sm:$0x1] }
 0xc78   :  { %v298_v52 = vmul.f32 %v1170_v51, %v285_v40  ;;  %v302_v58 = vadd.f32 %v301_v55, %v300_v54 }
 0xc7a   :  { %303 = vrot.lane.b32.xlu0 %v298_v52, %s1352_s23 }
 0xcec   :  { %v304_v56 = vpop.permute.xlu0 %303 }
 0xced   :  { %v305_v57 = vadd.f32 %v304_v56, %v298_v52 }
 0xcef   :  { %v306_v59 = vmul.f32 %v305_v57, %v1388_v1 }
 0xcf1   :  { %v307_v60 = vadd.f32 %v306_v59, %v302_v58 }
 0xcf3   :  { %308 = vrot.lane.b32.xlu1 %v307_v60, %s1352_s23  ;;  %v310_v62 = vmul.f32 %v307_v60, %v307_v60 }
 0xd65   :  { %v309_v61 = vpop.permute.xlu1 %308 }
 0xd66   :  { %v311_v63 = vmul.f32 %v309_v61, %v309_v61 }
 0xd68   :  { %v312_v0 = vadd.f32 %v311_v63, %v310_v62 }
 0xd6a   :  { %v313_v2 = vadd.f32 1e-08, %v312_v0 }
 0xd6c   :  { %1238 = vrsqrt.f32 %v313_v2 }
 0xd76   :  { %v1239_v3 = vpop.eup %1238 }
 0xd77   :  { %v315_v4 = vmul.f32 %v1239_v3, %v1395_v11 }
 0xd79   :  { %v316_v5 = vsub.f32 1.0, %v315_v4 }
 0xd7b   :  { %v317_v6 = vmax.f32 %v316_v5, 0.0 }
 0xd7d   :  { %v318_v7 = vmul.f32 2.0, %v317_v6  ;;  %v321_v10 = vsub.f32 1.0, %v317_v6 }
 0xd7f   :  { %v1171_v8 = vadd.f32 -1.0, %v318_v7  ;;  %v322_v12 = vmul.f32 %v321_v10, %v307_v60  ;;  %v389_v10 = vld [vmem:[%s1760_s3 + $0x10] sm:$0x1] }
 0xd81   :  { %v320_v9 = vmul.f32 %v1171_v8, %v307_v60  ;;  %v324_v16 = vadd.f32 %v323_v13, %v322_v12 }
 0xd83   :  { %325 = vrot.lane.b32.xlu0 %v320_v9, %s1352_s23 }
 0xdf5   :  { %v326_v14 = vpop.permute.xlu0 %325 }
 0xdf6   :  { %v327_v15 = vadd.f32 %v326_v14, %v320_v9 }
 0xdf8   :  { %v328_v17 = vmul.f32 %v327_v15, %v1388_v1 }
 0xdfa   :  { %v329_v18 = vadd.f32 %v328_v17, %v324_v16 }
 0xdfc   :  { %330 = vrot.lane.b32.xlu1 %v329_v18, %s1352_s23  ;;  %v332_v20 = vmul.f32 %v329_v18, %v329_v18 }
 0xe6e   :  { %v331_v19 = vpop.permute.xlu1 %330 }
 0xe6f   :  { %v333_v21 = vmul.f32 %v331_v19, %v331_v19 }
 0xe71   :  { %v334_v22 = vadd.f32 %v333_v21, %v332_v20 }
 0xe73   :  { %v335_v23 = vadd.f32 1e-08, %v334_v22 }
 0xe75   :  { %1240 = vrsqrt.f32 %v335_v23 }
 0xe7f   :  { %v1241_v24 = vpop.eup %1240 }
 0xe80   :  { %v337_v25 = vmul.f32 %v1241_v24, %v1395_v11 }
 0xe82   :  { %v338_v26 = vsub.f32 1.0, %v337_v25 }
 0xe84   :  { %v339_v27 = vmax.f32 %v338_v26, 0.0 }
 0xe86   :  { %v340_v28 = vmul.f32 2.0, %v339_v27  ;;  %v343_v31 = vsub.f32 1.0, %v339_v27 }
 0xe88   :  { %v1172_v29 = vadd.f32 -1.0, %v340_v28  ;;  %v344_v32 = vmul.f32 %v343_v31, %v329_v18  ;;  %v411_v31 = vld [vmem:[%s1760_s3 + $0x11] sm:$0x1] }
 0xe8a   :  { %v342_v30 = vmul.f32 %v1172_v29, %v329_v18  ;;  %v346_v36 = vadd.f32 %v345_v33, %v344_v32 }
 0xe8c   :  { %347 = vrot.lane.b32.xlu0 %v342_v30, %s1352_s23 }
 0xefe   :  { %v348_v34 = vpop.permute.xlu0 %347 }
 0xeff   :  { %v349_v35 = vadd.f32 %v348_v34, %v342_v30 }
 0xf01   :  { %v350_v37 = vmul.f32 %v349_v35, %v1388_v1 }
 0xf03   :  { %v351_v38 = vadd.f32 %v350_v37, %v346_v36 }
 0xf05   :  { %352 = vrot.lane.b32.xlu1 %v351_v38, %s1352_s23  ;;  %v354_v40 = vmul.f32 %v351_v38, %v351_v38 }
 0xf77   :  { %v353_v39 = vpop.permute.xlu1 %352 }
 0xf78   :  { %v355_v41 = vmul.f32 %v353_v39, %v353_v39 }
 0xf7a   :  { %v356_v42 = vadd.f32 %v355_v41, %v354_v40 }
 0xf7c   :  { %v357_v43 = vadd.f32 1e-08, %v356_v42 }
 0xf7e   :  { %1242 = vrsqrt.f32 %v357_v43 }
 0xf88   :  { %v1243_v44 = vpop.eup %1242 }
 0xf89   :  { %v359_v45 = vmul.f32 %v1243_v44, %v1395_v11 }
 0xf8b   :  { %v360_v46 = vsub.f32 1.0, %v359_v45 }
 0xf8d   :  { %v361_v47 = vmax.f32 %v360_v46, 0.0 }
 0xf8f   :  { %v362_v48 = vmul.f32 2.0, %v361_v47  ;;  %v365_v51 = vsub.f32 1.0, %v361_v47 }
 0xf91   :  { %v1173_v49 = vadd.f32 -1.0, %v362_v48  ;;  %v366_v52 = vmul.f32 %v365_v51, %v351_v38  ;;  %v433_v51 = vld [vmem:[%s1760_s3 + $0x12] sm:$0x1] }
 0xf93   :  { %v364_v50 = vmul.f32 %v1173_v49, %v351_v38  ;;  %v368_v56 = vadd.f32 %v367_v53, %v366_v52 }
 0xf95   :  { %369 = vrot.lane.b32.xlu0 %v364_v50, %s1352_s23 }
0x1007   :  { %v370_v54 = vpop.permute.xlu0 %369 }
0x1008   :  { %v371_v55 = vadd.f32 %v370_v54, %v364_v50 }
0x100a   :  { %v372_v57 = vmul.f32 %v371_v55, %v1388_v1 }
0x100c   :  { %v373_v58 = vadd.f32 %v372_v57, %v368_v56 }
0x100e   :  { %374 = vrot.lane.b32.xlu1 %v373_v58, %s1352_s23  ;;  %v376_v60 = vmul.f32 %v373_v58, %v373_v58 }
0x1080   :  { %v375_v59 = vpop.permute.xlu1 %374 }
0x1081   :  { %v377_v61 = vmul.f32 %v375_v59, %v375_v59 }
0x1083   :  { %v378_v62 = vadd.f32 %v377_v61, %v376_v60 }
0x1085   :  { %v379_v63 = vadd.f32 1e-08, %v378_v62 }
0x1087   :  { %1244 = vrsqrt.f32 %v379_v63 }
0x1091   :  { %v1245_v0 = vpop.eup %1244 }
0x1092   :  { %v381_v2 = vmul.f32 %v1245_v0, %v1395_v11 }
0x1094   :  { %v382_v3 = vsub.f32 1.0, %v381_v2 }
0x1096   :  { %v383_v4 = vmax.f32 %v382_v3, 0.0 }
0x1098   :  { %v384_v5 = vmul.f32 2.0, %v383_v4  ;;  %v387_v8 = vsub.f32 1.0, %v383_v4 }
0x109a   :  { %v1174_v6 = vadd.f32 -1.0, %v384_v5  ;;  %v388_v9 = vmul.f32 %v387_v8, %v373_v58  ;;  %v455_v8 = vld [vmem:[%s1760_s3 + $0x13] sm:$0x1] }
0x109c   :  { %v386_v7 = vmul.f32 %v1174_v6, %v373_v58  ;;  %v390_v14 = vadd.f32 %v389_v10, %v388_v9 }
0x109e   :  { %391 = vrot.lane.b32.xlu0 %v386_v7, %s1352_s23 }
0x1110   :  { %v392_v12 = vpop.permute.xlu0 %391 }
0x1111   :  { %v393_v13 = vadd.f32 %v392_v12, %v386_v7 }
0x1113   :  { %v394_v15 = vmul.f32 %v393_v13, %v1388_v1 }
0x1115   :  { %v395_v16 = vadd.f32 %v394_v15, %v390_v14 }
0x1117   :  { %396 = vrot.lane.b32.xlu1 %v395_v16, %s1352_s23  ;;  %v398_v18 = vmul.f32 %v395_v16, %v395_v16 }
0x1189   :  { %v397_v17 = vpop.permute.xlu1 %396 }
0x118a   :  { %v399_v19 = vmul.f32 %v397_v17, %v397_v17 }
0x118c   :  { %v400_v20 = vadd.f32 %v399_v19, %v398_v18 }
0x118e   :  { %v401_v21 = vadd.f32 1e-08, %v400_v20 }
0x1190   :  { %1246 = vrsqrt.f32 %v401_v21 }
0x119a   :  { %v1247_v22 = vpop.eup %1246 }
0x119b   :  { %v403_v23 = vmul.f32 %v1247_v22, %v1395_v11 }
0x119d   :  { %v404_v24 = vsub.f32 1.0, %v403_v23 }
0x119f   :  { %v405_v25 = vmax.f32 %v404_v24, 0.0 }
0x11a1   :  { %v406_v26 = vmul.f32 2.0, %v405_v25  ;;  %v409_v29 = vsub.f32 1.0, %v405_v25 }
0x11a3   :  { %v1175_v27 = vadd.f32 -1.0, %v406_v26  ;;  %v410_v30 = vmul.f32 %v409_v29, %v395_v16  ;;  %v477_v29 = vld [vmem:[%s1760_s3 + $0x14] sm:$0x1] }
0x11a5   :  { %v408_v28 = vmul.f32 %v1175_v27, %v395_v16  ;;  %v412_v34 = vadd.f32 %v411_v31, %v410_v30 }
0x11a7   :  { %413 = vrot.lane.b32.xlu0 %v408_v28, %s1352_s23 }
0x1219   :  { %v414_v32 = vpop.permute.xlu0 %413 }
0x121a   :  { %v415_v33 = vadd.f32 %v414_v32, %v408_v28 }
0x121c   :  { %v416_v35 = vmul.f32 %v415_v33, %v1388_v1 }
0x121e   :  { %v417_v36 = vadd.f32 %v416_v35, %v412_v34 }
0x1220   :  { %418 = vrot.lane.b32.xlu1 %v417_v36, %s1352_s23  ;;  %v420_v38 = vmul.f32 %v417_v36, %v417_v36 }
0x1292   :  { %v419_v37 = vpop.permute.xlu1 %418 }
0x1293   :  { %v421_v39 = vmul.f32 %v419_v37, %v419_v37 }
0x1295   :  { %v422_v40 = vadd.f32 %v421_v39, %v420_v38 }
0x1297   :  { %v423_v41 = vadd.f32 1e-08, %v422_v40 }
0x1299   :  { %1248 = vrsqrt.f32 %v423_v41 }
0x12a3   :  { %v1249_v42 = vpop.eup %1248 }
0x12a4   :  { %v425_v43 = vmul.f32 %v1249_v42, %v1395_v11 }
0x12a6   :  { %v426_v44 = vsub.f32 1.0, %v425_v43 }
0x12a8   :  { %v427_v45 = vmax.f32 %v426_v44, 0.0 }
0x12aa   :  { %v428_v46 = vmul.f32 2.0, %v427_v45  ;;  %v431_v49 = vsub.f32 1.0, %v427_v45 }
0x12ac   :  { %v1176_v47 = vadd.f32 -1.0, %v428_v46  ;;  %v432_v50 = vmul.f32 %v431_v49, %v417_v36  ;;  %v499_v49 = vld [vmem:[%s1760_s3 + $0x15] sm:$0x1] }
0x12ae   :  { %v430_v48 = vmul.f32 %v1176_v47, %v417_v36  ;;  %v434_v54 = vadd.f32 %v433_v51, %v432_v50 }
0x12b0   :  { %435 = vrot.lane.b32.xlu0 %v430_v48, %s1352_s23 }
0x1322   :  { %v436_v52 = vpop.permute.xlu0 %435 }
0x1323   :  { %v437_v53 = vadd.f32 %v436_v52, %v430_v48 }
0x1325   :  { %v438_v55 = vmul.f32 %v437_v53, %v1388_v1 }
0x1327   :  { %v439_v56 = vadd.f32 %v438_v55, %v434_v54 }
0x1329   :  { %440 = vrot.lane.b32.xlu1 %v439_v56, %s1352_s23  ;;  %v442_v58 = vmul.f32 %v439_v56, %v439_v56 }
0x139b   :  { %v441_v57 = vpop.permute.xlu1 %440 }
0x139c   :  { %v443_v59 = vmul.f32 %v441_v57, %v441_v57 }
0x139e   :  { %v444_v60 = vadd.f32 %v443_v59, %v442_v58 }
0x13a0   :  { %v445_v61 = vadd.f32 1e-08, %v444_v60 }
0x13a2   :  { %1250 = vrsqrt.f32 %v445_v61 }
0x13ac   :  { %v1251_v62 = vpop.eup %1250 }
0x13ad   :  { %v447_v63 = vmul.f32 %v1251_v62, %v1395_v11 }
0x13af   :  { %v448_v0 = vsub.f32 1.0, %v447_v63 }
0x13b1   :  { %v449_v2 = vmax.f32 %v448_v0, 0.0 }
0x13b3   :  { %v450_v3 = vmul.f32 2.0, %v449_v2  ;;  %v453_v6 = vsub.f32 1.0, %v449_v2 }
0x13b5   :  { %v1177_v4 = vadd.f32 -1.0, %v450_v3  ;;  %v454_v7 = vmul.f32 %v453_v6, %v439_v56  ;;  %v521_v6 = vld [vmem:[%s1760_s3 + $0x16] sm:$0x1] }
0x13b7   :  { %v452_v5 = vmul.f32 %v1177_v4, %v439_v56  ;;  %v456_v12 = vadd.f32 %v455_v8, %v454_v7 }
0x13b9   :  { %457 = vrot.lane.b32.xlu0 %v452_v5, %s1352_s23 }
0x142b   :  { %v458_v9 = vpop.permute.xlu0 %457 }
0x142c   :  { %v459_v10 = vadd.f32 %v458_v9, %v452_v5 }
0x142e   :  { %v460_v13 = vmul.f32 %v459_v10, %v1388_v1 }
0x1430   :  { %v461_v14 = vadd.f32 %v460_v13, %v456_v12 }
0x1432   :  { %462 = vrot.lane.b32.xlu1 %v461_v14, %s1352_s23  ;;  %v464_v16 = vmul.f32 %v461_v14, %v461_v14 }
0x14a4   :  { %v463_v15 = vpop.permute.xlu1 %462 }
0x14a5   :  { %v465_v17 = vmul.f32 %v463_v15, %v463_v15 }
0x14a7   :  { %v466_v18 = vadd.f32 %v465_v17, %v464_v16 }
0x14a9   :  { %v467_v19 = vadd.f32 1e-08, %v466_v18 }
0x14ab   :  { %1252 = vrsqrt.f32 %v467_v19 }
0x14b5   :  { %v1253_v20 = vpop.eup %1252 }
0x14b6   :  { %v469_v21 = vmul.f32 %v1253_v20, %v1395_v11 }
0x14b8   :  { %v470_v22 = vsub.f32 1.0, %v469_v21 }
0x14ba   :  { %v471_v23 = vmax.f32 %v470_v22, 0.0 }
0x14bc   :  { %v472_v24 = vmul.f32 2.0, %v471_v23  ;;  %v475_v27 = vsub.f32 1.0, %v471_v23 }
0x14be   :  { %v1178_v25 = vadd.f32 -1.0, %v472_v24  ;;  %v476_v28 = vmul.f32 %v475_v27, %v461_v14  ;;  %v543_v27 = vld [vmem:[%s1760_s3 + $0x17] sm:$0x1] }
0x14c0   :  { %v474_v26 = vmul.f32 %v1178_v25, %v461_v14  ;;  %v478_v32 = vadd.f32 %v477_v29, %v476_v28 }
0x14c2   :  { %479 = vrot.lane.b32.xlu0 %v474_v26, %s1352_s23 }
0x1534   :  { %v480_v30 = vpop.permute.xlu0 %479 }
0x1535   :  { %v481_v31 = vadd.f32 %v480_v30, %v474_v26 }
0x1537   :  { %v482_v33 = vmul.f32 %v481_v31, %v1388_v1 }
0x1539   :  { %v483_v34 = vadd.f32 %v482_v33, %v478_v32 }
0x153b   :  { %484 = vrot.lane.b32.xlu1 %v483_v34, %s1352_s23  ;;  %v486_v36 = vmul.f32 %v483_v34, %v483_v34 }
0x15ad   :  { %v485_v35 = vpop.permute.xlu1 %484 }
0x15ae   :  { %v487_v37 = vmul.f32 %v485_v35, %v485_v35 }
0x15b0   :  { %v488_v38 = vadd.f32 %v487_v37, %v486_v36 }
0x15b2   :  { %v489_v39 = vadd.f32 1e-08, %v488_v38 }
0x15b4   :  { %1254 = vrsqrt.f32 %v489_v39 }
0x15be   :  { %v1255_v40 = vpop.eup %1254 }
0x15bf   :  { %v491_v41 = vmul.f32 %v1255_v40, %v1395_v11 }
0x15c1   :  { %v492_v42 = vsub.f32 1.0, %v491_v41 }
0x15c3   :  { %v493_v43 = vmax.f32 %v492_v42, 0.0 }
0x15c5   :  { %v494_v44 = vmul.f32 2.0, %v493_v43  ;;  %v497_v47 = vsub.f32 1.0, %v493_v43 }
0x15c7   :  { %v1179_v45 = vadd.f32 -1.0, %v494_v44  ;;  %v498_v48 = vmul.f32 %v497_v47, %v483_v34  ;;  %v565_v47 = vld [vmem:[%s1760_s3 + $0x18] sm:$0x1] }
0x15c9   :  { %v496_v46 = vmul.f32 %v1179_v45, %v483_v34  ;;  %v500_v52 = vadd.f32 %v499_v49, %v498_v48 }
0x15cb   :  { %501 = vrot.lane.b32.xlu0 %v496_v46, %s1352_s23 }
0x163d   :  { %v502_v50 = vpop.permute.xlu0 %501 }
0x163e   :  { %v503_v51 = vadd.f32 %v502_v50, %v496_v46 }
0x1640   :  { %v504_v53 = vmul.f32 %v503_v51, %v1388_v1 }
0x1642   :  { %v505_v54 = vadd.f32 %v504_v53, %v500_v52 }
0x1644   :  { %506 = vrot.lane.b32.xlu1 %v505_v54, %s1352_s23  ;;  %v508_v56 = vmul.f32 %v505_v54, %v505_v54 }
0x16b6   :  { %v507_v55 = vpop.permute.xlu1 %506 }
0x16b7   :  { %v509_v57 = vmul.f32 %v507_v55, %v507_v55 }
0x16b9   :  { %v510_v58 = vadd.f32 %v509_v57, %v508_v56 }
0x16bb   :  { %v511_v59 = vadd.f32 1e-08, %v510_v58 }
0x16bd   :  { %1256 = vrsqrt.f32 %v511_v59 }
0x16c7   :  { %v1257_v60 = vpop.eup %1256 }
0x16c8   :  { %v513_v61 = vmul.f32 %v1257_v60, %v1395_v11 }
0x16ca   :  { %v514_v62 = vsub.f32 1.0, %v513_v61 }
0x16cc   :  { %v515_v63 = vmax.f32 %v514_v62, 0.0 }
0x16ce   :  { %v516_v0 = vmul.f32 2.0, %v515_v63  ;;  %v519_v4 = vsub.f32 1.0, %v515_v63 }
0x16d0   :  { %v1180_v2 = vadd.f32 -1.0, %v516_v0  ;;  %v520_v5 = vmul.f32 %v519_v4, %v505_v54  ;;  %v587_v4 = vld [vmem:[%s1760_s3 + $0x19] sm:$0x1] }
0x16d2   :  { %v518_v3 = vmul.f32 %v1180_v2, %v505_v54  ;;  %v522_v9 = vadd.f32 %v521_v6, %v520_v5 }
0x16d4   :  { %523 = vrot.lane.b32.xlu0 %v518_v3, %s1352_s23 }
0x1746   :  { %v524_v7 = vpop.permute.xlu0 %523 }
0x1747   :  { %v525_v8 = vadd.f32 %v524_v7, %v518_v3 }
0x1749   :  { %v526_v10 = vmul.f32 %v525_v8, %v1388_v1 }
0x174b   :  { %v527_v12 = vadd.f32 %v526_v10, %v522_v9 }
0x174d   :  { %528 = vrot.lane.b32.xlu1 %v527_v12, %s1352_s23  ;;  %v530_v14 = vmul.f32 %v527_v12, %v527_v12 }
0x17bf   :  { %v529_v13 = vpop.permute.xlu1 %528 }
0x17c0   :  { %v531_v15 = vmul.f32 %v529_v13, %v529_v13 }
0x17c2   :  { %v532_v16 = vadd.f32 %v531_v15, %v530_v14 }
0x17c4   :  { %v533_v17 = vadd.f32 1e-08, %v532_v16 }
0x17c6   :  { %1258 = vrsqrt.f32 %v533_v17 }
0x17d0   :  { %v1259_v18 = vpop.eup %1258 }
0x17d1   :  { %v535_v19 = vmul.f32 %v1259_v18, %v1395_v11 }
0x17d3   :  { %v536_v20 = vsub.f32 1.0, %v535_v19 }
0x17d5   :  { %v537_v21 = vmax.f32 %v536_v20, 0.0 }
0x17d7   :  { %v538_v22 = vmul.f32 2.0, %v537_v21  ;;  %v541_v25 = vsub.f32 1.0, %v537_v21 }
0x17d9   :  { %v1181_v23 = vadd.f32 -1.0, %v538_v22  ;;  %v542_v26 = vmul.f32 %v541_v25, %v527_v12  ;;  %v609_v25 = vld [vmem:[%s1760_s3 + $0x1a] sm:$0x1] }
0x17db   :  { %v540_v24 = vmul.f32 %v1181_v23, %v527_v12  ;;  %v544_v30 = vadd.f32 %v543_v27, %v542_v26 }
0x17dd   :  { %545 = vrot.lane.b32.xlu0 %v540_v24, %s1352_s23 }
0x184f   :  { %v546_v28 = vpop.permute.xlu0 %545 }
0x1850   :  { %v547_v29 = vadd.f32 %v546_v28, %v540_v24 }
0x1852   :  { %v548_v31 = vmul.f32 %v547_v29, %v1388_v1 }
0x1854   :  { %v549_v32 = vadd.f32 %v548_v31, %v544_v30 }
0x1856   :  { %550 = vrot.lane.b32.xlu1 %v549_v32, %s1352_s23  ;;  %v552_v34 = vmul.f32 %v549_v32, %v549_v32 }
0x18c8   :  { %v551_v33 = vpop.permute.xlu1 %550 }
0x18c9   :  { %v553_v35 = vmul.f32 %v551_v33, %v551_v33 }
0x18cb   :  { %v554_v36 = vadd.f32 %v553_v35, %v552_v34 }
0x18cd   :  { %v555_v37 = vadd.f32 1e-08, %v554_v36 }
0x18cf   :  { %1260 = vrsqrt.f32 %v555_v37 }
0x18d9   :  { %v1261_v38 = vpop.eup %1260 }
0x18da   :  { %v557_v39 = vmul.f32 %v1261_v38, %v1395_v11 }
0x18dc   :  { %v558_v40 = vsub.f32 1.0, %v557_v39 }
0x18de   :  { %v559_v41 = vmax.f32 %v558_v40, 0.0 }
0x18e0   :  { %v560_v42 = vmul.f32 2.0, %v559_v41  ;;  %v563_v45 = vsub.f32 1.0, %v559_v41 }
0x18e2   :  { %v1182_v43 = vadd.f32 -1.0, %v560_v42  ;;  %v564_v46 = vmul.f32 %v563_v45, %v549_v32  ;;  %v631_v45 = vld [vmem:[%s1760_s3 + $0x1b] sm:$0x1] }
0x18e4   :  { %v562_v44 = vmul.f32 %v1182_v43, %v549_v32  ;;  %v566_v50 = vadd.f32 %v565_v47, %v564_v46 }
0x18e6   :  { %567 = vrot.lane.b32.xlu0 %v562_v44, %s1352_s23 }
0x1958   :  { %v568_v48 = vpop.permute.xlu0 %567 }
0x1959   :  { %v569_v49 = vadd.f32 %v568_v48, %v562_v44 }
0x195b   :  { %v570_v51 = vmul.f32 %v569_v49, %v1388_v1 }
0x195d   :  { %v571_v52 = vadd.f32 %v570_v51, %v566_v50 }
0x195f   :  { %572 = vrot.lane.b32.xlu1 %v571_v52, %s1352_s23  ;;  %v574_v54 = vmul.f32 %v571_v52, %v571_v52 }
0x19d1   :  { %v573_v53 = vpop.permute.xlu1 %572 }
0x19d2   :  { %v575_v55 = vmul.f32 %v573_v53, %v573_v53 }
0x19d4   :  { %v576_v56 = vadd.f32 %v575_v55, %v574_v54 }
0x19d6   :  { %v577_v57 = vadd.f32 1e-08, %v576_v56 }
0x19d8   :  { %1262 = vrsqrt.f32 %v577_v57 }
0x19e2   :  { %v1263_v58 = vpop.eup %1262 }
0x19e3   :  { %v579_v59 = vmul.f32 %v1263_v58, %v1395_v11 }
0x19e5   :  { %v580_v60 = vsub.f32 1.0, %v579_v59 }
0x19e7   :  { %v581_v61 = vmax.f32 %v580_v60, 0.0 }
0x19e9   :  { %v582_v62 = vmul.f32 2.0, %v581_v61  ;;  %v585_v2 = vsub.f32 1.0, %v581_v61 }
0x19eb   :  { %v1183_v63 = vadd.f32 -1.0, %v582_v62  ;;  %v586_v3 = vmul.f32 %v585_v2, %v571_v52  ;;  %v653_v2 = vld [vmem:[%s1760_s3 + $0x1c] sm:$0x1] }
0x19ed   :  { %v584_v0 = vmul.f32 %v1183_v63, %v571_v52  ;;  %v588_v7 = vadd.f32 %v587_v4, %v586_v3 }
0x19ef   :  { %589 = vrot.lane.b32.xlu0 %v584_v0, %s1352_s23 }
0x1a61   :  { %v590_v5 = vpop.permute.xlu0 %589 }
0x1a62   :  { %v591_v6 = vadd.f32 %v590_v5, %v584_v0 }
0x1a64   :  { %v592_v8 = vmul.f32 %v591_v6, %v1388_v1 }
0x1a66   :  { %v593_v9 = vadd.f32 %v592_v8, %v588_v7 }
0x1a68   :  { %594 = vrot.lane.b32.xlu1 %v593_v9, %s1352_s23  ;;  %v596_v12 = vmul.f32 %v593_v9, %v593_v9 }
0x1ada   :  { %v595_v10 = vpop.permute.xlu1 %594 }
0x1adb   :  { %v597_v13 = vmul.f32 %v595_v10, %v595_v10 }
0x1add   :  { %v598_v14 = vadd.f32 %v597_v13, %v596_v12 }
0x1adf   :  { %v599_v15 = vadd.f32 1e-08, %v598_v14 }
0x1ae1   :  { %1264 = vrsqrt.f32 %v599_v15 }
0x1aeb   :  { %v1265_v16 = vpop.eup %1264 }
0x1aec   :  { %v601_v17 = vmul.f32 %v1265_v16, %v1395_v11 }
0x1aee   :  { %v602_v18 = vsub.f32 1.0, %v601_v17 }
0x1af0   :  { %v603_v19 = vmax.f32 %v602_v18, 0.0 }
0x1af2   :  { %v604_v20 = vmul.f32 2.0, %v603_v19  ;;  %v607_v23 = vsub.f32 1.0, %v603_v19 }
0x1af4   :  { %v1184_v21 = vadd.f32 -1.0, %v604_v20  ;;  %v608_v24 = vmul.f32 %v607_v23, %v593_v9  ;;  %v675_v23 = vld [vmem:[%s1760_s3 + $0x1d] sm:$0x1] }
0x1af6   :  { %v606_v22 = vmul.f32 %v1184_v21, %v593_v9  ;;  %v610_v28 = vadd.f32 %v609_v25, %v608_v24 }
0x1af8   :  { %611 = vrot.lane.b32.xlu0 %v606_v22, %s1352_s23 }
0x1b6a   :  { %v612_v26 = vpop.permute.xlu0 %611 }
0x1b6b   :  { %v613_v27 = vadd.f32 %v612_v26, %v606_v22 }
0x1b6d   :  { %v614_v29 = vmul.f32 %v613_v27, %v1388_v1 }
0x1b6f   :  { %v615_v30 = vadd.f32 %v614_v29, %v610_v28 }
0x1b71   :  { %616 = vrot.lane.b32.xlu1 %v615_v30, %s1352_s23  ;;  %v618_v32 = vmul.f32 %v615_v30, %v615_v30 }
0x1be3   :  { %v617_v31 = vpop.permute.xlu1 %616 }
0x1be4   :  { %v619_v33 = vmul.f32 %v617_v31, %v617_v31 }
0x1be6   :  { %v620_v34 = vadd.f32 %v619_v33, %v618_v32 }
0x1be8   :  { %v621_v35 = vadd.f32 1e-08, %v620_v34 }
0x1bea   :  { %1266 = vrsqrt.f32 %v621_v35 }
0x1bf4   :  { %v1267_v36 = vpop.eup %1266 }
0x1bf5   :  { %v623_v37 = vmul.f32 %v1267_v36, %v1395_v11 }
0x1bf7   :  { %v624_v38 = vsub.f32 1.0, %v623_v37 }
0x1bf9   :  { %v625_v39 = vmax.f32 %v624_v38, 0.0 }
0x1bfb   :  { %v626_v40 = vmul.f32 2.0, %v625_v39  ;;  %v629_v43 = vsub.f32 1.0, %v625_v39 }
0x1bfd   :  { %v1185_v41 = vadd.f32 -1.0, %v626_v40  ;;  %v630_v44 = vmul.f32 %v629_v43, %v615_v30  ;;  %v697_v43 = vld [vmem:[%s1760_s3 + $0x1e] sm:$0x1] }
0x1bff   :  { %v628_v42 = vmul.f32 %v1185_v41, %v615_v30  ;;  %v632_v48 = vadd.f32 %v631_v45, %v630_v44 }
0x1c01   :  { %633 = vrot.lane.b32.xlu0 %v628_v42, %s1352_s23 }
0x1c73   :  { %v634_v46 = vpop.permute.xlu0 %633 }
0x1c74   :  { %v635_v47 = vadd.f32 %v634_v46, %v628_v42 }
0x1c76   :  { %v636_v49 = vmul.f32 %v635_v47, %v1388_v1 }
0x1c78   :  { %v637_v50 = vadd.f32 %v636_v49, %v632_v48 }
0x1c7a   :  { %638 = vrot.lane.b32.xlu1 %v637_v50, %s1352_s23  ;;  %v640_v52 = vmul.f32 %v637_v50, %v637_v50 }
0x1cec   :  { %v639_v51 = vpop.permute.xlu1 %638 }
0x1ced   :  { %v641_v53 = vmul.f32 %v639_v51, %v639_v51 }
0x1cef   :  { %v642_v54 = vadd.f32 %v641_v53, %v640_v52 }
0x1cf1   :  { %v643_v55 = vadd.f32 1e-08, %v642_v54 }
0x1cf3   :  { %1268 = vrsqrt.f32 %v643_v55 }
0x1cfd   :  { %v1269_v56 = vpop.eup %1268 }
0x1cfe   :  { %v645_v57 = vmul.f32 %v1269_v56, %v1395_v11 }
0x1d00   :  { %v646_v58 = vsub.f32 1.0, %v645_v57 }
0x1d02   :  { %v647_v59 = vmax.f32 %v646_v58, 0.0 }
0x1d04   :  { %v648_v60 = vmul.f32 2.0, %v647_v59  ;;  %v651_v63 = vsub.f32 1.0, %v647_v59 }
0x1d06   :  { %v1186_v61 = vadd.f32 -1.0, %v648_v60  ;;  %v652_v0 = vmul.f32 %v651_v63, %v637_v50  ;;  %v719_v63 = vld [vmem:[%s1760_s3 + $0x1f] sm:$0x1] }
0x1d08   :  { %v650_v62 = vmul.f32 %v1186_v61, %v637_v50  ;;  %v654_v5 = vadd.f32 %v653_v2, %v652_v0 }
0x1d0a   :  { %655 = vrot.lane.b32.xlu0 %v650_v62, %s1352_s23 }
0x1d7c   :  { %v656_v3 = vpop.permute.xlu0 %655 }
0x1d7d   :  { %v657_v4 = vadd.f32 %v656_v3, %v650_v62 }
0x1d7f   :  { %v658_v6 = vmul.f32 %v657_v4, %v1388_v1 }
0x1d81   :  { %v659_v7 = vadd.f32 %v658_v6, %v654_v5 }
0x1d83   :  { %660 = vrot.lane.b32.xlu1 %v659_v7, %s1352_s23  ;;  %v662_v9 = vmul.f32 %v659_v7, %v659_v7 }
0x1df5   :  { %v661_v8 = vpop.permute.xlu1 %660 }
0x1df6   :  { %v663_v10 = vmul.f32 %v661_v8, %v661_v8 }
0x1df8   :  { %v664_v12 = vadd.f32 %v663_v10, %v662_v9 }
0x1dfa   :  { %v665_v13 = vadd.f32 1e-08, %v664_v12 }
0x1dfc   :  { %1270 = vrsqrt.f32 %v665_v13 }
0x1e06   :  { %v1271_v14 = vpop.eup %1270 }
0x1e07   :  { %v667_v15 = vmul.f32 %v1271_v14, %v1395_v11 }
0x1e09   :  { %v668_v16 = vsub.f32 1.0, %v667_v15 }
0x1e0b   :  { %v669_v17 = vmax.f32 %v668_v16, 0.0 }
0x1e0d   :  { %v670_v18 = vmul.f32 2.0, %v669_v17  ;;  %v673_v21 = vsub.f32 1.0, %v669_v17 }
0x1e0f   :  { %v1187_v19 = vadd.f32 -1.0, %v670_v18  ;;  %v674_v22 = vmul.f32 %v673_v21, %v659_v7  ;;  %v741_v21 = vld [vmem:[%s1760_s3 + $0x20] sm:$0x1] }
0x1e11   :  { %v672_v20 = vmul.f32 %v1187_v19, %v659_v7  ;;  %v676_v26 = vadd.f32 %v675_v23, %v674_v22 }
0x1e13   :  { %677 = vrot.lane.b32.xlu0 %v672_v20, %s1352_s23 }
0x1e85   :  { %v678_v24 = vpop.permute.xlu0 %677 }
0x1e86   :  { %v679_v25 = vadd.f32 %v678_v24, %v672_v20 }
0x1e88   :  { %v680_v27 = vmul.f32 %v679_v25, %v1388_v1 }
0x1e8a   :  { %v681_v28 = vadd.f32 %v680_v27, %v676_v26 }
0x1e8c   :  { %682 = vrot.lane.b32.xlu1 %v681_v28, %s1352_s23  ;;  %v684_v30 = vmul.f32 %v681_v28, %v681_v28 }
0x1efe   :  { %v683_v29 = vpop.permute.xlu1 %682 }
0x1eff   :  { %v685_v31 = vmul.f32 %v683_v29, %v683_v29 }
0x1f01   :  { %v686_v32 = vadd.f32 %v685_v31, %v684_v30 }
0x1f03   :  { %v687_v33 = vadd.f32 1e-08, %v686_v32 }
0x1f05   :  { %1272 = vrsqrt.f32 %v687_v33 }
0x1f0f   :  { %v1273_v34 = vpop.eup %1272 }
0x1f10   :  { %v689_v35 = vmul.f32 %v1273_v34, %v1395_v11 }
0x1f12   :  { %v690_v36 = vsub.f32 1.0, %v689_v35 }
0x1f14   :  { %v691_v37 = vmax.f32 %v690_v36, 0.0 }
0x1f16   :  { %v692_v38 = vmul.f32 2.0, %v691_v37  ;;  %v695_v41 = vsub.f32 1.0, %v691_v37 }
0x1f18   :  { %v1188_v39 = vadd.f32 -1.0, %v692_v38  ;;  %v696_v42 = vmul.f32 %v695_v41, %v681_v28  ;;  %v763_v41 = vld [vmem:[%s1760_s3 + $0x21] sm:$0x1] }
0x1f1a   :  { %v694_v40 = vmul.f32 %v1188_v39, %v681_v28  ;;  %v698_v46 = vadd.f32 %v697_v43, %v696_v42 }
0x1f1c   :  { %699 = vrot.lane.b32.xlu0 %v694_v40, %s1352_s23 }
0x1f8e   :  { %v700_v44 = vpop.permute.xlu0 %699 }
0x1f8f   :  { %v701_v45 = vadd.f32 %v700_v44, %v694_v40 }
0x1f91   :  { %v702_v47 = vmul.f32 %v701_v45, %v1388_v1 }
0x1f93   :  { %v703_v48 = vadd.f32 %v702_v47, %v698_v46 }
0x1f95   :  { %704 = vrot.lane.b32.xlu1 %v703_v48, %s1352_s23  ;;  %v706_v50 = vmul.f32 %v703_v48, %v703_v48 }
0x2007   :  { %v705_v49 = vpop.permute.xlu1 %704 }
0x2008   :  { %v707_v51 = vmul.f32 %v705_v49, %v705_v49 }
0x200a   :  { %v708_v52 = vadd.f32 %v707_v51, %v706_v50 }
0x200c   :  { %v709_v53 = vadd.f32 1e-08, %v708_v52 }
0x200e   :  { %1274 = vrsqrt.f32 %v709_v53 }
0x2018   :  { %v1275_v54 = vpop.eup %1274 }
0x2019   :  { %v711_v55 = vmul.f32 %v1275_v54, %v1395_v11 }
0x201b   :  { %v712_v56 = vsub.f32 1.0, %v711_v55 }
0x201d   :  { %v713_v57 = vmax.f32 %v712_v56, 0.0 }
0x201f   :  { %v714_v58 = vmul.f32 2.0, %v713_v57  ;;  %v717_v61 = vsub.f32 1.0, %v713_v57 }
0x2021   :  { %v1189_v59 = vadd.f32 -1.0, %v714_v58  ;;  %v718_v62 = vmul.f32 %v717_v61, %v703_v48  ;;  %v785_v61 = vld [vmem:[%s1760_s3 + $0x22] sm:$0x1] }
0x2023   :  { %v716_v60 = vmul.f32 %v1189_v59, %v703_v48  ;;  %v720_v3 = vadd.f32 %v719_v63, %v718_v62 }
0x2025   :  { %721 = vrot.lane.b32.xlu0 %v716_v60, %s1352_s23 }
0x2097   :  { %v722_v0 = vpop.permute.xlu0 %721 }
0x2098   :  { %v723_v2 = vadd.f32 %v722_v0, %v716_v60 }
0x209a   :  { %v724_v4 = vmul.f32 %v723_v2, %v1388_v1 }
0x209c   :  { %v725_v5 = vadd.f32 %v724_v4, %v720_v3 }
0x209e   :  { %726 = vrot.lane.b32.xlu1 %v725_v5, %s1352_s23  ;;  %v728_v7 = vmul.f32 %v725_v5, %v725_v5 }
0x2110   :  { %v727_v6 = vpop.permute.xlu1 %726 }
0x2111   :  { %v729_v8 = vmul.f32 %v727_v6, %v727_v6 }
0x2113   :  { %v730_v9 = vadd.f32 %v729_v8, %v728_v7 }
0x2115   :  { %v731_v10 = vadd.f32 1e-08, %v730_v9 }
0x2117   :  { %1276 = vrsqrt.f32 %v731_v10 }
0x2121   :  { %v1277_v12 = vpop.eup %1276 }
0x2122   :  { %v733_v13 = vmul.f32 %v1277_v12, %v1395_v11 }
0x2124   :  { %v734_v14 = vsub.f32 1.0, %v733_v13 }
0x2126   :  { %v735_v15 = vmax.f32 %v734_v14, 0.0 }
0x2128   :  { %v736_v16 = vmul.f32 2.0, %v735_v15  ;;  %v739_v19 = vsub.f32 1.0, %v735_v15 }
0x212a   :  { %v1190_v17 = vadd.f32 -1.0, %v736_v16  ;;  %v740_v20 = vmul.f32 %v739_v19, %v725_v5  ;;  %v807_v19 = vld [vmem:[%s1760_s3 + $0x23] sm:$0x1] }
0x212c   :  { %v738_v18 = vmul.f32 %v1190_v17, %v725_v5  ;;  %v742_v24 = vadd.f32 %v741_v21, %v740_v20 }
0x212e   :  { %743 = vrot.lane.b32.xlu0 %v738_v18, %s1352_s23 }
0x21a0   :  { %v744_v22 = vpop.permute.xlu0 %743 }
0x21a1   :  { %v745_v23 = vadd.f32 %v744_v22, %v738_v18 }
0x21a3   :  { %v746_v25 = vmul.f32 %v745_v23, %v1388_v1 }
0x21a5   :  { %v747_v26 = vadd.f32 %v746_v25, %v742_v24 }
0x21a7   :  { %748 = vrot.lane.b32.xlu1 %v747_v26, %s1352_s23  ;;  %v750_v28 = vmul.f32 %v747_v26, %v747_v26 }
0x2219   :  { %v749_v27 = vpop.permute.xlu1 %748 }
0x221a   :  { %v751_v29 = vmul.f32 %v749_v27, %v749_v27 }
0x221c   :  { %v752_v30 = vadd.f32 %v751_v29, %v750_v28 }
0x221e   :  { %v753_v31 = vadd.f32 1e-08, %v752_v30 }
0x2220   :  { %1278 = vrsqrt.f32 %v753_v31 }
0x222a   :  { %v1279_v32 = vpop.eup %1278 }
0x222b   :  { %v755_v33 = vmul.f32 %v1279_v32, %v1395_v11 }
0x222d   :  { %v756_v34 = vsub.f32 1.0, %v755_v33 }
0x222f   :  { %v757_v35 = vmax.f32 %v756_v34, 0.0 }
0x2231   :  { %v758_v36 = vmul.f32 2.0, %v757_v35  ;;  %v761_v39 = vsub.f32 1.0, %v757_v35 }
0x2233   :  { %v1191_v37 = vadd.f32 -1.0, %v758_v36  ;;  %v762_v40 = vmul.f32 %v761_v39, %v747_v26  ;;  %v829_v39 = vld [vmem:[%s1760_s3 + $0x24] sm:$0x1] }
0x2235   :  { %v760_v38 = vmul.f32 %v1191_v37, %v747_v26  ;;  %v764_v44 = vadd.f32 %v763_v41, %v762_v40 }
0x2237   :  { %765 = vrot.lane.b32.xlu0 %v760_v38, %s1352_s23 }
0x22a9   :  { %v766_v42 = vpop.permute.xlu0 %765 }
0x22aa   :  { %v767_v43 = vadd.f32 %v766_v42, %v760_v38 }
0x22ac   :  { %v768_v45 = vmul.f32 %v767_v43, %v1388_v1 }
0x22ae   :  { %v769_v46 = vadd.f32 %v768_v45, %v764_v44 }
0x22b0   :  { %770 = vrot.lane.b32.xlu1 %v769_v46, %s1352_s23  ;;  %v772_v48 = vmul.f32 %v769_v46, %v769_v46 }
0x2322   :  { %v771_v47 = vpop.permute.xlu1 %770 }
0x2323   :  { %v773_v49 = vmul.f32 %v771_v47, %v771_v47 }
0x2325   :  { %v774_v50 = vadd.f32 %v773_v49, %v772_v48 }
0x2327   :  { %v775_v51 = vadd.f32 1e-08, %v774_v50 }
0x2329   :  { %1280 = vrsqrt.f32 %v775_v51 }
0x2333   :  { %v1281_v52 = vpop.eup %1280 }
0x2334   :  { %v777_v53 = vmul.f32 %v1281_v52, %v1395_v11 }
0x2336   :  { %v778_v54 = vsub.f32 1.0, %v777_v53 }
0x2338   :  { %v779_v55 = vmax.f32 %v778_v54, 0.0 }
0x233a   :  { %v780_v56 = vmul.f32 2.0, %v779_v55  ;;  %v783_v59 = vsub.f32 1.0, %v779_v55 }
0x233c   :  { %v1192_v57 = vadd.f32 -1.0, %v780_v56  ;;  %v784_v60 = vmul.f32 %v783_v59, %v769_v46  ;;  %v851_v59 = vld [vmem:[%s1760_s3 + $0x25] sm:$0x1] }
0x233e   :  { %v782_v58 = vmul.f32 %v1192_v57, %v769_v46  ;;  %v786_v0 = vadd.f32 %v785_v61, %v784_v60 }
0x2340   :  { %787 = vrot.lane.b32.xlu0 %v782_v58, %s1352_s23 }
0x23b2   :  { %v788_v62 = vpop.permute.xlu0 %787 }
0x23b3   :  { %v789_v63 = vadd.f32 %v788_v62, %v782_v58 }
0x23b5   :  { %v790_v2 = vmul.f32 %v789_v63, %v1388_v1 }
0x23b7   :  { %v791_v3 = vadd.f32 %v790_v2, %v786_v0 }
0x23b9   :  { %792 = vrot.lane.b32.xlu1 %v791_v3, %s1352_s23  ;;  %v794_v5 = vmul.f32 %v791_v3, %v791_v3 }
0x242b   :  { %v793_v4 = vpop.permute.xlu1 %792 }
0x242c   :  { %v795_v6 = vmul.f32 %v793_v4, %v793_v4 }
0x242e   :  { %v796_v7 = vadd.f32 %v795_v6, %v794_v5 }
0x2430   :  { %v797_v8 = vadd.f32 1e-08, %v796_v7 }
0x2432   :  { %1282 = vrsqrt.f32 %v797_v8 }
0x243c   :  { %v1283_v9 = vpop.eup %1282 }
0x243d   :  { %v799_v10 = vmul.f32 %v1283_v9, %v1395_v11 }
0x243f   :  { %v800_v12 = vsub.f32 1.0, %v799_v10 }
0x2441   :  { %v801_v13 = vmax.f32 %v800_v12, 0.0 }
0x2443   :  { %v802_v14 = vmul.f32 2.0, %v801_v13  ;;  %v805_v17 = vsub.f32 1.0, %v801_v13 }
0x2445   :  { %v1193_v15 = vadd.f32 -1.0, %v802_v14  ;;  %v806_v18 = vmul.f32 %v805_v17, %v791_v3  ;;  %v873_v17 = vld [vmem:[%s1760_s3 + $0x26] sm:$0x1] }
0x2447   :  { %v804_v16 = vmul.f32 %v1193_v15, %v791_v3  ;;  %v808_v22 = vadd.f32 %v807_v19, %v806_v18 }
0x2449   :  { %809 = vrot.lane.b32.xlu0 %v804_v16, %s1352_s23 }
0x24bb   :  { %v810_v20 = vpop.permute.xlu0 %809 }
0x24bc   :  { %v811_v21 = vadd.f32 %v810_v20, %v804_v16 }
0x24be   :  { %v812_v23 = vmul.f32 %v811_v21, %v1388_v1 }
0x24c0   :  { %v813_v24 = vadd.f32 %v812_v23, %v808_v22 }
0x24c2   :  { %814 = vrot.lane.b32.xlu1 %v813_v24, %s1352_s23  ;;  %v816_v26 = vmul.f32 %v813_v24, %v813_v24 }
0x2534   :  { %v815_v25 = vpop.permute.xlu1 %814 }
0x2535   :  { %v817_v27 = vmul.f32 %v815_v25, %v815_v25 }
0x2537   :  { %v818_v28 = vadd.f32 %v817_v27, %v816_v26 }
0x2539   :  { %v819_v29 = vadd.f32 1e-08, %v818_v28 }
0x253b   :  { %1284 = vrsqrt.f32 %v819_v29 }
0x2545   :  { %v1285_v30 = vpop.eup %1284 }
0x2546   :  { %v821_v31 = vmul.f32 %v1285_v30, %v1395_v11 }
0x2548   :  { %v822_v32 = vsub.f32 1.0, %v821_v31 }
0x254a   :  { %v823_v33 = vmax.f32 %v822_v32, 0.0 }
0x254c   :  { %v824_v34 = vmul.f32 2.0, %v823_v33  ;;  %v827_v37 = vsub.f32 1.0, %v823_v33 }
0x254e   :  { %v1194_v35 = vadd.f32 -1.0, %v824_v34  ;;  %v828_v38 = vmul.f32 %v827_v37, %v813_v24  ;;  %v895_v37 = vld [vmem:[%s1760_s3 + $0x27] sm:$0x1] }
0x2550   :  { %v826_v36 = vmul.f32 %v1194_v35, %v813_v24  ;;  %v830_v42 = vadd.f32 %v829_v39, %v828_v38 }
0x2552   :  { %831 = vrot.lane.b32.xlu0 %v826_v36, %s1352_s23 }
0x25c4   :  { %v832_v40 = vpop.permute.xlu0 %831 }
0x25c5   :  { %v833_v41 = vadd.f32 %v832_v40, %v826_v36 }
0x25c7   :  { %v834_v43 = vmul.f32 %v833_v41, %v1388_v1 }
0x25c9   :  { %v835_v44 = vadd.f32 %v834_v43, %v830_v42 }
0x25cb   :  { %836 = vrot.lane.b32.xlu1 %v835_v44, %s1352_s23  ;;  %v838_v46 = vmul.f32 %v835_v44, %v835_v44 }
0x263d   :  { %v837_v45 = vpop.permute.xlu1 %836 }
0x263e   :  { %v839_v47 = vmul.f32 %v837_v45, %v837_v45 }
0x2640   :  { %v840_v48 = vadd.f32 %v839_v47, %v838_v46 }
0x2642   :  { %v841_v49 = vadd.f32 1e-08, %v840_v48 }
0x2644   :  { %1286 = vrsqrt.f32 %v841_v49 }
0x264e   :  { %v1287_v50 = vpop.eup %1286 }
0x264f   :  { %v843_v51 = vmul.f32 %v1287_v50, %v1395_v11 }
0x2651   :  { %v844_v52 = vsub.f32 1.0, %v843_v51 }
0x2653   :  { %v845_v53 = vmax.f32 %v844_v52, 0.0 }
0x2655   :  { %v846_v54 = vmul.f32 2.0, %v845_v53  ;;  %v849_v57 = vsub.f32 1.0, %v845_v53 }
0x2657   :  { %v1195_v55 = vadd.f32 -1.0, %v846_v54  ;;  %v850_v58 = vmul.f32 %v849_v57, %v835_v44  ;;  %v917_v57 = vld [vmem:[%s1760_s3 + $0x28] sm:$0x1] }
0x2659   :  { %v848_v56 = vmul.f32 %v1195_v55, %v835_v44  ;;  %v852_v62 = vadd.f32 %v851_v59, %v850_v58 }
0x265b   :  { %853 = vrot.lane.b32.xlu0 %v848_v56, %s1352_s23 }
0x26cd   :  { %v854_v60 = vpop.permute.xlu0 %853 }
0x26ce   :  { %v855_v61 = vadd.f32 %v854_v60, %v848_v56 }
0x26d0   :  { %v856_v63 = vmul.f32 %v855_v61, %v1388_v1 }
0x26d2   :  { %v857_v0 = vadd.f32 %v856_v63, %v852_v62 }
0x26d4   :  { %858 = vrot.lane.b32.xlu1 %v857_v0, %s1352_s23  ;;  %v860_v3 = vmul.f32 %v857_v0, %v857_v0 }
0x2746   :  { %v859_v2 = vpop.permute.xlu1 %858 }
0x2747   :  { %v861_v4 = vmul.f32 %v859_v2, %v859_v2 }
0x2749   :  { %v862_v5 = vadd.f32 %v861_v4, %v860_v3 }
0x274b   :  { %v863_v6 = vadd.f32 1e-08, %v862_v5 }
0x274d   :  { %1288 = vrsqrt.f32 %v863_v6 }
0x2757   :  { %v1289_v7 = vpop.eup %1288 }
0x2758   :  { %v865_v8 = vmul.f32 %v1289_v7, %v1395_v11 }
0x275a   :  { %v866_v9 = vsub.f32 1.0, %v865_v8 }
0x275c   :  { %v867_v10 = vmax.f32 %v866_v9, 0.0 }
0x275e   :  { %v868_v12 = vmul.f32 2.0, %v867_v10  ;;  %v871_v15 = vsub.f32 1.0, %v867_v10 }
0x2760   :  { %v1196_v13 = vadd.f32 -1.0, %v868_v12  ;;  %v872_v16 = vmul.f32 %v871_v15, %v857_v0  ;;  %v939_v15 = vld [vmem:[%s1760_s3 + $0x29] sm:$0x1] }
0x2762   :  { %v870_v14 = vmul.f32 %v1196_v13, %v857_v0  ;;  %v874_v20 = vadd.f32 %v873_v17, %v872_v16 }
0x2764   :  { %875 = vrot.lane.b32.xlu0 %v870_v14, %s1352_s23 }
0x27d6   :  { %v876_v18 = vpop.permute.xlu0 %875 }
0x27d7   :  { %v877_v19 = vadd.f32 %v876_v18, %v870_v14 }
0x27d9   :  { %v878_v21 = vmul.f32 %v877_v19, %v1388_v1 }
0x27db   :  { %v879_v22 = vadd.f32 %v878_v21, %v874_v20 }
0x27dd   :  { %880 = vrot.lane.b32.xlu1 %v879_v22, %s1352_s23  ;;  %v882_v24 = vmul.f32 %v879_v22, %v879_v22 }
0x284f   :  { %v881_v23 = vpop.permute.xlu1 %880 }
0x2850   :  { %v883_v25 = vmul.f32 %v881_v23, %v881_v23 }
0x2852   :  { %v884_v26 = vadd.f32 %v883_v25, %v882_v24 }
0x2854   :  { %v885_v27 = vadd.f32 1e-08, %v884_v26 }
0x2856   :  { %1290 = vrsqrt.f32 %v885_v27 }
0x2860   :  { %v1291_v28 = vpop.eup %1290 }
0x2861   :  { %v887_v29 = vmul.f32 %v1291_v28, %v1395_v11 }
0x2863   :  { %v888_v30 = vsub.f32 1.0, %v887_v29 }
0x2865   :  { %v889_v31 = vmax.f32 %v888_v30, 0.0 }
0x2867   :  { %v890_v32 = vmul.f32 2.0, %v889_v31  ;;  %v893_v35 = vsub.f32 1.0, %v889_v31 }
0x2869   :  { %v1197_v33 = vadd.f32 -1.0, %v890_v32  ;;  %v894_v36 = vmul.f32 %v893_v35, %v879_v22  ;;  %v961_v35 = vld [vmem:[%s1760_s3 + $0x2a] sm:$0x1] }
0x286b   :  { %v892_v34 = vmul.f32 %v1197_v33, %v879_v22  ;;  %v896_v40 = vadd.f32 %v895_v37, %v894_v36 }
0x286d   :  { %897 = vrot.lane.b32.xlu0 %v892_v34, %s1352_s23 }
0x28df   :  { %v898_v38 = vpop.permute.xlu0 %897 }
0x28e0   :  { %v899_v39 = vadd.f32 %v898_v38, %v892_v34 }
0x28e2   :  { %v900_v41 = vmul.f32 %v899_v39, %v1388_v1 }
0x28e4   :  { %v901_v42 = vadd.f32 %v900_v41, %v896_v40 }
0x28e6   :  { %902 = vrot.lane.b32.xlu1 %v901_v42, %s1352_s23  ;;  %v904_v44 = vmul.f32 %v901_v42, %v901_v42 }
0x2958   :  { %v903_v43 = vpop.permute.xlu1 %902 }
0x2959   :  { %v905_v45 = vmul.f32 %v903_v43, %v903_v43 }
0x295b   :  { %v906_v46 = vadd.f32 %v905_v45, %v904_v44 }
0x295d   :  { %v907_v47 = vadd.f32 1e-08, %v906_v46 }
0x295f   :  { %1292 = vrsqrt.f32 %v907_v47 }
0x2969   :  { %v1293_v48 = vpop.eup %1292 }
0x296a   :  { %v909_v49 = vmul.f32 %v1293_v48, %v1395_v11 }
0x296c   :  { %v910_v50 = vsub.f32 1.0, %v909_v49 }
0x296e   :  { %v911_v51 = vmax.f32 %v910_v50, 0.0 }
0x2970   :  { %v912_v52 = vmul.f32 2.0, %v911_v51  ;;  %v915_v55 = vsub.f32 1.0, %v911_v51 }
0x2972   :  { %v1198_v53 = vadd.f32 -1.0, %v912_v52  ;;  %v916_v56 = vmul.f32 %v915_v55, %v901_v42  ;;  %v983_v55 = vld [vmem:[%s1760_s3 + $0x2b] sm:$0x1] }
0x2974   :  { %v914_v54 = vmul.f32 %v1198_v53, %v901_v42  ;;  %v918_v60 = vadd.f32 %v917_v57, %v916_v56 }
0x2976   :  { %919 = vrot.lane.b32.xlu0 %v914_v54, %s1352_s23 }
0x29e8   :  { %v920_v58 = vpop.permute.xlu0 %919 }
0x29e9   :  { %v921_v59 = vadd.f32 %v920_v58, %v914_v54 }
0x29eb   :  { %v922_v61 = vmul.f32 %v921_v59, %v1388_v1 }
0x29ed   :  { %v923_v62 = vadd.f32 %v922_v61, %v918_v60 }
0x29ef   :  { %924 = vrot.lane.b32.xlu1 %v923_v62, %s1352_s23  ;;  %v926_v0 = vmul.f32 %v923_v62, %v923_v62 }
0x2a61   :  { %v925_v63 = vpop.permute.xlu1 %924 }
0x2a62   :  { %v927_v2 = vmul.f32 %v925_v63, %v925_v63 }
0x2a64   :  { %v928_v3 = vadd.f32 %v927_v2, %v926_v0 }
0x2a66   :  { %v929_v4 = vadd.f32 1e-08, %v928_v3 }
0x2a68   :  { %1294 = vrsqrt.f32 %v929_v4 }
0x2a72   :  { %v1295_v5 = vpop.eup %1294 }
0x2a73   :  { %v931_v6 = vmul.f32 %v1295_v5, %v1395_v11 }
0x2a75   :  { %v932_v7 = vsub.f32 1.0, %v931_v6 }
0x2a77   :  { %v933_v8 = vmax.f32 %v932_v7, 0.0 }
0x2a79   :  { %v934_v9 = vmul.f32 2.0, %v933_v8  ;;  %v937_v13 = vsub.f32 1.0, %v933_v8 }
0x2a7b   :  { %v1199_v10 = vadd.f32 -1.0, %v934_v9  ;;  %v938_v14 = vmul.f32 %v937_v13, %v923_v62  ;;  %v1005_v13 = vld [vmem:[%s1760_s3 + $0x2c] sm:$0x1] }
0x2a7d   :  { %v936_v12 = vmul.f32 %v1199_v10, %v923_v62  ;;  %v940_v18 = vadd.f32 %v939_v15, %v938_v14 }
0x2a7f   :  { %941 = vrot.lane.b32.xlu0 %v936_v12, %s1352_s23 }
0x2af1   :  { %v942_v16 = vpop.permute.xlu0 %941 }
0x2af2   :  { %v943_v17 = vadd.f32 %v942_v16, %v936_v12 }
0x2af4   :  { %v944_v19 = vmul.f32 %v943_v17, %v1388_v1 }
0x2af6   :  { %v945_v20 = vadd.f32 %v944_v19, %v940_v18 }
0x2af8   :  { %946 = vrot.lane.b32.xlu1 %v945_v20, %s1352_s23  ;;  %v948_v22 = vmul.f32 %v945_v20, %v945_v20 }
0x2b6a   :  { %v947_v21 = vpop.permute.xlu1 %946 }
0x2b6b   :  { %v949_v23 = vmul.f32 %v947_v21, %v947_v21 }
0x2b6d   :  { %v950_v24 = vadd.f32 %v949_v23, %v948_v22 }
0x2b6f   :  { %v951_v25 = vadd.f32 1e-08, %v950_v24 }
0x2b71   :  { %1296 = vrsqrt.f32 %v951_v25 }
0x2b7b   :  { %v1297_v26 = vpop.eup %1296 }
0x2b7c   :  { %v953_v27 = vmul.f32 %v1297_v26, %v1395_v11 }
0x2b7e   :  { %v954_v28 = vsub.f32 1.0, %v953_v27 }
0x2b80   :  { %v955_v29 = vmax.f32 %v954_v28, 0.0 }
0x2b82   :  { %v956_v30 = vmul.f32 2.0, %v955_v29  ;;  %v959_v33 = vsub.f32 1.0, %v955_v29 }
0x2b84   :  { %v1200_v31 = vadd.f32 -1.0, %v956_v30  ;;  %v960_v34 = vmul.f32 %v959_v33, %v945_v20  ;;  %v1027_v33 = vld [vmem:[%s1760_s3 + $0x2d] sm:$0x1] }
0x2b86   :  { %v958_v32 = vmul.f32 %v1200_v31, %v945_v20  ;;  %v962_v38 = vadd.f32 %v961_v35, %v960_v34 }
0x2b88   :  { %963 = vrot.lane.b32.xlu0 %v958_v32, %s1352_s23 }
0x2bfa   :  { %v964_v36 = vpop.permute.xlu0 %963 }
0x2bfb   :  { %v965_v37 = vadd.f32 %v964_v36, %v958_v32 }
0x2bfd   :  { %v966_v39 = vmul.f32 %v965_v37, %v1388_v1 }
0x2bff   :  { %v967_v40 = vadd.f32 %v966_v39, %v962_v38 }
0x2c01   :  { %968 = vrot.lane.b32.xlu1 %v967_v40, %s1352_s23  ;;  %v970_v42 = vmul.f32 %v967_v40, %v967_v40 }
0x2c73   :  { %v969_v41 = vpop.permute.xlu1 %968 }
0x2c74   :  { %v971_v43 = vmul.f32 %v969_v41, %v969_v41 }
0x2c76   :  { %v972_v44 = vadd.f32 %v971_v43, %v970_v42 }
0x2c78   :  { %v973_v45 = vadd.f32 1e-08, %v972_v44 }
0x2c7a   :  { %1298 = vrsqrt.f32 %v973_v45 }
0x2c84   :  { %v1299_v46 = vpop.eup %1298 }
0x2c85   :  { %v975_v47 = vmul.f32 %v1299_v46, %v1395_v11 }
0x2c87   :  { %v976_v48 = vsub.f32 1.0, %v975_v47 }
0x2c89   :  { %v977_v49 = vmax.f32 %v976_v48, 0.0 }
0x2c8b   :  { %v978_v50 = vmul.f32 2.0, %v977_v49  ;;  %v981_v53 = vsub.f32 1.0, %v977_v49 }
0x2c8d   :  { %v1201_v51 = vadd.f32 -1.0, %v978_v50  ;;  %v982_v54 = vmul.f32 %v981_v53, %v967_v40  ;;  %v1049_v53 = vld [vmem:[%s1760_s3 + $0x2e] sm:$0x1] }
0x2c8f   :  { %v980_v52 = vmul.f32 %v1201_v51, %v967_v40  ;;  %v984_v58 = vadd.f32 %v983_v55, %v982_v54 }
0x2c91   :  { %985 = vrot.lane.b32.xlu0 %v980_v52, %s1352_s23 }
0x2d03   :  { %v986_v56 = vpop.permute.xlu0 %985 }
0x2d04   :  { %v987_v57 = vadd.f32 %v986_v56, %v980_v52 }
0x2d06   :  { %v988_v59 = vmul.f32 %v987_v57, %v1388_v1 }
0x2d08   :  { %v989_v60 = vadd.f32 %v988_v59, %v984_v58 }
0x2d0a   :  { %990 = vrot.lane.b32.xlu1 %v989_v60, %s1352_s23  ;;  %v992_v62 = vmul.f32 %v989_v60, %v989_v60 }
0x2d7c   :  { %v991_v61 = vpop.permute.xlu1 %990 }
0x2d7d   :  { %v993_v63 = vmul.f32 %v991_v61, %v991_v61 }
0x2d7f   :  { %v994_v0 = vadd.f32 %v993_v63, %v992_v62 }
0x2d81   :  { %v995_v2 = vadd.f32 1e-08, %v994_v0 }
0x2d83   :  { %1300 = vrsqrt.f32 %v995_v2 }
0x2d8d   :  { %v1301_v3 = vpop.eup %1300 }
0x2d8e   :  { %v997_v4 = vmul.f32 %v1301_v3, %v1395_v11 }
0x2d90   :  { %v998_v5 = vsub.f32 1.0, %v997_v4 }
0x2d92   :  { %v999_v6 = vmax.f32 %v998_v5, 0.0 }
0x2d94   :  { %v1000_v7 = vmul.f32 2.0, %v999_v6  ;;  %v1003_v10 = vsub.f32 1.0, %v999_v6 }
0x2d96   :  { %v1202_v8 = vadd.f32 -1.0, %v1000_v7  ;;  %v1004_v12 = vmul.f32 %v1003_v10, %v989_v60  ;;  %v1071_v10 = vld [vmem:[%s1760_s3 + $0x2f] sm:$0x1] }
0x2d98   :  { %v1002_v9 = vmul.f32 %v1202_v8, %v989_v60  ;;  %v1006_v16 = vadd.f32 %v1005_v13, %v1004_v12 }
0x2d9a   :  { %1007 = vrot.lane.b32.xlu0 %v1002_v9, %s1352_s23 }
0x2e0c   :  { %v1008_v14 = vpop.permute.xlu0 %1007 }
0x2e0d   :  { %v1009_v15 = vadd.f32 %v1008_v14, %v1002_v9 }
0x2e0f   :  { %v1010_v17 = vmul.f32 %v1009_v15, %v1388_v1 }
0x2e11   :  { %v1011_v18 = vadd.f32 %v1010_v17, %v1006_v16 }
0x2e13   :  { %1012 = vrot.lane.b32.xlu1 %v1011_v18, %s1352_s23  ;;  %v1014_v20 = vmul.f32 %v1011_v18, %v1011_v18 }
0x2e85   :  { %v1013_v19 = vpop.permute.xlu1 %1012 }
0x2e86   :  { %v1015_v21 = vmul.f32 %v1013_v19, %v1013_v19 }
0x2e88   :  { %v1016_v22 = vadd.f32 %v1015_v21, %v1014_v20 }
0x2e8a   :  { %v1017_v23 = vadd.f32 1e-08, %v1016_v22 }
0x2e8c   :  { %1302 = vrsqrt.f32 %v1017_v23 }
0x2e96   :  { %v1303_v24 = vpop.eup %1302 }
0x2e97   :  { %v1019_v25 = vmul.f32 %v1303_v24, %v1395_v11 }
0x2e99   :  { %v1020_v26 = vsub.f32 1.0, %v1019_v25 }
0x2e9b   :  { %v1021_v27 = vmax.f32 %v1020_v26, 0.0 }
0x2e9d   :  { %v1022_v28 = vmul.f32 2.0, %v1021_v27  ;;  %v1025_v31 = vsub.f32 1.0, %v1021_v27 }
0x2e9f   :  { %v1203_v29 = vadd.f32 -1.0, %v1022_v28  ;;  %v1026_v32 = vmul.f32 %v1025_v31, %v1011_v18 }
0x2ea1   :  { %v1024_v30 = vmul.f32 %v1203_v29, %v1011_v18  ;;  %v1028_v36 = vadd.f32 %v1027_v33, %v1026_v32  ;;  %v1093_v32 = vld [vmem:[%s1760_s3 + $0x30] sm:$0x1] }
0x2ea3   :  { %1029 = vrot.lane.b32.xlu0 %v1024_v30, %s1352_s23 }
0x2f15   :  { %v1030_v34 = vpop.permute.xlu0 %1029 }
0x2f16   :  { %v1031_v35 = vadd.f32 %v1030_v34, %v1024_v30 }
0x2f18   :  { %v1032_v37 = vmul.f32 %v1031_v35, %v1388_v1 }
0x2f1a   :  { %v1033_v38 = vadd.f32 %v1032_v37, %v1028_v36 }
0x2f1c   :  { %1034 = vrot.lane.b32.xlu1 %v1033_v38, %s1352_s23  ;;  %v1036_v40 = vmul.f32 %v1033_v38, %v1033_v38 }
0x2f8e   :  { %v1035_v39 = vpop.permute.xlu1 %1034 }
0x2f8f   :  { %v1037_v41 = vmul.f32 %v1035_v39, %v1035_v39 }
0x2f91   :  { %v1038_v42 = vadd.f32 %v1037_v41, %v1036_v40 }
0x2f93   :  { %v1039_v43 = vadd.f32 1e-08, %v1038_v42 }
0x2f95   :  { %1304 = vrsqrt.f32 %v1039_v43 }
0x2f9f   :  { %v1305_v44 = vpop.eup %1304 }
0x2fa0   :  { %v1041_v45 = vmul.f32 %v1305_v44, %v1395_v11 }
0x2fa2   :  { %v1042_v46 = vsub.f32 1.0, %v1041_v45 }
0x2fa4   :  { %v1043_v47 = vmax.f32 %v1042_v46, 0.0 }
0x2fa6   :  { %v1044_v48 = vmul.f32 2.0, %v1043_v47  ;;  %v1047_v51 = vsub.f32 1.0, %v1043_v47 }
0x2fa8   :  { %v1204_v49 = vadd.f32 -1.0, %v1044_v48  ;;  %v1048_v52 = vmul.f32 %v1047_v51, %v1033_v38  ;;  %v1116_v51 = vld [vmem:[%s1759_s2] sm:$0x1]  ;;  %s1353_s2 = smov [#allocation5]  }
0x2faa   :  { %v1046_v50 = vmul.f32 %v1204_v49, %v1033_v38  ;;  %v1050_v56 = vadd.f32 %v1049_v53, %v1048_v52  ;;  %v1120_v53 = vld [vmem:[%s1758_s1] sm:$0x1]  ;;  %s1147_s1 = sshll.u32 %s1353_s2, 4  ;;  %s1148_s1 = int_to_ptr.vmem [resolvable:$true] %s1147_s1 }
0x2fab   :  { %s1328_s28 = scalar_lea.vmem %s1148_s1, 32  ;;  %p1329_p6 = scmp.lt.s32.totalorder %s1148_s1, %s1148_s1 }
0x2fac   :  { %1051 = vrot.lane.b32.xlu0 %v1046_v50, %s1352_s23 }
0x301e   :  { %v1052_v54 = vpop.permute.xlu0 %1051 }
0x301f   :  { %v1053_v55 = vadd.f32 %v1052_v54, %v1046_v50 }
0x3021   :  { %v1054_v57 = vmul.f32 %v1053_v55, %v1388_v1 }
0x3023   :  { %v1055_v58 = vadd.f32 %v1054_v57, %v1050_v56 }
0x3025   :  { %1056 = vrot.lane.b32.xlu1 %v1055_v58, %s1352_s23  ;;  %v1058_v60 = vmul.f32 %v1055_v58, %v1055_v58 }
0x3097   :  { %v1057_v59 = vpop.permute.xlu1 %1056 }
0x3098   :  { %v1059_v61 = vmul.f32 %v1057_v59, %v1057_v59 }
0x309a   :  { %v1060_v62 = vadd.f32 %v1059_v61, %v1058_v60 }
0x309c   :  { %v1061_v63 = vadd.f32 1e-08, %v1060_v62 }
0x309e   :  { %1306 = vrsqrt.f32 %v1061_v63 }
0x30a8   :  { %v1307_v0 = vpop.eup %1306 }
0x30a9   :  { %v1063_v2 = vmul.f32 %v1307_v0, %v1395_v11 }
0x30ab   :  { %v1064_v3 = vsub.f32 1.0, %v1063_v2 }
0x30ad   :  { %v1065_v4 = vmax.f32 %v1064_v3, 0.0 }
0x30af   :  { %v1066_v5 = vmul.f32 2.0, %v1065_v4  ;;  %v1069_v8 = vsub.f32 1.0, %v1065_v4 }
0x30b1   :  { %v1205_v6 = vadd.f32 -1.0, %v1066_v5  ;;  %v1070_v9 = vmul.f32 %v1069_v8, %v1055_v58 }
0x30b3   :  { %v1068_v7 = vmul.f32 %v1205_v6, %v1055_v58  ;;  %v1072_v14 = vadd.f32 %v1071_v10, %v1070_v9 }
0x30b5   :  { %1073 = vrot.lane.b32.xlu0 %v1068_v7, %s1352_s23 }
0x3127   :  { %v1074_v12 = vpop.permute.xlu0 %1073 }
0x3128   :  { %v1075_v13 = vadd.f32 %v1074_v12, %v1068_v7 }
0x312a   :  { %v1076_v15 = vmul.f32 %v1075_v13, %v1388_v1 }
0x312c   :  { %v1077_v16 = vadd.f32 %v1076_v15, %v1072_v14 }
0x312e   :  { %1078 = vrot.lane.b32.xlu1 %v1077_v16, %s1352_s23  ;;  %v1080_v18 = vmul.f32 %v1077_v16, %v1077_v16 }
0x31a0   :  { %v1079_v17 = vpop.permute.xlu1 %1078 }
0x31a1   :  { %v1081_v19 = vmul.f32 %v1079_v17, %v1079_v17 }
0x31a3   :  { %v1082_v20 = vadd.f32 %v1081_v19, %v1080_v18 }
0x31a5   :  { %v1083_v21 = vadd.f32 1e-08, %v1082_v20 }
0x31a7   :  { %1308 = vrsqrt.f32 %v1083_v21 }
0x31b1   :  { %v1309_v22 = vpop.eup %1308 }
0x31b2   :  { %v1085_v23 = vmul.f32 %v1309_v22, %v1395_v11 }
0x31b4   :  { %v1086_v24 = vsub.f32 1.0, %v1085_v23 }
0x31b6   :  { %v1087_v25 = vmax.f32 %v1086_v24, 0.0 }
0x31b8   :  { %v1088_v26 = vmul.f32 2.0, %v1087_v25  ;;  %v1091_v29 = vsub.f32 1.0, %v1087_v25 }
0x31ba   :  { %v1206_v27 = vadd.f32 -1.0, %v1088_v26  ;;  %v1092_v30 = vmul.f32 %v1091_v29, %v1077_v16 }
0x31bc   :  { %v1090_v28 = vmul.f32 %v1206_v27, %v1077_v16  ;;  %v1094_v35 = vadd.f32 %v1093_v32, %v1092_v30 }
0x31be   :  { %1095 = vrot.lane.b32.xlu0 %v1090_v28, %s1352_s23 }
0x3230   :  { %v1096_v31 = vpop.permute.xlu0 %1095 }
0x3231   :  { %v1097_v33 = vadd.f32 %v1096_v31, %v1090_v28 }
0x3233   :  { %v1098_v34 = vmul.f32 %v1097_v33, %v1388_v1 }
0x3235   :  { %v1099_v36 = vadd.f32 %v1098_v34, %v1094_v35 }
0x3237   :  { %1100 = vrot.lane.b32.xlu1 %v1099_v36, %s1352_s23  ;;  %v1102_v38 = vmul.f32 %v1099_v36, %v1099_v36 }
0x32a9   :  { %v1101_v37 = vpop.permute.xlu1 %1100 }
0x32aa   :  { %v1103_v39 = vmul.f32 %v1101_v37, %v1101_v37 }
0x32ac   :  { %v1104_v40 = vadd.f32 %v1103_v39, %v1102_v38 }
0x32ae   :  { %v1105_v41 = vadd.f32 1e-08, %v1104_v40 }
0x32b0   :  { %1310 = vrsqrt.f32 %v1105_v41 }
0x32ba   :  { %v1311_v42 = vpop.eup %1310 }
0x32bb   :  { %v1107_v43 = vmul.f32 %v1311_v42, %v1395_v11 }
0x32bd   :  { %v1108_v44 = vsub.f32 1.0, %v1107_v43 }
0x32bf   :  { %v1109_v45 = vmax.f32 %v1108_v44, 0.0 }
0x32c1   :  { %v1110_v46 = vmul.f32 2.0, %v1109_v45 }
0x32c3   :  { %v1207_v47 = vadd.f32 -1.0, %v1110_v46 }
0x32c5   :  { %v1112_v48 = vmul.f32 %v1207_v47, %v1099_v36 }
0x32c7   :  { %1113 = vrot.lane.b32.xlu0 %v1112_v48, %s1352_s23 }
0x3339   :  { %v1114_v49 = vpop.permute.xlu0 %1113 }
0x333a   :  { %v1115_v50 = vadd.f32 %v1114_v49, %v1112_v48 }
0x333c   :  { %v1117_v52 = vmul.f32 %v1115_v50, %v1388_v1 }
0x333e   :  { %v1118_v11 = vsub.f32 %v1116_v51, %v1117_v52 }
0x3340   :  { %1119 = vst [vmem:[%s1761_s4] sm:$0x1] %v1118_v11  ;;  %v1121_v54 = vsub.f32 %v1118_v11, %v1120_v53  ;;  %s1324_s4 = scalar_lea.vmem %s1148_s1, 16 }
0x3341   :  { %p1325_p5 = scmp.ne.s32.totalorder %s1148_s1, %s1324_s4  ;;  %p1330_p7 = scmp.lt.s32.totalorder %s1328_s28, %s1324_s4 }
0x3342   :  { %v1122_v55 = vmul.f32 %v1121_v54, %v1121_v54 }
0x3343   :  { %p1331_p8 = por %p1330_p7, %p1329_p6 }
0x3344   :  { %v1124_v56 = vsel %vm1123_vm0, %v1122_v55, 0.0 }
0x3345   :  { %1125 = vadd.xlane.f32.xlu1 %v1124_v56  ;;  %p1332_p9 = pnand %p1331_p8, %p1325_p5 }
0x33d2   :  { %v1126_v57 = vpop.xlane.xlu1 %1125 }
0x33d3   :  { %v1127_v58 = vrot.slane %v1126_v57, 4 }
0x33d5   :  { %v1128_v59 = vadd.f32 %v1127_v58, %v1126_v57 }
0x33d7   :  { %v1129_v60 = vrot.slane %v1128_v59, 2 }
0x33d9   :  { %v1130_v61 = vadd.f32 %v1129_v60, %v1128_v59 }
0x33db   :  { %v1131_v1 = vrot.slane %v1130_v61, 1 }
0x33dd   :  { %v1132_v62 = vadd.f32 %v1131_v1, %v1130_v61 }
0x33df   :  { %1208 = vpush %v1132_v62 }
0x3410   :  { %s1209_s23 = spop %1208 }
0x3411   :  { %v1134_v63 = vstv %s1209_s23 }
0x3412   :  { %v1136_v0 = vmul.f32 0.0078125, %v1134_v63 }
0x3414   :  { %1138 = vst.msk [vmem:[#allocation5] sm:$0x1] %vm1137_vm1, %v1136_v0 }
0x3415   :  { %1335 = shalt.err (!%p1332_p9)
}
0x3416   :  { %s1336_s6 = scalar_lea.hbm %s1762_s5, 16 }
0x3417   :  { %p1337_p10 = scmp.ne.s32.totalorder %s1762_s5, %s1336_s6  ;;  %p1340_p11 = scmp.lt.u32.totalorder %s1336_s6, %s1762_s5 }
0x3419   :  { %p1342_p12 = pnand %p1340_p11, %p1337_p10 }
0x341b   :  { %1345 = shalt.err (!%p1342_p12)
}
0x341c   :  { %1150 = dma.vmem_to_hbm [thread:$0]  %s1148_s1, 16, %s1762_s5, [#allocation3]  }
0x341d   :  { %1348 = dma.done.wait [#allocation3], 16  }
0x341e   :  { %1349 = vsyncadd [#allocation3], 4294967280 }
0x341f   :  { %1156 = vsyncpa [#allocation3], 1 }
0x3420   :  { %1157 = vsyncpa [#allocation4], 1 }

</bundles_post_ra>
